<compile_context>
chip_gen: v6e
topology: v6e:2x2x1
jax: 0.10.0
libtpu: 0.0.40
codegen_flags: <defaults>
</compile_context>

<pallas_src>
import functools
import math

import jax
import jax.numpy as jnp
from jax.experimental import pallas as pl
from jax.experimental.pallas import tpu as pltpu


def _ru(x, m):
    return ((x + m - 1) // m) * m


_ROW_TILE = 256  # keeps double-buffered blocks far below VMEM even for [tile, 1024] f32

_CPARAMS = pltpu.CompilerParams(
    dimension_semantics=("parallel",),      # row axis shards across TCs where available
    vmem_limit_bytes=32 * 1024 * 1024,      # explicit, safe on v5e/v6e/v7x
)


# ----------------------------- Pallas kernels ------------------------------

def _dense_kernel(x_ref, w_ref, b_ref, o_ref, *, activation):
    # bf16 operands on the MXU, f32 accumulation.
    x = x_ref[...].astype(jnp.bfloat16)
    acc = jnp.dot(x, w_ref[...], preferred_element_type=jnp.float32)
    acc = acc + b_ref[...]
    if activation == "relu":
        acc = jnp.maximum(acc, 0.0)
    o_ref[...] = acc


def linear_pallas(x, w_packed, b_packed, activation=None):
    """y = act(x @ w_packed + b).  x:[M,K] f32, w_packed:[K,N] bf16, b:[1,N] f32."""
    M, K = x.shape
    N = w_packed.shape[1]
    tR = min(_ru(M, 8), _ROW_TILE)
    Mp = _ru(M, tR)
    xp = x if Mp == M else jnp.zeros((Mp, K), x.dtype).at[:M].set(x)
    out = pl.pallas_call(
        functools.partial(_dense_kernel, activation=activation),
        out_shape=jax.ShapeDtypeStruct((Mp, N), jnp.float32),
        grid=(Mp // tR,),
        in_specs=[pl.BlockSpec((tR, K), lambda i: (i, 0)),
                  pl.BlockSpec((K, N), lambda i: (0, 0)),
                  pl.BlockSpec((1, N), lambda i: (0, 0))],
        out_specs=pl.BlockSpec((tR, N), lambda i: (i, 0)),
        compiler_params=_CPARAMS,
    )(xp, w_packed, b_packed)
    return out[:M]


def _edge_message_kernel(x_ref, w_ref, o_ref):
    x = x_ref[...]                      # [tE, D]
    w = w_ref[...]                      # [tE, D, D]
    o_ref[...] = jnp.sum(x[:, :, None] * w, axis=1)


def edge_message_pallas(x_src, w_edges):
    """m[e] = x_src[e] @ w_edges[e].  x_src:[E,D], w_edges:[E,D,D] (no lane padding)."""
    E, D = x_src.shape
    tE = min(_ru(E, 8), _ROW_TILE)
    Ep = _ru(E, tE)
    if Ep != E:
        x_src = jnp.zeros((Ep, D), x_src.dtype).at[:E].set(x_src)
        w_edges = jnp.zeros((Ep, D, D), w_edges.dtype).at[:E].set(w_edges)
    out = pl.pallas_call(
        _edge_message_kernel,
        out_shape=jax.ShapeDtypeStruct((Ep, D), jnp.float32),
        grid=(Ep // tE,),
        in_specs=[pl.BlockSpec((tE, D), lambda i: (i, 0)),
                  pl.BlockSpec((tE, D, D), lambda i: (i, 0, 0))],
        out_specs=pl.BlockSpec((tE, D), lambda i: (i, 0)),
        compiler_params=_CPARAMS,
    )(x_src, w_edges)
    return out[:E]


def _gru_conv_fused_kernel(msum_ref, invc_ref, h_ref, cbias_ref,
                           wx_ref, wh_ref, bx_ref, bh_ref, o_ref, *, d):
    # NNConv epilogue fused in: m = relu(seg_sum * (1/deg) + conv_bias)
    m = jnp.maximum(msum_ref[...] * invc_ref[...] + cbias_ref[...], 0.0)   # [tR, d]
    h = h_ref[...]                                                          # [tR, d]
    gi = jnp.dot(m.astype(jnp.bfloat16), wx_ref[...],
                 preferred_element_type=jnp.float32) + bx_ref[...]          # [tR, 3d]
    gh = jnp.dot(h.astype(jnp.bfloat16), wh_ref[...],
                 preferred_element_type=jnp.float32) + bh_ref[...]          # [tR, 3d]
    r = jax.nn.sigmoid(gi[:, 0:d] + gh[:, 0:d])
    z = jax.nn.sigmoid(gi[:, d:2 * d] + gh[:, d:2 * d])
    n = jnp.tanh(gi[:, 2 * d:3 * d] + r * gh[:, 2 * d:3 * d])
    o_ref[...] = (1.0 - z) * n + z * h


def gru_conv_fused_pallas(msum, invc, h, cbias, wx, wh, bx, bh, d):
    """One NNConv-epilogue + GRU step.  msum:[N,d], invc:[N,1], h:[N,d]."""
    N = msum.shape[0]
    tR = min(_ru(N, 8), _ROW_TILE)
    Np = _ru(N, tR)
    if Np != N:
        msum = jnp.zeros((Np, d), msum.dtype).at[:N].set(msum)
        invc = jnp.zeros((Np, 1), invc.dtype).at[:N].set(invc)
        h = jnp.zeros((Np, d), h.dtype).at[:N].set(h)
    out = pl.pallas_call(
        functools.partial(_gru_conv_fused_kernel, d=d),
        out_shape=jax.ShapeDtypeStruct((Np, d), jnp.float32),
        grid=(Np // tR,),
        in_specs=[pl.BlockSpec((tR, d), lambda i: (i, 0)),
                  pl.BlockSpec((tR, 1), lambda i: (i, 0)),
                  pl.BlockSpec((tR, d), lambda i: (i, 0)),
                  pl.BlockSpec((1, d), lambda i: (0, 0)),
                  pl.BlockSpec((d, 3 * d), lambda i: (0, 0)),
                  pl.BlockSpec((d, 3 * d), lambda i: (0, 0)),
                  pl.BlockSpec((1, 3 * d), lambda i: (0, 0)),
                  pl.BlockSpec((1, 3 * d), lambda i: (0, 0))],
        out_specs=pl.BlockSpec((tR, d), lambda i: (i, 0)),
        compiler_params=_CPARAMS,
    )(msum, invc, h, cbias, wx, wh, bx, bh)
    return out[:N]


def _s2s_lstm_kernel(q_ref, h_ref, c_ref, wq_ref, wh_ref, b_ref,
                     h_out_ref, c_out_ref, *, d):
    q = q_ref[...].astype(jnp.bfloat16)                                     # [tR, 2d]
    h = h_ref[...]
    g = (jnp.dot(q, wq_ref[...], preferred_element_type=jnp.float32)
         + jnp.dot(h.astype(jnp.bfloat16), wh_ref[...],
                   preferred_element_type=jnp.float32)
         + b_ref[...])                                                      # [tR, 4d]
    i = jax.nn.sigmoid(g[:, 0:d])
    f = jax.nn.sigmoid(g[:, d:2 * d])
    gg = jnp.tanh(g[:, 2 * d:3 * d])
    o = jax.nn.sigmoid(g[:, 3 * d:4 * d])
    c_new = f * c_ref[...] + i * gg
    h_out_ref[...] = o * jnp.tanh(c_new)
    c_out_ref[...] = c_new


def s2s_lstm_pallas(q_star, h, c, wq, wh, b, d):
    """Single LSTM step for Set2Set.  q_star:[B,2d], h:[B,d], c:[B,d]."""
    B = q_star.shape[0]
    tR = min(_ru(B, 8), _ROW_TILE)
    Bp = _ru(B, tR)
    if Bp != B:
        q_star = jnp.zeros((Bp, 2 * d), q_star.dtype).at[:B].set(q_star)
        h = jnp.zeros((Bp, d), h.dtype).at[:B].set(h)
        c = jnp.zeros((Bp, d), c.dtype).at[:B].set(c)
    h_new, c_new = pl.pallas_call(
        functools.partial(_s2s_lstm_kernel, d=d),
        out_shape=(jax.ShapeDtypeStruct((Bp, d), jnp.float32),
                   jax.ShapeDtypeStruct((Bp, d), jnp.float32)),
        grid=(Bp // tR,),
        in_specs=[pl.BlockSpec((tR, 2 * d), lambda i: (i, 0)),
                  pl.BlockSpec((tR, d), lambda i: (i, 0)),
                  pl.BlockSpec((tR, d), lambda i: (i, 0)),
                  pl.BlockSpec((2 * d, 4 * d), lambda i: (0, 0)),
                  pl.BlockSpec((d, 4 * d), lambda i: (0, 0)),
                  pl.BlockSpec((1, 4 * d), lambda i: (0, 0))],
        out_specs=[pl.BlockSpec((tR, d), lambda i: (i, 0)),
                   pl.BlockSpec((tR, d), lambda i: (i, 0))],
        compiler_params=_CPARAMS,
    )(q_star, h, c, wq, wh, b)
    return h_new[:B], c_new[:B]


# ----------------------------- parameters ----------------------------------

def _xavier(key, out_dim, in_dim):
    bound = math.sqrt(6.0 / (in_dim + out_dim))
    return jax.random.uniform(key, (out_dim, in_dim), jnp.float32, -bound, bound)


def init_params(key, num_features, dim):
    """Torch-layout parameters of Encoder(num_features, dim)."""
    ks = jax.random.split(key, 12)
    k_rnn = 1.0 / math.sqrt(dim)
    u = lambda kk, shape: jax.random.uniform(kk, shape, jnp.float32, -k_rnn, k_rnn)
    return {
        # Encoder.lin0
        'lin0_w': _xavier(ks[0], dim, num_features), 'lin0_b': jnp.zeros((dim,), jnp.float32),
        # NNConv edge-NN: Linear(3,128) -> ReLU -> Linear(128, dim*dim)
        'nn1_w': _xavier(ks[1], 128, 3), 'nn1_b': jnp.zeros((128,), jnp.float32),
        'nn2_w': _xavier(ks[2], dim * dim, 128), 'nn2_b': jnp.zeros((dim * dim,), jnp.float32),
        'conv_bias': jnp.zeros((dim,), jnp.float32),
        # GRU(dim, dim)  (torch gate order r|z|n)
        'gru_wih': u(ks[3], (3 * dim, dim)), 'gru_whh': u(ks[4], (3 * dim, dim)),
        'gru_bih': u(ks[5], (3 * dim,)), 'gru_bhh': u(ks[6], (3 * dim,)),
        # Set2Set LSTM(2*dim, dim)  (torch gate order i|f|g|o)
        's2s_wih': u(ks[7], (4 * dim, 2 * dim)), 's2s_whh': u(ks[8], (4 * dim, dim)),
        's2s_bih': u(ks[9], (4 * dim,)), 's2s_bhh': u(ks[10], (4 * dim,)),
    }


def prepare_params(params):
    """Pre-transpose / pre-pack all weights ONCE into kernel-ready layout.

    Dense weights: [K, N] bf16 (MXU operands), biases [1, N] f32.
    GRU: wx [d, 3d], wh [d, 3d] bf16; biases kept separate (r-gate needs r*(Whn h + bhn)).
    LSTM: wq [2d, 4d], wh [d, 4d] bf16; biases pre-summed (torch adds bih + bhh directly).
    """
    d = params['conv_bias'].shape[0]
    f32, bf16 = jnp.float32, jnp.bfloat16

    def dense(w, b):
        return w.T.astype(bf16), b.reshape(1, -1).astype(f32)

    lin0_w, lin0_b = dense(params['lin0_w'], params['lin0_b'])
    nn1_w, nn1_b = dense(params['nn1_w'], params['nn1_b'])
    nn2_w, nn2_b = dense(params['nn2_w'], params['nn2_b'])

    return {
        'lin0_w': lin0_w, 'lin0_b': lin0_b,
        'nn1_w': nn1_w, 'nn1_b': nn1_b,
        'nn2_w': nn2_w, 'nn2_b': nn2_b,
        'conv_bias': params['conv_bias'].reshape(1, d).astype(f32),
        'gru_wx': params['gru_wih'].T.astype(bf16),          # [d, 3d]
        'gru_wh': params['gru_whh'].T.astype(bf16),          # [d, 3d]
        'gru_bx': params['gru_bih'].reshape(1, 3 * d).astype(f32),
        'gru_bh': params['gru_bhh'].reshape(1, 3 * d).astype(f32),
        's2s_wq': params['s2s_wih'].T.astype(bf16),          # [2d, 4d]
        's2s_wh': params['s2s_whh'].T.astype(bf16),          # [d, 4d]
        's2s_b': (params['s2s_bih'] + params['s2s_bhh']).reshape(1, 4 * d).astype(f32),
    }


# ----------------------------- forward pass --------------------------------

def _encoder_forward(prep, x, edge_index, edge_attr, batch, num_graphs):
    dim = prep['conv_bias'].shape[1]
    N = x.shape[0]
    src, tgt = edge_index[0], edge_index[1]

    # lin0 + ReLU
    feat = linear_pallas(x, prep['lin0_w'], prep['lin0_b'], activation='relu')       # [N, dim]

    # Edge-NN is loop-invariant (depends only on edge_attr): hoisted out of the conv loop.
    e_h = linear_pallas(edge_attr, prep['nn1_w'], prep['nn1_b'], activation='relu')  # [E, 128]
    e_w = linear_pallas(e_h, prep['nn2_w'], prep['nn2_b'])                           # [E, dim*dim]
    w_edges = e_w.reshape(-1, dim, dim)                                              # [E, dim, dim]

    # In-degree counts are loop-invariant too (aggr='mean').
    counts = jax.ops.segment_sum(jnp.ones((src.shape[0],), jnp.float32), tgt,
                                 num_segments=N)
    inv_counts = (1.0 / jnp.maximum(counts, 1.0))[:, None]                            # [N, 1]

    h = feat
    for _ in range(3):
        # NNConv(dim, dim, edge-NN, aggr='mean', root_weight=False)
        msgs = edge_message_pallas(feat[src], w_edges)                                # [E, dim]
        # TODO(synk): for very large E, replace this JAX gather + segment_sum with a
        # sorted-by-target Pallas kernel using PrefetchScalarGridSpec (edge offsets in SMEM).
        seg_sum = jax.ops.segment_sum(msgs, tgt, num_segments=N)                      # [N, dim]
        # Fused: mean-scale + conv bias + ReLU + single GRU step (one Pallas kernel).
        h = gru_conv_fused_pallas(seg_sum, inv_counts, h, prep['conv_bias'],
                                  prep['gru_wx'], prep['gru_wh'],
                                  prep['gru_bx'], prep['gru_bh'], dim)
        feat = h
    feat_last = feat

    # --- Set2Set pooling (processing_steps=3) ---
    B = num_graphs
    q_star = jnp.zeros((B, 2 * dim), jnp.float32)
    hs = jnp.zeros((B, dim), jnp.float32)
    cs = jnp.zeros((B, dim), jnp.float32)
    for _ in range(3):
        hs, cs = s2s_lstm_pallas(q_star, hs, cs, prep['s2s_wq'], prep['s2s_wh'],
                                 prep['s2s_b'], dim)
        q = hs
        e = jnp.sum(feat * q[batch], axis=-1)                                         # [N]
        e_max = jax.ops.segment_max(e, batch, num_segments=B)
        a = jnp.exp(e - e_max[batch])
        a = a / jax.ops.segment_sum(a, batch, num_segments=B)[batch]                  # softmax per graph
        r = jax.ops.segment_sum(a[:, None] * feat, batch, num_segments=B)             # [B, dim]
        q_star = jnp.concatenate([q, r], axis=-1)                                     # [B, 2*dim]

    return q_star, feat_last


encoder_forward = jax.jit(_encoder_forward, static_argnames=("num_graphs",))


# --------------------------------- main -------------------------------------

if __name__ == "__main__":
    key = jax.random.PRNGKey(0)
    num_features, dim = 8, 32
    N_NODES, N_EDGES, N_GRAPHS = 16, 40, 2

    ks = jax.random.split(key, 6)
    x = jax.random.normal(ks[0], (N_NODES, num_features), jnp.float32)
    src = jax.random.randint(ks[1], (N_EDGES,), 0, N_NODES)
    tgt = jax.random.randint(ks[2], (N_EDGES,), 0, N_NODES)
    edge_index = jnp.stack([src, tgt]).astype(jnp.int32)                  # [2, E]
    edge_attr = jax.random.normal(ks[3], (N_EDGES, 3), jnp.float32)       # [E, 3]
    batch = jnp.concatenate([jnp.zeros(N_NODES // 2, jnp.int32),
                             jnp.ones(N_NODES - N_NODES // 2, jnp.int32)])

    params = init_params(ks[4], num_features, dim)
    prep = prepare_params(params)          # pack weights once, outside the jitted forward

    pooled, feat_last = encoder_forward(prep, x, edge_index, edge_attr, batch,
                                        num_graphs=N_GRAPHS)
    pooled = jax.block_until_ready(pooled)
    feat_last = jax.block_until_ready(feat_last)
    assert pooled.shape == (N_GRAPHS, 2 * dim)
    assert feat_last.shape == (N_NODES, dim)
    print("KERNEL_OK")
</pallas_src>

<mosaic_0001>
module attributes {stable_mosaic.version = 11 : i64} {
  func.func private @main(%arg0: i32) attributes {dimension_semantics = [#tpu.dimension_semantics<core_parallel>], iteration_bounds = array<i64: 2>, tpu.core_type = #tpu.core_type<sc_scalar_subcore>, window_params = []} {
    return
  }
}

module attributes {stable_mosaic.version = 11 : i64} {
  func.func private @main(%arg0: i32) attributes {dimension_semantics = [#tpu.dimension_semantics<core_parallel>], iteration_bounds = array<i64: 2>, tpu.core_type = #tpu.core_type<sc_scalar_subcore>, window_params = []} {
    return
  }
}

module attributes {stable_mosaic.version = 11 : i64} {
  func.func @_dense_kernel(%arg0: i32, %arg1: memref<40x128xf32, #tpu.memory_space<vmem>>, %arg2: memref<128x1024xbf16, #tpu.memory_space<vmem>>, %arg3: memref<1x1024xf32, #tpu.memory_space<vmem>>, %arg4: memref<40x1024xf32, #tpu.memory_space<vmem>>) attributes {dimension_semantics = [#tpu.dimension_semantics<parallel>], iteration_bounds = array<i64: 1>, scalar_prefetch = 0 : i64, scratch_operands = 0 : i64, tpu.core_type = #tpu.core_type<tc>, window_params = [{transform_indices = @transform_0, window_bounds = array<i64: 40, 128>}, {pipeline_mode = #tpu.pipeline_mode<synchronous>, transform_indices = @transform_1, window_bounds = array<i64: 128, 1024>}, {pipeline_mode = #tpu.pipeline_mode<synchronous>, transform_indices = @transform_2, window_bounds = array<i64: 1, 1024>}, {transform_indices = @transform_3, window_bounds = array<i64: 40, 1024>}]} {
    %c0 = arith.constant 0 : index
    %c0_0 = arith.constant 0 : index
    %0 = vector.load %arg1[%c0, %c0_0] : memref<40x128xf32, #tpu.memory_space<vmem>>, vector<40x128xf32>
    %1 = arith.truncf %0 : vector<40x128xf32> to vector<40x128xbf16>
    %c0_1 = arith.constant 0 : index
    %c0_2 = arith.constant 0 : index
    %2 = vector.load %arg2[%c0_1, %c0_2] : memref<128x1024xbf16, #tpu.memory_space<vmem>>, vector<128x1024xbf16>
    %cst = arith.constant dense<0.000000e+00> : vector<40x1024xf32>
    %3 = tpu.matmul %1, %2, %cst {dimension_numbers = #tpu.dot_dimension_numbers<[1], [0], [0], [1], [0, 0, 1, 1], [], []>} : vector<40x128xbf16>, vector<128x1024xbf16>, vector<40x1024xf32> -> vector<40x1024xf32>
    %c0_3 = arith.constant 0 : index
    %c0_4 = arith.constant 0 : index
    %4 = vector.load %arg3[%c0_3, %c0_4] : memref<1x1024xf32, #tpu.memory_space<vmem>>, vector<1x1024xf32>
    %5 = vector.broadcast %4 : vector<1x1024xf32> to vector<40x1024xf32>
    %6 = arith.addf %3, %5 : vector<40x1024xf32>
    %c0_5 = arith.constant 0 : index
    %c0_6 = arith.constant 0 : index
    %7 = vector.load %arg4[%c0_5, %c0_6] : memref<40x1024xf32, #tpu.memory_space<vmem>>, vector<40x1024xf32>
    tpu.vector_store %arg4[%c0_5, %c0_6], %6 {strides = array<i32>} : memref<40x1024xf32, #tpu.memory_space<vmem>>, vector<40x1024xf32>,
    return
  }
  func.func @transform_0(%arg0: i32) -> (i32, i32) {
    %c0_i32 = arith.constant 0 : i32
    %c0_i32_0 = arith.constant 0 : i32
    return %arg0, %c0_i32 : i32, i32
  }
  func.func @transform_1(%arg0: i32) -> (i32, i32) {
    %c0_i32 = arith.constant 0 : i32
    %c0_i32_0 = arith.constant 0 : i32
    %c0_i32_1 = arith.constant 0 : i32
    return %c0_i32, %c0_i32_0 : i32, i32
  }
  func.func @transform_2(%arg0: i32) -> (i32, i32) {
    %c0_i32 = arith.constant 0 : i32
    %c0_i32_0 = arith.constant 0 : i32
    %c0_i32_1 = arith.constant 0 : i32
    return %c0_i32, %c0_i32_0 : i32, i32
  }
  func.func @transform_3(%arg0: i32) -> (i32, i32) {
    %c0_i32 = arith.constant 0 : i32
    %c0_i32_0 = arith.constant 0 : i32
    return %arg0, %c0_i32 : i32, i32
  }
}

module attributes {stable_mosaic.version = 11 : i64} {
  func.func @_dense_kernel(%arg0: i32, %arg1: memref<40x3xf32, #tpu.memory_space<vmem>>, %arg2: memref<3x128xbf16, #tpu.memory_space<vmem>>, %arg3: memref<1x128xf32, #tpu.memory_space<vmem>>, %arg4: memref<40x128xf32, #tpu.memory_space<vmem>>) attributes {dimension_semantics = [#tpu.dimension_semantics<parallel>], iteration_bounds = array<i64: 1>, scalar_prefetch = 0 : i64, scratch_operands = 0 : i64, tpu.core_type = #tpu.core_type<tc>, window_params = [{transform_indices = @transform_0, window_bounds = array<i64: 40, 3>}, {pipeline_mode = #tpu.pipeline_mode<synchronous>, transform_indices = @transform_1, window_bounds = array<i64: 3, 128>}, {pipeline_mode = #tpu.pipeline_mode<synchronous>, transform_indices = @transform_2, window_bounds = array<i64: 1, 128>}, {transform_indices = @transform_3, window_bounds = array<i64: 40, 128>}]} {
    %c0 = arith.constant 0 : index
    %c0_0 = arith.constant 0 : index
    %0 = vector.load %arg1[%c0, %c0_0] : memref<40x3xf32, #tpu.memory_space<vmem>>, vector<40x3xf32>
    %1 = arith.truncf %0 : vector<40x3xf32> to vector<40x3xbf16>
    %c0_1 = arith.constant 0 : index
    %c0_2 = arith.constant 0 : index
    %2 = vector.load %arg2[%c0_1, %c0_2] : memref<3x128xbf16, #tpu.memory_space<vmem>>, vector<3x128xbf16>
    %cst = arith.constant dense<0.000000e+00> : vector<40x128xf32>
    %3 = tpu.matmul %1, %2, %cst {dimension_numbers = #tpu.dot_dimension_numbers<[1], [0], [0], [1], [0, 0, 1, 1], [], []>} : vector<40x3xbf16>, vector<3x128xbf16>, vector<40x128xf32> -> vector<40x128xf32>
    %c0_3 = arith.constant 0 : index
    %c0_4 = arith.constant 0 : index
    %4 = vector.load %arg3[%c0_3, %c0_4] : memref<1x128xf32, #tpu.memory_space<vmem>>, vector<1x128xf32>
    %5 = vector.broadcast %4 : vector<1x128xf32> to vector<40x128xf32>
    %6 = arith.addf %3, %5 : vector<40x128xf32>
    %cst_5 = arith.constant 0.000000e+00 : f32
    %7 = vector.broadcast %cst_5 : f32 to vector<40x128xf32>
    %8 = arith.maximumf %6, %7 : vector<40x128xf32>
    %c0_6 = arith.constant 0 : index
    %c0_7 = arith.constant 0 : index
    %9 = vector.load %arg4[%c0_6, %c0_7] : memref<40x128xf32, #tpu.memory_space<vmem>>, vector<40x128xf32>
    tpu.vector_store %arg4[%c0_6, %c0_7], %8 {strides = array<i32>} : memref<40x128xf32, #tpu.memory_space<vmem>>, vector<40x128xf32>,
    return
  }
  func.func @transform_0(%arg0: i32) -> (i32, i32) {
    %c0_i32 = arith.constant 0 : i32
    %c0_i32_0 = arith.constant 0 : i32
    return %arg0, %c0_i32 : i32, i32
  }
  func.func @transform_1(%arg0: i32) -> (i32, i32) {
    %c0_i32 = arith.constant 0 : i32
    %c0_i32_0 = arith.constant 0 : i32
    %c0_i32_1 = arith.constant 0 : i32
    return %c0_i32, %c0_i32_0 : i32, i32
  }
  func.func @transform_2(%arg0: i32) -> (i32, i32) {
    %c0_i32 = arith.constant 0 : i32
    %c0_i32_0 = arith.constant 0 : i32
    %c0_i32_1 = arith.constant 0 : i32
    return %c0_i32, %c0_i32_0 : i32, i32
  }
  func.func @transform_3(%arg0: i32) -> (i32, i32) {
    %c0_i32 = arith.constant 0 : i32
    %c0_i32_0 = arith.constant 0 : i32
    return %arg0, %c0_i32 : i32, i32
  }
}

module attributes {stable_mosaic.version = 11 : i64} {
  func.func @_dense_kernel(%arg0: i32, %arg1: memref<16x8xf32, #tpu.memory_space<vmem>>, %arg2: memref<8x32xbf16, #tpu.memory_space<vmem>>, %arg3: memref<1x32xf32, #tpu.memory_space<vmem>>, %arg4: memref<16x32xf32, #tpu.memory_space<vmem>>) attributes {dimension_semantics = [#tpu.dimension_semantics<parallel>], iteration_bounds = array<i64: 1>, scalar_prefetch = 0 : i64, scratch_operands = 0 : i64, tpu.core_type = #tpu.core_type<tc>, window_params = [{transform_indices = @transform_0, window_bounds = array<i64: 16, 8>}, {pipeline_mode = #tpu.pipeline_mode<synchronous>, transform_indices = @transform_1, window_bounds = array<i64: 8, 32>}, {pipeline_mode = #tpu.pipeline_mode<synchronous>, transform_indices = @transform_2, window_bounds = array<i64: 1, 32>}, {transform_indices = @transform_3, window_bounds = array<i64: 16, 32>}]} {
    %c0 = arith.constant 0 : index
    %c0_0 = arith.constant 0 : index
    %0 = vector.load %arg1[%c0, %c0_0] : memref<16x8xf32, #tpu.memory_space<vmem>>, vector<16x8xf32>
    %1 = arith.truncf %0 : vector<16x8xf32> to vector<16x8xbf16>
    %c0_1 = arith.constant 0 : index
    %c0_2 = arith.constant 0 : index
    %2 = vector.load %arg2[%c0_1, %c0_2] : memref<8x32xbf16, #tpu.memory_space<vmem>>, vector<8x32xbf16>
    %cst = arith.constant dense<0.000000e+00> : vector<16x32xf32>
    %3 = tpu.matmul %1, %2, %cst {dimension_numbers = #tpu.dot_dimension_numbers<[1], [0], [0], [1], [0, 0, 1, 1], [], []>} : vector<16x8xbf16>, vector<8x32xbf16>, vector<16x32xf32> -> vector<16x32xf32>
    %c0_3 = arith.constant 0 : index
    %c0_4 = arith.constant 0 : index
    %4 = vector.load %arg3[%c0_3, %c0_4] : memref<1x32xf32, #tpu.memory_space<vmem>>, vector<1x32xf32>
    %5 = vector.broadcast %4 : vector<1x32xf32> to vector<16x32xf32>
    %6 = arith.addf %3, %5 : vector<16x32xf32>
    %cst_5 = arith.constant 0.000000e+00 : f32
    %7 = vector.broadcast %cst_5 : f32 to vector<16x32xf32>
    %8 = arith.maximumf %6, %7 : vector<16x32xf32>
    %c0_6 = arith.constant 0 : index
    %c0_7 = arith.constant 0 : index
    %9 = vector.load %arg4[%c0_6, %c0_7] : memref<16x32xf32, #tpu.memory_space<vmem>>, vector<16x32xf32>
    tpu.vector_store %arg4[%c0_6, %c0_7], %8 {strides = array<i32>} : memref<16x32xf32, #tpu.memory_space<vmem>>, vector<16x32xf32>,
    return
  }
  func.func @transform_0(%arg0: i32) -> (i32, i32) {
    %c0_i32 = arith.constant 0 : i32
    %c0_i32_0 = arith.constant 0 : i32
    return %arg0, %c0_i32 : i32, i32
  }
  func.func @transform_1(%arg0: i32) -> (i32, i32) {
    %c0_i32 = arith.constant 0 : i32
    %c0_i32_0 = arith.constant 0 : i32
    %c0_i32_1 = arith.constant 0 : i32
    return %c0_i32, %c0_i32_0 : i32, i32
  }
  func.func @transform_2(%arg0: i32) -> (i32, i32) {
    %c0_i32 = arith.constant 0 : i32
    %c0_i32_0 = arith.constant 0 : i32
    %c0_i32_1 = arith.constant 0 : i32
    return %c0_i32, %c0_i32_0 : i32, i32
  }
  func.func @transform_3(%arg0: i32) -> (i32, i32) {
    %c0_i32 = arith.constant 0 : i32
    %c0_i32_0 = arith.constant 0 : i32
    return %arg0, %c0_i32 : i32, i32
  }
}

module attributes {stable_mosaic.version = 11 : i64} {
  func.func @_edge_message_kernel(%arg0: i32, %arg1: memref<40x32xf32, #tpu.memory_space<vmem>>, %arg2: memref<40x32x32xf32, #tpu.memory_space<vmem>>, %arg3: memref<40x32xf32, #tpu.memory_space<vmem>>) attributes {dimension_semantics = [#tpu.dimension_semantics<parallel>], iteration_bounds = array<i64: 1>, scalar_prefetch = 0 : i64, scratch_operands = 0 : i64, tpu.core_type = #tpu.core_type<tc>, window_params = [{transform_indices = @transform_0, window_bounds = array<i64: 40, 32>}, {transform_indices = @transform_1, window_bounds = array<i64: 40, 32, 32>}, {transform_indices = @transform_2, window_bounds = array<i64: 40, 32>}]} {
    %c0 = arith.constant 0 : index
    %c0_0 = arith.constant 0 : index
    %0 = vector.load %arg1[%c0, %c0_0] : memref<40x32xf32, #tpu.memory_space<vmem>>, vector<40x32xf32>
    %c0_1 = arith.constant 0 : index
    %c0_2 = arith.constant 0 : index
    %c0_3 = arith.constant 0 : index
    %1 = vector.load %arg2[%c0_1, %c0_2, %c0_3] : memref<40x32x32xf32, #tpu.memory_space<vmem>>, vector<40x32x32xf32>
    %2 = vector.shape_cast %0 : vector<40x32xf32> to vector<40x32x1xf32>
    %3 = vector.broadcast %2 : vector<40x32x1xf32> to vector<40x32x32xf32>
    %4 = arith.mulf %3, %1 : vector<40x32x32xf32>
    %cst = arith.constant dense<0.000000e+00> : vector<40x32xf32>
    %5 = vector.multi_reduction <add>, %4, %cst [1] : vector<40x32x32xf32> to vector<40x32xf32>
    %c0_4 = arith.constant 0 : index
    %c0_5 = arith.constant 0 : index
    %6 = vector.load %arg3[%c0_4, %c0_5] : memref<40x32xf32, #tpu.memory_space<vmem>>, vector<40x32xf32>
    tpu.vector_store %arg3[%c0_4, %c0_5], %5 {strides = array<i32>} : memref<40x32xf32, #tpu.memory_space<vmem>>, vector<40x32xf32>,
    return
  }
  func.func @transform_0(%arg0: i32) -> (i32, i32) {
    %c0_i32 = arith.constant 0 : i32
    %c0_i32_0 = arith.constant 0 : i32
    return %arg0, %c0_i32 : i32, i32
  }
  func.func @transform_1(%arg0: i32) -> (i32, i32, i32) {
    %c0_i32 = arith.constant 0 : i32
    %c0_i32_0 = arith.constant 0 : i32
    %c0_i32_1 = arith.constant 0 : i32
    return %arg0, %c0_i32, %c0_i32_0 : i32, i32, i32
  }
  func.func @transform_2(%arg0: i32) -> (i32, i32) {
    %c0_i32 = arith.constant 0 : i32
    %c0_i32_0 = arith.constant 0 : i32
    return %arg0, %c0_i32 : i32, i32
  }
}

module attributes {stable_mosaic.version = 11 : i64} {
  func.func @_s2s_lstm_kernel(%arg0: i32, %arg1: memref<8x64xf32, #tpu.memory_space<vmem>>, %arg2: memref<8x32xf32, #tpu.memory_space<vmem>>, %arg3: memref<8x32xf32, #tpu.memory_space<vmem>>, %arg4: memref<64x128xbf16, #tpu.memory_space<vmem>>, %arg5: memref<32x128xbf16, #tpu.memory_space<vmem>>, %arg6: memref<1x128xf32, #tpu.memory_space<vmem>>, %arg7: memref<8x32xf32, #tpu.memory_space<vmem>>, %arg8: memref<8x32xf32, #tpu.memory_space<vmem>>) attributes {dimension_semantics = [#tpu.dimension_semantics<parallel>], iteration_bounds = array<i64: 1>, scalar_prefetch = 0 : i64, scratch_operands = 0 : i64, tpu.core_type = #tpu.core_type<tc>, window_params = [{transform_indices = @transform_0, window_bounds = array<i64: 8, 64>}, {transform_indices = @transform_1, window_bounds = array<i64: 8, 32>}, {transform_indices = @transform_2, window_bounds = array<i64: 8, 32>}, {pipeline_mode = #tpu.pipeline_mode<synchronous>, transform_indices = @transform_3, window_bounds = array<i64: 64, 128>}, {pipeline_mode = #tpu.pipeline_mode<synchronous>, transform_indices = @transform_4, window_bounds = array<i64: 32, 128>}, {pipeline_mode = #tpu.pipeline_mode<synchronous>, transform_indices = @transform_5, window_bounds = array<i64: 1, 128>}, {transform_indices = @transform_6, window_bounds = array<i64: 8, 32>}, {transform_indices = @transform_7, window_bounds = array<i64: 8, 32>}]} {
    %c0 = arith.constant 0 : index
    %c0_0 = arith.constant 0 : index
    %0 = vector.load %arg1[%c0, %c0_0] : memref<8x64xf32, #tpu.memory_space<vmem>>, vector<8x64xf32>
    %1 = arith.truncf %0 : vector<8x64xf32> to vector<8x64xbf16>
    %c0_1 = arith.constant 0 : index
    %c0_2 = arith.constant 0 : index
    %2 = vector.load %arg2[%c0_1, %c0_2] : memref<8x32xf32, #tpu.memory_space<vmem>>, vector<8x32xf32>
    %c0_3 = arith.constant 0 : index
    %c0_4 = arith.constant 0 : index
    %3 = vector.load %arg4[%c0_3, %c0_4] : memref<64x128xbf16, #tpu.memory_space<vmem>>, vector<64x128xbf16>
    %cst = arith.constant dense<0.000000e+00> : vector<8x128xf32>
    %4 = tpu.matmul %1, %3, %cst {dimension_numbers = #tpu.dot_dimension_numbers<[1], [0], [0], [1], [0, 0, 1, 1], [], []>} : vector<8x64xbf16>, vector<64x128xbf16>, vector<8x128xf32> -> vector<8x128xf32>
    %5 = arith.truncf %2 : vector<8x32xf32> to vector<8x32xbf16>
    %c0_5 = arith.constant 0 : index
    %c0_6 = arith.constant 0 : index
    %6 = vector.load %arg5[%c0_5, %c0_6] : memref<32x128xbf16, #tpu.memory_space<vmem>>, vector<32x128xbf16>
    %cst_7 = arith.constant dense<0.000000e+00> : vector<8x128xf32>
    %7 = tpu.matmul %5, %6, %cst_7 {dimension_numbers = #tpu.dot_dimension_numbers<[1], [0], [0], [1], [0, 0, 1, 1], [], []>} : vector<8x32xbf16>, vector<32x128xbf16>, vector<8x128xf32> -> vector<8x128xf32>
    %8 = arith.addf %4, %7 : vector<8x128xf32>
    %c0_8 = arith.constant 0 : index
    %c0_9 = arith.constant 0 : index
    %9 = vector.load %arg6[%c0_8, %c0_9] : memref<1x128xf32, #tpu.memory_space<vmem>>, vector<1x128xf32>
    %10 = vector.broadcast %9 : vector<1x128xf32> to vector<8x128xf32>
    %11 = arith.addf %8, %10 : vector<8x128xf32>
    %12 = vector.extract_strided_slice %11 {offsets = [0, 0], sizes = [8, 32], strides = [1, 1]} : vector<8x128xf32> to vector<8x32xf32>
    %13 = arith.negf %12 : vector<8x32xf32>
    %14 = math.exp %13 : vector<8x32xf32>
    %cst_10 = arith.constant 1.000000e+00 : f32
    %15 = vector.broadcast %cst_10 : f32 to vector<8x32xf32>
    %16 = arith.addf %15, %14 : vector<8x32xf32>
    %17 = arith.divf %15, %16 : vector<8x32xf32>
    %18 = vector.extract_strided_slice %11 {offsets = [0, 32], sizes = [8, 32], strides = [1, 1]} : vector<8x128xf32> to vector<8x32xf32>
    %19 = arith.negf %18 : vector<8x32xf32>
    %20 = math.exp %19 : vector<8x32xf32>
    %cst_11 = arith.constant 1.000000e+00 : f32
    %21 = vector.broadcast %cst_11 : f32 to vector<8x32xf32>
    %22 = arith.addf %21, %20 : vector<8x32xf32>
    %23 = arith.divf %21, %22 : vector<8x32xf32>
    %24 = vector.extract_strided_slice %11 {offsets = [0, 64], sizes = [8, 32], strides = [1, 1]} : vector<8x128xf32> to vector<8x32xf32>
    %25 = math.tanh %24 : vector<8x32xf32>
    %26 = vector.extract_strided_slice %11 {offsets = [0, 96], sizes = [8, 32], strides = [1, 1]} : vector<8x128xf32> to vector<8x32xf32>
    %27 = arith.negf %26 : vector<8x32xf32>
    %28 = math.exp %27 : vector<8x32xf32>
    %cst_12 = arith.constant 1.000000e+00 : f32
    %29 = vector.broadcast %cst_12 : f32 to vector<8x32xf32>
    %30 = arith.addf %29, %28 : vector<8x32xf32>
    %31 = arith.divf %29, %30 : vector<8x32xf32>
    %c0_13 = arith.constant 0 : index
    %c0_14 = arith.constant 0 : index
    %32 = vector.load %arg3[%c0_13, %c0_14] : memref<8x32xf32, #tpu.memory_space<vmem>>, vector<8x32xf32>
    %33 = arith.mulf %23, %32 : vector<8x32xf32>
    %34 = arith.mulf %17, %25 : vector<8x32xf32>
    %35 = arith.addf %33, %34 : vector<8x32xf32>
    %36 = math.tanh %35 : vector<8x32xf32>
    %37 = arith.mulf %31, %36 : vector<8x32xf32>
    %c0_15 = arith.constant 0 : index
    %c0_16 = arith.constant 0 : index
    %38 = vector.load %arg7[%c0_15, %c0_16] : memref<8x32xf32, #tpu.memory_space<vmem>>, vector<8x32xf32>
    tpu.vector_store %arg7[%c0_15, %c0_16], %37 {strides = array<i32>} : memref<8x32xf32, #tpu.memory_space<vmem>>, vector<8x32xf32>,
    %c0_17 = arith.constant 0 : index
    %c0_18 = arith.constant 0 : index
    %39 = vector.load %arg8[%c0_17, %c0_18] : memref<8x32xf32, #tpu.memory_space<vmem>>, vector<8x32xf32>
    tpu.vector_store %arg8[%c0_17, %c0_18], %35 {strides = array<i32>} : memref<8x32xf32, #tpu.memory_space<vmem>>, vector<8x32xf32>,
    return
  }
  func.func @transform_0(%arg0: i32) -> (i32, i32) {
    %c0_i32 = arith.constant 0 : i32
    %c0_i32_0 = arith.constant 0 : i32
    return %arg0, %c0_i32 : i32, i32
  }
  func.func @transform_1(%arg0: i32) -> (i32, i32) {
    %c0_i32 = arith.constant 0 : i32
    %c0_i32_0 = arith.constant 0 : i32
    return %arg0, %c0_i32 : i32, i32
  }
  func.func @transform_2(%arg0: i32) -> (i32, i32) {
    %c0_i32 = arith.constant 0 : i32
    %c0_i32_0 = arith.constant 0 : i32
    return %arg0, %c0_i32 : i32, i32
  }
  func.func @transform_3(%arg0: i32) -> (i32, i32) {
    %c0_i32 = arith.constant 0 : i32
    %c0_i32_0 = arith.constant 0 : i32
    %c0_i32_1 = arith.constant 0 : i32
    return %c0_i32, %c0_i32_0 : i32, i32
  }
  func.func @transform_4(%arg0: i32) -> (i32, i32) {
    %c0_i32 = arith.constant 0 : i32
    %c0_i32_0 = arith.constant 0 : i32
    %c0_i32_1 = arith.constant 0 : i32
    return %c0_i32, %c0_i32_0 : i32, i32
  }
  func.func @transform_5(%arg0: i32) -> (i32, i32) {
    %c0_i32 = arith.constant 0 : i32
    %c0_i32_0 = arith.constant 0 : i32
    %c0_i32_1 = arith.constant 0 : i32
    return %c0_i32, %c0_i32_0 : i32, i32
  }
  func.func @transform_6(%arg0: i32) -> (i32, i32) {
    %c0_i32 = arith.constant 0 : i32
    %c0_i32_0 = arith.constant 0 : i32
    return %arg0, %c0_i32 : i32, i32
  }
  func.func @transform_7(%arg0: i32) -> (i32, i32) {
    %c0_i32 = arith.constant 0 : i32
    %c0_i32_0 = arith.constant 0 : i32
    return %arg0, %c0_i32 : i32, i32
  }
}

module attributes {stable_mosaic.version = 11 : i64} {
  func.func @_gru_conv_fused_kernel(%arg0: i32, %arg1: memref<16x32xf32, #tpu.memory_space<vmem>>, %arg2: memref<16x1xf32, #tpu.memory_space<vmem>>, %arg3: memref<16x32xf32, #tpu.memory_space<vmem>>, %arg4: memref<1x32xf32, #tpu.memory_space<vmem>>, %arg5: memref<32x96xbf16, #tpu.memory_space<vmem>>, %arg6: memref<32x96xbf16, #tpu.memory_space<vmem>>, %arg7: memref<1x96xf32, #tpu.memory_space<vmem>>, %arg8: memref<1x96xf32, #tpu.memory_space<vmem>>, %arg9: memref<16x32xf32, #tpu.memory_space<vmem>>) attributes {dimension_semantics = [#tpu.dimension_semantics<parallel>], iteration_bounds = array<i64: 1>, scalar_prefetch = 0 : i64, scratch_operands = 0 : i64, tpu.core_type = #tpu.core_type<tc>, window_params = [{transform_indices = @transform_0, window_bounds = array<i64: 16, 32>}, {transform_indices = @transform_1, window_bounds = array<i64: 16, 1>}, {transform_indices = @transform_2, window_bounds = array<i64: 16, 32>}, {pipeline_mode = #tpu.pipeline_mode<synchronous>, transform_indices = @transform_3, window_bounds = array<i64: 1, 32>}, {pipeline_mode = #tpu.pipeline_mode<synchronous>, transform_indices = @transform_4, window_bounds = array<i64: 32, 96>}, {pipeline_mode = #tpu.pipeline_mode<synchronous>, transform_indices = @transform_5, window_bounds = array<i64: 32, 96>}, {pipeline_mode = #tpu.pipeline_mode<synchronous>, transform_indices = @transform_6, window_bounds = array<i64: 1, 96>}, {pipeline_mode = #tpu.pipeline_mode<synchronous>, transform_indices = @transform_7, window_bounds = array<i64: 1, 96>}, {transform_indices = @transform_8, window_bounds = array<i64: 16, 32>}]} {
    %c0 = arith.constant 0 : index
    %c0_0 = arith.constant 0 : index
    %0 = vector.load %arg1[%c0, %c0_0] : memref<16x32xf32, #tpu.memory_space<vmem>>, vector<16x32xf32>
    %c0_1 = arith.constant 0 : index
    %c0_2 = arith.constant 0 : index
    %1 = vector.load %arg2[%c0_1, %c0_2] : memref<16x1xf32, #tpu.memory_space<vmem>>, vector<16x1xf32>
    %2 = vector.broadcast %1 : vector<16x1xf32> to vector<16x32xf32>
    %3 = arith.mulf %0, %2 : vector<16x32xf32>
    %c0_3 = arith.constant 0 : index
    %c0_4 = arith.constant 0 : index
    %4 = vector.load %arg4[%c0_3, %c0_4] : memref<1x32xf32, #tpu.memory_space<vmem>>, vector<1x32xf32>
    %5 = vector.broadcast %4 : vector<1x32xf32> to vector<16x32xf32>
    %6 = arith.addf %3, %5 : vector<16x32xf32>
    %cst = arith.constant 0.000000e+00 : f32
    %7 = vector.broadcast %cst : f32 to vector<16x32xf32>
    %8 = arith.maximumf %6, %7 : vector<16x32xf32>
    %c0_5 = arith.constant 0 : index
    %c0_6 = arith.constant 0 : index
    %9 = vector.load %arg3[%c0_5, %c0_6] : memref<16x32xf32, #tpu.memory_space<vmem>>, vector<16x32xf32>
    %10 = arith.truncf %8 : vector<16x32xf32> to vector<16x32xbf16>
    %c0_7 = arith.constant 0 : index
    %c0_8 = arith.constant 0 : index
    %11 = vector.load %arg5[%c0_7, %c0_8] : memref<32x96xbf16, #tpu.memory_space<vmem>>, vector<32x96xbf16>
    %cst_9 = arith.constant dense<0.000000e+00> : vector<16x96xf32>
    %12 = tpu.matmul %10, %11, %cst_9 {dimension_numbers = #tpu.dot_dimension_numbers<[1], [0], [0], [1], [0, 0, 1, 1], [], []>} : vector<16x32xbf16>, vector<32x96xbf16>, vector<16x96xf32> -> vector<16x96xf32>
    %c0_10 = arith.constant 0 : index
    %c0_11 = arith.constant 0 : index
    %13 = vector.load %arg7[%c0_10, %c0_11] : memref<1x96xf32, #tpu.memory_space<vmem>>, vector<1x96xf32>
    %14 = vector.broadcast %13 : vector<1x96xf32> to vector<16x96xf32>
    %15 = arith.addf %12, %14 : vector<16x96xf32>
    %16 = arith.truncf %9 : vector<16x32xf32> to vector<16x32xbf16>
    %c0_12 = arith.constant 0 : index
    %c0_13 = arith.constant 0 : index
    %17 = vector.load %arg6[%c0_12, %c0_13] : memref<32x96xbf16, #tpu.memory_space<vmem>>, vector<32x96xbf16>
    %cst_14 = arith.constant dense<0.000000e+00> : vector<16x96xf32>
    %18 = tpu.matmul %16, %17, %cst_14 {dimension_numbers = #tpu.dot_dimension_numbers<[1], [0], [0], [1], [0, 0, 1, 1], [], []>} : vector<16x32xbf16>, vector<32x96xbf16>, vector<16x96xf32> -> vector<16x96xf32>
    %c0_15 = arith.constant 0 : index
    %c0_16 = arith.constant 0 : index
    %19 = vector.load %arg8[%c0_15, %c0_16] : memref<1x96xf32, #tpu.memory_space<vmem>>, vector<1x96xf32>
    %20 = vector.broadcast %19 : vector<1x96xf32> to vector<16x96xf32>
    %21 = arith.addf %18, %20 : vector<16x96xf32>
    %22 = vector.extract_strided_slice %15 {offsets = [0, 0], sizes = [16, 32], strides = [1, 1]} : vector<16x96xf32> to vector<16x32xf32>
    %23 = vector.extract_strided_slice %21 {offsets = [0, 0], sizes = [16, 32], strides = [1, 1]} : vector<16x96xf32> to vector<16x32xf32>
    %24 = arith.addf %22, %23 : vector<16x32xf32>
    %25 = arith.negf %24 : vector<16x32xf32>
    %26 = math.exp %25 : vector<16x32xf32>
    %cst_17 = arith.constant 1.000000e+00 : f32
    %27 = vector.broadcast %cst_17 : f32 to vector<16x32xf32>
    %28 = arith.addf %27, %26 : vector<16x32xf32>
    %29 = arith.divf %27, %28 : vector<16x32xf32>
    %30 = vector.extract_strided_slice %15 {offsets = [0, 32], sizes = [16, 32], strides = [1, 1]} : vector<16x96xf32> to vector<16x32xf32>
    %31 = vector.extract_strided_slice %21 {offsets = [0, 32], sizes = [16, 32], strides = [1, 1]} : vector<16x96xf32> to vector<16x32xf32>
    %32 = arith.addf %30, %31 : vector<16x32xf32>
    %33 = arith.negf %32 : vector<16x32xf32>
    %34 = math.exp %33 : vector<16x32xf32>
    %cst_18 = arith.constant 1.000000e+00 : f32
    %35 = vector.broadcast %cst_18 : f32 to vector<16x32xf32>
    %36 = arith.addf %35, %34 : vector<16x32xf32>
    %37 = arith.divf %35, %36 : vector<16x32xf32>
    %38 = vector.extract_strided_slice %15 {offsets = [0, 64], sizes = [16, 32], strides = [1, 1]} : vector<16x96xf32> to vector<16x32xf32>
    %39 = vector.extract_strided_slice %21 {offsets = [0, 64], sizes = [16, 32], strides = [1, 1]} : vector<16x96xf32> to vector<16x32xf32>
    %40 = arith.mulf %29, %39 : vector<16x32xf32>
    %41 = arith.addf %38, %40 : vector<16x32xf32>
    %42 = math.tanh %41 : vector<16x32xf32>
    %cst_19 = arith.constant 1.000000e+00 : f32
    %43 = vector.broadcast %cst_19 : f32 to vector<16x32xf32>
    %44 = arith.subf %43, %37 : vector<16x32xf32>
    %45 = arith.mulf %44, %42 : vector<16x32xf32>
    %46 = arith.mulf %37, %9 : vector<16x32xf32>
    %47 = arith.addf %45, %46 : vector<16x32xf32>
    %c0_20 = arith.constant 0 : index
    %c0_21 = arith.constant 0 : index
    %48 = vector.load %arg9[%c0_20, %c0_21] : memref<16x32xf32, #tpu.memory_space<vmem>>, vector<16x32xf32>
    tpu.vector_store %arg9[%c0_20, %c0_21], %47 {strides = array<i32>} : memref<16x32xf32, #tpu.memory_space<vmem>>, vector<16x32xf32>,
    return
  }
  func.func @transform_0(%arg0: i32) -> (i32, i32) {
    %c0_i32 = arith.constant 0 : i32
    %c0_i32_0 = arith.constant 0 : i32
    return %arg0, %c0_i32 : i32, i32
  }
  func.func @transform_1(%arg0: i32) -> (i32, i32) {
    %c0_i32 = arith.constant 0 : i32
    %c0_i32_0 = arith.constant 0 : i32
    return %arg0, %c0_i32 : i32, i32
  }
  func.func @transform_2(%arg0: i32) -> (i32, i32) {
    %c0_i32 = arith.constant 0 : i32
    %c0_i32_0 = arith.constant 0 : i32
    return %arg0, %c0_i32 : i32, i32
  }
  func.func @transform_3(%arg0: i32) -> (i32, i32) {
    %c0_i32 = arith.constant 0 : i32
    %c0_i32_0 = arith.constant 0 : i32
    %c0_i32_1 = arith.constant 0 : i32
    return %c0_i32, %c0_i32_0 : i32, i32
  }
  func.func @transform_4(%arg0: i32) -> (i32, i32) {
    %c0_i32 = arith.constant 0 : i32
    %c0_i32_0 = arith.constant 0 : i32
    %c0_i32_1 = arith.constant 0 : i32
    return %c0_i32, %c0_i32_0 : i32, i32
  }
  func.func @transform_5(%arg0: i32) -> (i32, i32) {
    %c0_i32 = arith.constant 0 : i32
    %c0_i32_0 = arith.constant 0 : i32
    %c0_i32_1 = arith.constant 0 : i32
    return %c0_i32, %c0_i32_0 : i32, i32
  }
  func.func @transform_6(%arg0: i32) -> (i32, i32) {
    %c0_i32 = arith.constant 0 : i32
    %c0_i32_0 = arith.constant 0 : i32
    %c0_i32_1 = arith.constant 0 : i32
    return %c0_i32, %c0_i32_0 : i32, i32
  }
  func.func @transform_7(%arg0: i32) -> (i32, i32) {
    %c0_i32 = arith.constant 0 : i32
    %c0_i32_0 = arith.constant 0 : i32
    %c0_i32_1 = arith.constant 0 : i32
    return %c0_i32, %c0_i32_0 : i32, i32
  }
  func.func @transform_8(%arg0: i32) -> (i32, i32) {
    %c0_i32 = arith.constant 0 : i32
    %c0_i32_0 = arith.constant 0 : i32
    return %arg0, %c0_i32 : i32, i32
  }
}

module attributes {stable_mosaic.version = 11 : i64} {
  func.func @_s2s_lstm_kernel(%arg0: i32, %arg1: memref<8x64xf32, #tpu.memory_space<vmem>>, %arg2: memref<8x32xf32, #tpu.memory_space<vmem>>, %arg3: memref<8x32xf32, #tpu.memory_space<vmem>>, %arg4: memref<64x128xbf16, #tpu.memory_space<vmem>>, %arg5: memref<32x128xbf16, #tpu.memory_space<vmem>>, %arg6: memref<1x128xf32, #tpu.memory_space<vmem>>, %arg7: memref<8x32xf32, #tpu.memory_space<vmem>>, %arg8: memref<8x32xf32, #tpu.memory_space<vmem>>) attributes {dimension_semantics = [#tpu.dimension_semantics<parallel>], iteration_bounds = array<i64: 1>, scalar_prefetch = 0 : i64, scratch_operands = 0 : i64, tpu.core_type = #tpu.core_type<tc>, window_params = [{transform_indices = @transform_0, window_bounds = array<i64: 8, 64>}, {transform_indices = @transform_1, window_bounds = array<i64: 8, 32>}, {transform_indices = @transform_2, window_bounds = array<i64: 8, 32>}, {pipeline_mode = #tpu.pipeline_mode<synchronous>, transform_indices = @transform_3, window_bounds = array<i64: 64, 128>}, {pipeline_mode = #tpu.pipeline_mode<synchronous>, transform_indices = @transform_4, window_bounds = array<i64: 32, 128>}, {pipeline_mode = #tpu.pipeline_mode<synchronous>, transform_indices = @transform_5, window_bounds = array<i64: 1, 128>}, {transform_indices = @transform_6, window_bounds = array<i64: 8, 32>}, {transform_indices = @transform_7, window_bounds = array<i64: 8, 32>}]} {
    %c0 = arith.constant 0 : index
    %c0_0 = arith.constant 0 : index
    %0 = vector.load %arg1[%c0, %c0_0] : memref<8x64xf32, #tpu.memory_space<vmem>>, vector<8x64xf32>
    %1 = arith.truncf %0 : vector<8x64xf32> to vector<8x64xbf16>
    %c0_1 = arith.constant 0 : index
    %c0_2 = arith.constant 0 : index
    %2 = vector.load %arg2[%c0_1, %c0_2] : memref<8x32xf32, #tpu.memory_space<vmem>>, vector<8x32xf32>
    %c0_3 = arith.constant 0 : index
    %c0_4 = arith.constant 0 : index
    %3 = vector.load %arg4[%c0_3, %c0_4] : memref<64x128xbf16, #tpu.memory_space<vmem>>, vector<64x128xbf16>
    %cst = arith.constant dense<0.000000e+00> : vector<8x128xf32>
    %4 = tpu.matmul %1, %3, %cst {dimension_numbers = #tpu.dot_dimension_numbers<[1], [0], [0], [1], [0, 0, 1, 1], [], []>} : vector<8x64xbf16>, vector<64x128xbf16>, vector<8x128xf32> -> vector<8x128xf32>
    %5 = arith.truncf %2 : vector<8x32xf32> to vector<8x32xbf16>
    %c0_5 = arith.constant 0 : index
    %c0_6 = arith.constant 0 : index
    %6 = vector.load %arg5[%c0_5, %c0_6] : memref<32x128xbf16, #tpu.memory_space<vmem>>, vector<32x128xbf16>
    %cst_7 = arith.constant dense<0.000000e+00> : vector<8x128xf32>
    %7 = tpu.matmul %5, %6, %cst_7 {dimension_numbers = #tpu.dot_dimension_numbers<[1], [0], [0], [1], [0, 0, 1, 1], [], []>} : vector<8x32xbf16>, vector<32x128xbf16>, vector<8x128xf32> -> vector<8x128xf32>
    %8 = arith.addf %4, %7 : vector<8x128xf32>
    %c0_8 = arith.constant 0 : index
    %c0_9 = arith.constant 0 : index
    %9 = vector.load %arg6[%c0_8, %c0_9] : memref<1x128xf32, #tpu.memory_space<vmem>>, vector<1x128xf32>
    %10 = vector.broadcast %9 : vector<1x128xf32> to vector<8x128xf32>
    %11 = arith.addf %8, %10 : vector<8x128xf32>
    %12 = vector.extract_strided_slice %11 {offsets = [0, 0], sizes = [8, 32], strides = [1, 1]} : vector<8x128xf32> to vector<8x32xf32>
    %13 = arith.negf %12 : vector<8x32xf32>
    %14 = math.exp %13 : vector<8x32xf32>
    %cst_10 = arith.constant 1.000000e+00 : f32
    %15 = vector.broadcast %cst_10 : f32 to vector<8x32xf32>
    %16 = arith.addf %15, %14 : vector<8x32xf32>
    %17 = arith.divf %15, %16 : vector<8x32xf32>
    %18 = vector.extract_strided_slice %11 {offsets = [0, 32], sizes = [8, 32], strides = [1, 1]} : vector<8x128xf32> to vector<8x32xf32>
    %19 = arith.negf %18 : vector<8x32xf32>
    %20 = math.exp %19 : vector<8x32xf32>
    %cst_11 = arith.constant 1.000000e+00 : f32
    %21 = vector.broadcast %cst_11 : f32 to vector<8x32xf32>
    %22 = arith.addf %21, %20 : vector<8x32xf32>
    %23 = arith.divf %21, %22 : vector<8x32xf32>
    %24 = vector.extract_strided_slice %11 {offsets = [0, 64], sizes = [8, 32], strides = [1, 1]} : vector<8x128xf32> to vector<8x32xf32>
    %25 = math.tanh %24 : vector<8x32xf32>
    %26 = vector.extract_strided_slice %11 {offsets = [0, 96], sizes = [8, 32], strides = [1, 1]} : vector<8x128xf32> to vector<8x32xf32>
    %27 = arith.negf %26 : vector<8x32xf32>
    %28 = math.exp %27 : vector<8x32xf32>
    %cst_12 = arith.constant 1.000000e+00 : f32
    %29 = vector.broadcast %cst_12 : f32 to vector<8x32xf32>
    %30 = arith.addf %29, %28 : vector<8x32xf32>
    %31 = arith.divf %29, %30 : vector<8x32xf32>
    %c0_13 = arith.constant 0 : index
    %c0_14 = arith.constant 0 : index
    %32 = vector.load %arg3[%c0_13, %c0_14] : memref<8x32xf32, #tpu.memory_space<vmem>>, vector<8x32xf32>
    %33 = arith.mulf %23, %32 : vector<8x32xf32>
    %34 = arith.mulf %17, %25 : vector<8x32xf32>
    %35 = arith.addf %33, %34 : vector<8x32xf32>
    %36 = math.tanh %35 : vector<8x32xf32>
    %37 = arith.mulf %31, %36 : vector<8x32xf32>
    %c0_15 = arith.constant 0 : index
    %c0_16 = arith.constant 0 : index
    %38 = vector.load %arg7[%c0_15, %c0_16] : memref<8x32xf32, #tpu.memory_space<vmem>>, vector<8x32xf32>
    tpu.vector_store %arg7[%c0_15, %c0_16], %37 {strides = array<i32>} : memref<8x32xf32, #tpu.memory_space<vmem>>, vector<8x32xf32>,
    %c0_17 = arith.constant 0 : index
    %c0_18 = arith.constant 0 : index
    %39 = vector.load %arg8[%c0_17, %c0_18] : memref<8x32xf32, #tpu.memory_space<vmem>>, vector<8x32xf32>
    tpu.vector_store %arg8[%c0_17, %c0_18], %35 {strides = array<i32>} : memref<8x32xf32, #tpu.memory_space<vmem>>, vector<8x32xf32>,
    return
  }
  func.func @transform_0(%arg0: i32) -> (i32, i32) {
    %c0_i32 = arith.constant 0 : i32
    %c0_i32_0 = arith.constant 0 : i32
    return %arg0, %c0_i32 : i32, i32
  }
  func.func @transform_1(%arg0: i32) -> (i32, i32) {
    %c0_i32 = arith.constant 0 : i32
    %c0_i32_0 = arith.constant 0 : i32
    return %arg0, %c0_i32 : i32, i32
  }
  func.func @transform_2(%arg0: i32) -> (i32, i32) {
    %c0_i32 = arith.constant 0 : i32
    %c0_i32_0 = arith.constant 0 : i32
    return %arg0, %c0_i32 : i32, i32
  }
  func.func @transform_3(%arg0: i32) -> (i32, i32) {
    %c0_i32 = arith.constant 0 : i32
    %c0_i32_0 = arith.constant 0 : i32
    %c0_i32_1 = arith.constant 0 : i32
    return %c0_i32, %c0_i32_0 : i32, i32
  }
  func.func @transform_4(%arg0: i32) -> (i32, i32) {
    %c0_i32 = arith.constant 0 : i32
    %c0_i32_0 = arith.constant 0 : i32
    %c0_i32_1 = arith.constant 0 : i32
    return %c0_i32, %c0_i32_0 : i32, i32
  }
  func.func @transform_5(%arg0: i32) -> (i32, i32) {
    %c0_i32 = arith.constant 0 : i32
    %c0_i32_0 = arith.constant 0 : i32
    %c0_i32_1 = arith.constant 0 : i32
    return %c0_i32, %c0_i32_0 : i32, i32
  }
  func.func @transform_6(%arg0: i32) -> (i32, i32) {
    %c0_i32 = arith.constant 0 : i32
    %c0_i32_0 = arith.constant 0 : i32
    return %arg0, %c0_i32 : i32, i32
  }
  func.func @transform_7(%arg0: i32) -> (i32, i32) {
    %c0_i32 = arith.constant 0 : i32
    %c0_i32_0 = arith.constant 0 : i32
    return %arg0, %c0_i32 : i32, i32
  }
}

</mosaic_0001>

<bundles_post_ra>
// kernel: _encoder_forward.13
= control target key start
LH: loop header
LB: loop body
LE: loop exit
PB: predicated region body
PF: predicated region fallthrough
CT: control target
= control target key end

     0   :  { %vm41_vm0 = vcmask 1040384   ;;  %vm42_vm1 = vcmask 1041408   ;;  %v145_v0 = vmov 0.0   ;;  %v146_v2 = vmov 65535   ;;  %s204_s1 = inlined_call_operand.vmem [shape: bf16[3,128], index: 1, kind: input, shape index: {}]   ;;  %s205_s0 = inlined_call_operand.vmem [shape: f32[40,3], index: 0, kind: input, shape index: {}]   ;;  %s206_s2 = inlined_call_operand.vmem [shape: f32[1,128], index: 2, kind: input, shape index: {}]   ;;  %s207_s3 = inlined_call_operand.vmem [shape: f32[40,128], index: 3, kind: output, shape index: {}]  }
   0x1   :  { %126 = vmatprep.subr.bf16.mxu0 %v145_v0  ;;  %140 = vmatprep.subr.bf16.mxu1 %v145_v0  ;;  %v23_v1 = vld [vmem:[%s204_s1] sm:$0x3]  ;;  %v43_v3 = vsel %vm41_vm0, 4294967295, %v146_v2  ;;  %v16_v5 = vld [vmem:[%s205_s0 + $0x8] sm:$0xff]  ;;  %vm147_vm2 = vmmov 0   ;;  %v17_v7 = vld [vmem:[%s205_s0 + $0x10] sm:$0xff] }
   0x2   :  { %v15_v4 = vld [vmem:[%s205_s0] sm:$0xff]  ;;  %v44_v6 = vsel %vm42_vm1, %v43_v3, 0  ;;  %128 = vmatprep.mubr.msk.bf16.mxu0 %vm147_vm2, %v145_v0  ;;  %132 = vmatprep.mubr.msk.bf16.mxu1 %vm147_vm2, %v145_v0  ;;  %v18_v8 = vld [vmem:[%s205_s0 + $0x18] sm:$0xff]  ;;  %vm31_vm3 = vcmask 23552  }
   0x3   :  { %v46_v9 = vand.u32 %v44_v6, %v23_v1  ;;  %v20_v10 = vpack.c.bf16 %v16_v5, %v15_v4  ;;  %v21_v11 = vpack.c.bf16 %v18_v8, %v17_v7  ;;  %v19_v12 = vld [vmem:[%s205_s0 + $0x20] sm:$0xff] }
   0x4   :  { %v22_v13 = vpack.c.bf16 %v19_v12, %v19_v12  ;;  %v118_v14 = vld [vmem:[%s206_s2] ss:$0 sm:$0xff] }
   0x5   :  { %127 = vmatpush3.bf16.msra.mxu0 %v46_v9  ;;  %141 = vmatpush3.bf16.msra.mxu1 %v46_v9 }
   0x8   :  { %129 = vmatmul.mubr.msk.bf16.vlgmr.msra.gmra.mxu0 %vm31_vm3, %v20_v10  ;;  %133 = vmatmul.mubr.msk.bf16.vlgmr.msra.gmra.mxu1 %vm31_vm3, %v21_v11 }
   0x9   :  { %136 = vmatprep.mubr.msk.bf16.mxu1 %vm147_vm2, %v145_v0 }
  0x10   :  { %137 = vmatmul.mubr.msk.bf16.gmra.mxu1 %vm31_vm3, %v22_v13 }
  0xc8   :  { %v82_v15 = vpop.f32.mrf.mxu0  ;;  %v90_v16 = vpop.f32.mrf.mxu1 }
  0xc9   :  { %v83_v17 = vadd.f32 %v118_v14, %v82_v15  ;;  %v91_v18 = vadd.f32 %v118_v14, %v90_v16 }
  0xca   :  { %v130_v19 = vpop.f32.mrf.mxu0  ;;  %v134_v20 = vpop.f32.mrf.mxu1 }
  0xcb   :  { %v104_v21 = vmax.f32 %v83_v17, 0.0  ;;  %v106_v22 = vmax.f32 %v91_v18, 0.0 }
  0xcc   :  { %v85_v23 = vpop.f32.mrf.mxu0  ;;  %v93_v24 = vpop.f32.mrf.mxu1 }
  0xcd   :  { %109 = vst [vmem:[%s207_s3] sm:$0xff] %v104_v21  ;;  %111 = vst [vmem:[%s207_s3 + $0x10] sm:$0xff] %v106_v22  ;;  %v86_v25 = vadd.f32 %v118_v14, %v85_v23  ;;  %v94_v26 = vadd.f32 %v118_v14, %v93_v24 }
  0xce   :  { %v131_v27 = vpop.f32.mrf.mxu0  ;;  %v135_v28 = vpop.f32.mrf.mxu1 }
  0xcf   :  { %v105_v29 = vmax.f32 %v86_v25, 0.0  ;;  %v107_v30 = vmax.f32 %v94_v26, 0.0 }
  0xd0   :  { %v98_v31 = vpop.f32.mrf.mxu1 }
  0xd1   :  { %110 = vst [vmem:[%s207_s3 + $0x8] sm:$0xff] %v105_v29  ;;  %112 = vst [vmem:[%s207_s3 + $0x18] sm:$0xff] %v107_v30  ;;  %v99_v32 = vadd.f32 %v118_v14, %v98_v31 }
  0xd2   :  { %v138_v33 = vpop.f32.mrf.mxu1 }
  0xd3   :  { %v108_v34 = vmax.f32 %v99_v32, 0.0 }
  0xd4   :  { %v101_v35 = vpop.f32.mrf.mxu1 }
  0xd5   :  { %113 = vst [vmem:[%s207_s3 + $0x20] sm:$0xff] %v108_v34 }
  0xd6   :  { %v139_v36 = vpop.f32.mrf.mxu1 }

// kernel: _encoder_forward.12
= control target key start
LH: loop header
LB: loop body
LE: loop exit
PB: predicated region body
PF: predicated region fallthrough
CT: control target
= control target key end

     0   :  { %vm30_vm0 = vcmask 1043456   ;;  %v96_v0 = vmov 0.0   ;;  %vm97_vm1 = vmmov 0   ;;  %vm26_vm2 = vcmask 64512   ;;  %s136_s1 = inlined_call_operand.vmem [shape: bf16[8,32], index: 1, kind: input, shape index: {}]   ;;  %s137_s0 = inlined_call_operand.vmem [shape: f32[16,8], index: 0, kind: input, shape index: {}]   ;;  %s138_s2 = inlined_call_operand.vmem [shape: f32[1,32], index: 2, kind: input, shape index: {}]   ;;  %s139_s3 = inlined_call_operand.vmem [shape: f32[16,32], index: 3, kind: output, shape index: {}]  }
   0x1   :  { %88 = vmatprep.subr.bf16.mxu0 %v96_v0  ;;  %v18_v1 = vld [vmem:[%s136_s1] sm:$0xf]  ;;  %90 = vmatprep.mubr.msk.bf16.mxu0 %vm97_vm1, %v96_v0  ;;  %v16_v3 = vld [vmem:[%s137_s0 + $0x8] sm:$0xff]  ;;  %vm77_vm3 = vcmask 261120  }
   0x2   :  { %v15_v2 = vld [vmem:[%s137_s0] sm:$0xff]  ;;  %v32_v4 = vsel %vm30_vm0, %v18_v1, 0 }
   0x3   :  { %v17_v5 = vpack.c.bf16 %v16_v3, %v15_v2  ;;  %89 = vmatpush3.bf16.msra.mxu0 %v32_v4  ;;  %v84_v6 = vld [vmem:[%s138_s2] ss:$0 sm:$0xff] }
   0x6   :  { %91 = vmatmul.mubr.msk.bf16.vlgmr.msra.gmra.mxu0 %vm26_vm2, %v17_v5 }
  0xc6   :  { %v68_v7 = vpop.f32.mrf.mxu0 }
  0xc7   :  { %v69_v8 = vadd.f32 %v84_v6, %v68_v7 }
  0xc8   :  { %v92_v9 = vpop.f32.mrf.mxu0 }
  0xc9   :  { %v75_v10 = vmax.f32 %v69_v8, 0.0 }
  0xca   :  { %v71_v11 = vpop.f32.mrf.mxu0 }
  0xcb   :  { %78 = vst.msk [vmem:[%s139_s3] sm:$0xff] %vm77_vm3, %v75_v10  ;;  %v72_v12 = vadd.f32 %v84_v6, %v71_v11 }
  0xcc   :  { %v93_v13 = vpop.f32.mrf.mxu0 }
  0xcd   :  { %v76_v14 = vmax.f32 %v72_v12, 0.0 }
  0xcf   :  { %79 = vst.msk [vmem:[%s139_s3 + $0x8] sm:$0xff] %vm77_vm3, %v76_v14 }

// kernel: _encoder_forward.14
= control target key start
LH: loop header
LB: loop body
LE: loop exit
PB: predicated region body
PF: predicated region fallthrough
CT: control target
= control target key end

     0   :  { %8 = vsyncpa [#allocation3], 0  ;;  %s842_s12 = smov [#allocation2]   ;;  %s1051_s0 = inlined_call_operand.vmem [shape: f32[40,128], index: 0, kind: input, shape index: {}]   ;;  %s1052_s1 = inlined_call_operand.hbm [shape: bf16[128,1024], index: 1, kind: input, shape index: {}]   ;;  %s1053_s2 = inlined_call_operand.vmem [shape: f32[1,1024], index: 2, kind: input, shape index: {}]   ;;  %s1054_s3 = inlined_call_operand.vmem [shape: f32[40,1024], index: 3, kind: output, shape index: {}]  }
   0x1   :  { %s16_s13 = sshll.u32 %s842_s12, 4  ;;  %s17_s13 = int_to_ptr.vmem [resolvable:$true] %s16_s13 }
   0x2   :  { %s828_s14 = scalar_lea.vmem %s17_s13, 8192  ;;  %p833_p1 = scmp.lt.s32.totalorder %s17_s13, %s17_s13 }
   0x3   :  { %p829_p0 = scmp.ne.s32.totalorder %s17_s13, %s828_s14  ;;  %p834_p2 = scmp.lt.s32.totalorder %s828_s14, %s828_s14 }
   0x5   :  { %p835_p3 = por %p834_p2, %p833_p1 }
   0x7   :  { %p836_p4 = pnand %p835_p3, %p829_p0 }
   0x9   :  { %839 = shalt.err (!%p836_p4)
}
   0xa   :  { %s843_s15 = smov 512   ;;  %s844_s16 = smov 32  }
   0xb   :  { %22 = dma.hbm_to_vmem [thread:$0]  %s1052_s1, 8192, %s17_s13, [#allocation3], %s843_s15, %s843_s15, %s844_s16  }
   0xc   :  { %840 = dma.done.wait [#allocation3], 8192  }
   0xd   :  { %841 = vsyncadd [#allocation3], 4294959104  ;;  %v845_v0 = vmov 0   ;;  %v93_v1 = vld [vmem:[#allocation2 + $0x1c0] sm:$0xff]  ;;  %v94_v3 = vld [vmem:[#allocation2 + $0x1c8] sm:$0xff] }
   0xe   :  { %495 = vmatprep.mubr.bf16.mxu0 %v845_v0  ;;  %556 = vmatprep.mubr.bf16.mxu1 %v845_v0  ;;  %v97_v2 = vld [vmem:[#allocation2 + $0x1e0] sm:$0xff]  ;;  %v98_v5 = vld [vmem:[#allocation2 + $0x1e8] sm:$0xff]  ;;  %v95_v63 = vld [vmem:[#allocation2 + $0x1d0] sm:$0xff] }
   0xf   :  { %v809_v4 = vcombine.high %v93_v1, %v97_v2  ;;  %v808_v6 = vcombine.low %v93_v1, %v97_v2  ;;  %v85_v7 = vld [vmem:[#allocation2 + $0x180] sm:$0xff]  ;;  %v811_v9 = vcombine.high %v94_v3, %v98_v5  ;;  %v810_v10 = vcombine.low %v94_v3, %v98_v5  ;;  %v86_v12 = vld [vmem:[#allocation2 + $0x188] sm:$0xff]  ;;  %v99_v1 = vld [vmem:[#allocation2 + $0x1f0] sm:$0xff] }
  0x10   :  { %v89_v8 = vld [vmem:[#allocation2 + $0x1a0] sm:$0xff]  ;;  %v90_v13 = vld [vmem:[#allocation2 + $0x1a8] sm:$0xff]  ;;  %v96_v2 = vld [vmem:[#allocation2 + $0x1d8] sm:$0xff] }
  0x11   :  { %v801_v11 = vcombine.high %v85_v7, %v89_v8  ;;  %v77_v14 = vld [vmem:[#allocation2 + $0x140] sm:$0xff]  ;;  %463 = vmatprep.subr.bf16.mxu0 %v809_v4  ;;  %v803_v15 = vcombine.high %v86_v12, %v90_v13  ;;  %v78_v17 = vld [vmem:[#allocation2 + $0x148] sm:$0xff]  ;;  %524 = vmatprep.subr.bf16.mxu1 %v811_v9  ;;  %v800_v19 = vcombine.low %v85_v7, %v89_v8  ;;  %v100_v3 = vld [vmem:[#allocation2 + $0x1f8] sm:$0xff] }
  0x12   :  { %v81_v16 = vld [vmem:[#allocation2 + $0x160] sm:$0xff]  ;;  %v82_v18 = vld [vmem:[#allocation2 + $0x168] sm:$0xff]  ;;  %464 = vmatpush1.bf16.msra.mxu0 %v808_v6  ;;  %525 = vmatpush1.bf16.msra.mxu1 %v810_v10  ;;  %v802_v20 = vcombine.low %v86_v12, %v90_v13  ;;  %v813_v8 = vcombine.high %v95_v63, %v99_v1  ;;  %v815_v9 = vcombine.high %v96_v2, %v100_v3  ;;  %v87_v10 = vld [vmem:[#allocation2 + $0x190] sm:$0xff] }
  0x13   :  { %465 = vmatprep.subr.bf16.mxu0 %v801_v11  ;;  %v793_v21 = vcombine.high %v77_v14, %v81_v16  ;;  %526 = vmatprep.subr.bf16.mxu1 %v803_v15  ;;  %v795_v22 = vcombine.high %v78_v17, %v82_v18  ;;  %v69_v23 = vld [vmem:[#allocation2 + $0x100] sm:$0xff]  ;;  %v70_v25 = vld [vmem:[#allocation2 + $0x108] sm:$0xff]  ;;  %v792_v27 = vcombine.low %v77_v14, %v81_v16  ;;  %v91_v11 = vld [vmem:[#allocation2 + $0x1b0] sm:$0xff] }
  0x14   :  { %v73_v24 = vld [vmem:[#allocation2 + $0x120] sm:$0xff]  ;;  %v74_v26 = vld [vmem:[#allocation2 + $0x128] sm:$0xff]  ;;  %v794_v28 = vcombine.low %v78_v17, %v82_v18  ;;  %v88_v13 = vld [vmem:[#allocation2 + $0x198] sm:$0xff]  ;;  %v812_v15 = vcombine.low %v95_v63, %v99_v1  ;;  %v814_v16 = vcombine.low %v96_v2, %v100_v3  ;;  %v805_v17 = vcombine.high %v87_v10, %v91_v11 }
  0x15   :  { %v785_v29 = vcombine.high %v69_v23, %v73_v24  ;;  %v787_v30 = vcombine.high %v70_v25, %v74_v26  ;;  %v61_v31 = vld [vmem:[#allocation2 + $0xc0] sm:$0xff]  ;;  %v62_v33 = vld [vmem:[#allocation2 + $0xc8] sm:$0xff]  ;;  %v784_v35 = vcombine.low %v69_v23, %v73_v24  ;;  %v786_v36 = vcombine.low %v70_v25, %v74_v26  ;;  %v92_v14 = vld [vmem:[#allocation2 + $0x1b8] sm:$0xff] }
  0x16   :  { %466 = vmatpush1.bf16.msra.mxu0 %v800_v19  ;;  %527 = vmatpush1.bf16.msra.mxu1 %v802_v20  ;;  %v65_v32 = vld [vmem:[#allocation2 + $0xe0] sm:$0xff]  ;;  %v66_v34 = vld [vmem:[#allocation2 + $0xe8] sm:$0xff]  ;;  %v807_v18 = vcombine.high %v88_v13, %v92_v14  ;;  %v79_v19 = vld [vmem:[#allocation2 + $0x150] sm:$0xff]  ;;  %v804_v23 = vcombine.low %v87_v10, %v91_v11  ;;  %v806_v26 = vcombine.low %v88_v13, %v92_v14  ;;  %v103_v11 = vlaneseq }
  0x17   :  { %467 = vmatprep.subr.bf16.mxu0 %v793_v21  ;;  %528 = vmatprep.subr.bf16.mxu1 %v795_v22  ;;  %v777_v37 = vcombine.high %v61_v31, %v65_v32  ;;  %v779_v38 = vcombine.high %v62_v33, %v66_v34  ;;  %v53_v39 = vld [vmem:[#allocation2 + $0x80] sm:$0xff]  ;;  %v54_v41 = vld [vmem:[#allocation2 + $0x88] sm:$0xff]  ;;  %v776_v43 = vcombine.low %v61_v31, %v65_v32  ;;  %v83_v20 = vld [vmem:[#allocation2 + $0x170] sm:$0xff] }
  0x18   :  { %v57_v40 = vld [vmem:[#allocation2 + $0xa0] sm:$0xff]  ;;  %v58_v42 = vld [vmem:[#allocation2 + $0xa8] sm:$0xff]  ;;  %v778_v44 = vcombine.low %v62_v33, %v66_v34  ;;  %v80_v21 = vld [vmem:[#allocation2 + $0x158] sm:$0xff]  ;;  %v796_v34 = vcombine.low %v79_v19, %v83_v20  ;;  %v908_v13 = vshrl.u32 %v103_v11, 7 }
  0x19   :  { %v769_v45 = vcombine.high %v53_v39, %v57_v40  ;;  %v771_v46 = vcombine.high %v54_v41, %v58_v42  ;;  %v45_v47 = vld [vmem:[#allocation2 + $0x40] sm:$0xff]  ;;  %v46_v49 = vld [vmem:[#allocation2 + $0x48] sm:$0xff]  ;;  %v768_v51 = vcombine.low %v53_v39, %v57_v40  ;;  %v770_v52 = vcombine.low %v54_v41, %v58_v42  ;;  %v84_v22 = vld [vmem:[#allocation2 + $0x178] sm:$0xff] }
  0x1a   :  { %468 = vmatpush1.bf16.msra.mxu0 %v792_v27  ;;  %529 = vmatpush1.bf16.msra.mxu1 %v794_v28  ;;  %v49_v48 = vld [vmem:[#allocation2 + $0x60] sm:$0xff]  ;;  %v50_v50 = vld [vmem:[#allocation2 + $0x68] sm:$0xff]  ;;  %v31_v24 = vld [vmem:[%s1051_s0 + $0x10] sm:$0xff]  ;;  %v797_v27 = vcombine.high %v79_v19, %v83_v20  ;;  %v799_v28 = vcombine.high %v80_v21, %v84_v22  ;;  %v105_v14 = vsub.s32 0, %v908_v13 }
  0x1b   :  { %469 = vmatprep.subr.bf16.mxu0 %v785_v29  ;;  %530 = vmatprep.subr.bf16.mxu1 %v787_v30  ;;  %v761_v53 = vcombine.high %v45_v47, %v49_v48  ;;  %v763_v54 = vcombine.high %v46_v49, %v50_v50  ;;  %v37_v55 = vld [vmem:[#allocation2] sm:$0xff]  ;;  %v38_v57 = vld [vmem:[#allocation2 + $0x8] sm:$0xff]  ;;  %v760_v59 = vcombine.low %v45_v47, %v49_v48  ;;  %v32_v25 = vld [vmem:[%s1051_s0 + $0x18] sm:$0xff] }
  0x1c   :  { %v41_v56 = vld [vmem:[#allocation2 + $0x20] sm:$0xff]  ;;  %v42_v58 = vld [vmem:[#allocation2 + $0x28] sm:$0xff]  ;;  %v762_v60 = vcombine.low %v46_v49, %v50_v50  ;;  %v71_v29 = vld [vmem:[#allocation2 + $0x110] sm:$0xff]  ;;  %v889_v31 = vpack.c.bf16 %v32_v25, %v31_v24 }
  0x1d   :  { %v753_v61 = vcombine.high %v37_v55, %v41_v56  ;;  %v755_v62 = vcombine.high %v38_v57, %v42_v58  ;;  %v752_v4 = vcombine.low %v37_v55, %v41_v56  ;;  %v29_v5 = vld [vmem:[%s1051_s0] sm:$0xff]  ;;  %v30_v6 = vld [vmem:[%s1051_s0 + $0x8] sm:$0xff]  ;;  %v754_v7 = vcombine.low %v38_v57, %v42_v58  ;;  %v75_v30 = vld [vmem:[#allocation2 + $0x130] sm:$0xff] }
  0x1e   :  { %470 = vmatpush1.bf16.msra.mxu0 %v784_v35  ;;  %531 = vmatpush1.bf16.msra.mxu1 %v786_v36  ;;  %v877_v12 = vpack.c.bf16 %v30_v6, %v29_v5  ;;  %v72_v32 = vld [vmem:[#allocation2 + $0x118] sm:$0xff]  ;;  %v798_v35 = vcombine.low %v80_v21, %v84_v22  ;;  %v789_v36 = vcombine.high %v71_v29, %v75_v30  ;;  %v67_v39 = vld [vmem:[#allocation2 + $0xf0] sm:$0xff] }
  0x1f   :  { %471 = vmatprep.subr.bf16.mxu0 %v777_v37  ;;  %532 = vmatprep.subr.bf16.mxu1 %v779_v38  ;;  %v76_v33 = vld [vmem:[#allocation2 + $0x138] sm:$0xff]  ;;  %v63_v38 = vld [vmem:[#allocation2 + $0xd0] sm:$0xff]  ;;  %v788_v42 = vcombine.low %v71_v29, %v75_v30 }
  0x20   :  { %v791_v37 = vcombine.high %v72_v32, %v76_v33  ;;  %v64_v40 = vld [vmem:[#allocation2 + $0xd8] sm:$0xff]  ;;  %v55_v47 = vld [vmem:[#allocation2 + $0x90] sm:$0xff] }
  0x21   :  { %v68_v41 = vld [vmem:[#allocation2 + $0xf8] sm:$0xff]  ;;  %v59_v48 = vld [vmem:[#allocation2 + $0xb0] sm:$0xff] }
  0x22   :  { %472 = vmatpush1.bf16.msra.mxu0 %v776_v43  ;;  %533 = vmatpush1.bf16.msra.mxu1 %v778_v44  ;;  %v33_v43 = vld [vmem:[%s1051_s0 + $0x20] sm:$0xff]  ;;  %v790_v44 = vcombine.low %v72_v32, %v76_v33  ;;  %v56_v50 = vld [vmem:[#allocation2 + $0x98] sm:$0xff]  ;;  %v47_v56 = vld [vmem:[#allocation2 + $0x50] sm:$0xff] }
  0x23   :  { %473 = vmatprep.subr.bf16.mxu0 %v769_v45  ;;  %534 = vmatprep.subr.bf16.mxu1 %v771_v46  ;;  %v781_v45 = vcombine.high %v63_v38, %v67_v39  ;;  %v783_v46 = vcombine.high %v64_v40, %v68_v41  ;;  %v36_v49 = vpack.c.bf16 %v33_v43, %v33_v43  ;;  %v51_v57 = vld [vmem:[#allocation2 + $0x70] sm:$0xff]  ;;  %v48_v58 = vld [vmem:[#allocation2 + $0x58] sm:$0xff] }
  0x24   :  { %v39_v1 = vld [vmem:[#allocation2 + $0x10] sm:$0xff]  ;;  %v40_v3 = vld [vmem:[#allocation2 + $0x18] sm:$0xff]  ;;  %v764_v5 = vcombine.low %v47_v56, %v51_v57 }
  0x25   :  { %v43_v2 = vld [vmem:[#allocation2 + $0x30] sm:$0xff] }
  0x26   :  { %474 = vmatpush1.bf16.msra.mxu0 %v768_v51  ;;  %535 = vmatpush1.bf16.msra.mxu1 %v770_v52  ;;  %v60_v51 = vld [vmem:[#allocation2 + $0xb8] sm:$0xff]  ;;  %v780_v52 = vcombine.low %v63_v38, %v67_v39 }
  0x27   :  { %475 = vmatprep.subr.bf16.mxu0 %v761_v53  ;;  %536 = vmatprep.subr.bf16.mxu1 %v763_v54  ;;  %v782_v53 = vcombine.low %v64_v40, %v68_v41  ;;  %v773_v54 = vcombine.high %v55_v47, %v59_v48  ;;  %v775_v55 = vcombine.high %v56_v50, %v60_v51 }
  0x2a   :  { %476 = vmatpush1.bf16.msra.mxu0 %v760_v59  ;;  %537 = vmatpush1.bf16.msra.mxu1 %v762_v60  ;;  %v52_v59 = vld [vmem:[#allocation2 + $0x78] sm:$0xff]  ;;  %v772_v60 = vcombine.low %v55_v47, %v59_v48 }
  0x2b   :  { %477 = vmatprep.subr.bf16.mxu0 %v753_v61  ;;  %538 = vmatprep.subr.bf16.mxu1 %v755_v62  ;;  %v774_v61 = vcombine.low %v56_v50, %v60_v51  ;;  %v765_v62 = vcombine.high %v47_v56, %v51_v57  ;;  %v767_v63 = vcombine.high %v48_v58, %v52_v59 }
  0x2c   :  { %v766_v6 = vcombine.low %v48_v58, %v52_v59 }
  0x2e   :  { %478 = vmatpush1.bf16.msra.mxu0 %v752_v4  ;;  %539 = vmatpush1.bf16.msra.mxu1 %v754_v7  ;;  %v44_v4 = vld [vmem:[#allocation2 + $0x38] sm:$0xff]  ;;  %v757_v7 = vcombine.high %v39_v1, %v43_v2 }
  0x2f   :  { %585 = vmatprep.subr.bf16.mxu0 %v813_v8  ;;  %646 = vmatprep.subr.bf16.mxu1 %v815_v9  ;;  %v759_v8 = vcombine.high %v40_v3, %v44_v4  ;;  %v756_v9 = vcombine.low %v39_v1, %v43_v2  ;;  %v758_v10 = vcombine.low %v40_v3, %v44_v4  ;;  %v121_v2 = vsub.s32 4, %v908_v13 }
  0x30   :  { %v129_v3 = vsub.s32 6, %v908_v13  ;;  %v125_v4 = vsub.s32 5, %v908_v13 }
  0x31   :  { %496 = vmatmul.mubr.bf16.vlgmr.msra.gmra.mxu0 %v877_v12  ;;  %557 = vmatmul.mubr.bf16.vlgmr.msra.gmra.mxu1 %v877_v12 }
  0x32   :  { %586 = vmatpush1.bf16.msra.mxu0 %v812_v15  ;;  %647 = vmatpush1.bf16.msra.mxu1 %v814_v16  ;;  %v113_v15 = vsub.s32 2, %v908_v13  ;;  %v109_v16 = vsub.s32 1, %v908_v13 }
  0x33   :  { %587 = vmatprep.subr.bf16.mxu0 %v805_v17  ;;  %648 = vmatprep.subr.bf16.mxu1 %v807_v18  ;;  %v117_v17 = vsub.s32 3, %v908_v13 }
  0x34   :  { %505 = vmatprep.mubr.bf16.mxu0 %v845_v0  ;;  %566 = vmatprep.mubr.bf16.mxu1 %v845_v0 }
  0x36   :  { %588 = vmatpush1.bf16.msra.mxu0 %v804_v23  ;;  %649 = vmatpush1.bf16.msra.mxu1 %v806_v26 }
  0x37   :  { %589 = vmatprep.subr.bf16.mxu0 %v797_v27  ;;  %650 = vmatprep.subr.bf16.mxu1 %v799_v28 }
  0x39   :  { %506 = vmatmul.mubr.bf16.gmra.mxu0 %v889_v31  ;;  %567 = vmatmul.mubr.bf16.gmra.mxu1 %v889_v31 }
  0x3a   :  { %590 = vmatpush1.bf16.msra.mxu0 %v796_v34  ;;  %651 = vmatpush1.bf16.msra.mxu1 %v798_v35 }
  0x3b   :  { %591 = vmatprep.subr.bf16.mxu0 %v789_v36  ;;  %652 = vmatprep.subr.bf16.mxu1 %v791_v37 }
  0x3c   :  { %515 = vmatprep.mubr.bf16.mxu0 %v845_v0  ;;  %576 = vmatprep.mubr.bf16.mxu1 %v845_v0 }
  0x3e   :  { %592 = vmatpush1.bf16.msra.mxu0 %v788_v42  ;;  %653 = vmatpush1.bf16.msra.mxu1 %v790_v44 }
  0x3f   :  { %593 = vmatprep.subr.bf16.mxu0 %v781_v45  ;;  %654 = vmatprep.subr.bf16.mxu1 %v783_v46 }
  0x41   :  { %516 = vmatmul.mubr.bf16.gmra.mxu0 %v36_v49  ;;  %577 = vmatmul.mubr.bf16.gmra.mxu1 %v36_v49 }
  0x42   :  { %594 = vmatpush1.bf16.msra.mxu0 %v780_v52  ;;  %655 = vmatpush1.bf16.msra.mxu1 %v782_v53 }
  0x43   :  { %595 = vmatprep.subr.bf16.mxu0 %v773_v54  ;;  %656 = vmatprep.subr.bf16.mxu1 %v775_v55 }
  0x44   :  { %617 = vmatprep.mubr.bf16.mxu0 %v845_v0  ;;  %678 = vmatprep.mubr.bf16.mxu1 %v845_v0 }
  0x46   :  { %596 = vmatpush1.bf16.msra.mxu0 %v772_v60  ;;  %657 = vmatpush1.bf16.msra.mxu1 %v774_v61 }
  0x47   :  { %597 = vmatprep.subr.bf16.mxu0 %v765_v62  ;;  %658 = vmatprep.subr.bf16.mxu1 %v767_v63 }
  0x4a   :  { %598 = vmatpush1.bf16.msra.mxu0 %v764_v5  ;;  %659 = vmatpush1.bf16.msra.mxu1 %v766_v6  ;;  %v133_v5 = vsub.s32 7, %v908_v13 }
  0x4b   :  { %599 = vmatprep.subr.bf16.mxu0 %v757_v7  ;;  %660 = vmatprep.subr.bf16.mxu1 %v759_v8 }
  0x4e   :  { %600 = vmatpush1.bf16.msra.mxu0 %v756_v9  ;;  %661 = vmatpush1.bf16.msra.mxu1 %v758_v10 }
  0x51   :  { %618 = vmatmul.mubr.bf16.vlgmr.msra.gmra.mxu0 %v877_v12  ;;  %679 = vmatmul.mubr.bf16.vlgmr.msra.gmra.mxu1 %v877_v12  ;;  %v914_v12 = vld [vmem:[%s1053_s2] sm:$0xff] }
  0x52   :  { %627 = vmatprep.mubr.bf16.mxu0 %v845_v0  ;;  %688 = vmatprep.mubr.bf16.mxu1 %v845_v0  ;;  %v114_v18 = vrot.slane %v914_v12, %v113_v15  ;;  %v110_v19 = vrot.slane %v914_v12, %v109_v16  ;;  %v118_v21 = vrot.slane %v914_v12, %v117_v17 }
  0x53   :  { %v122_v6 = vrot.slane %v914_v12, %v121_v2  ;;  %v130_v7 = vrot.slane %v914_v12, %v129_v3  ;;  %v126_v8 = vrot.slane %v914_v12, %v125_v4  ;;  %v134_v10 = vrot.slane %v914_v12, %v133_v5 }
  0x59   :  { %628 = vmatmul.mubr.bf16.gmra.mxu0 %v889_v31  ;;  %689 = vmatmul.mubr.bf16.gmra.mxu1 %v889_v31 }
  0x5a   :  { %637 = vmatprep.mubr.bf16.mxu0 %v845_v0  ;;  %698 = vmatprep.mubr.bf16.mxu1 %v845_v0  ;;  %v106_v0 = vrot.slane %v914_v12, %v105_v14 }
  0x61   :  { %638 = vmatmul.mubr.bf16.gmra.mxu0 %v36_v49  ;;  %699 = vmatmul.mubr.bf16.gmra.mxu1 %v36_v49 }
  0xf1   :  { %v497_v20 = vpop.f32.mrf.mxu0  ;;  %v558_v23 = vpop.f32.mrf.mxu1 }
  0xf2   :  { %v498_v22 = vadd.f32 %v497_v20, %v106_v0  ;;  %v559_v24 = vadd.f32 %v558_v23, %v114_v18 }
  0xf3   :  { %v499_v25 = vpop.f32.mrf.mxu0  ;;  %v560_v27 = vpop.f32.mrf.mxu1 }
  0xf4   :  { %707 = vst [vmem:[%s1054_s3] sm:$0xff] %v498_v22  ;;  %v500_v26 = vadd.f32 %v499_v25, %v110_v19  ;;  %709 = vst [vmem:[%s1054_s3 + $0x10] sm:$0xff] %v559_v24  ;;  %v561_v28 = vadd.f32 %v560_v27, %v118_v21 }
  0xf5   :  { %v501_v29 = vpop.f32.mrf.mxu0  ;;  %v562_v31 = vpop.f32.mrf.mxu1 }
  0xf6   :  { %708 = vst [vmem:[%s1054_s3 + $0x8] sm:$0xff] %v500_v26  ;;  %v502_v30 = vadd.f32 %v501_v29, %v106_v0  ;;  %710 = vst [vmem:[%s1054_s3 + $0x18] sm:$0xff] %v561_v28  ;;  %v563_v32 = vadd.f32 %v562_v31, %v114_v18 }
  0xf7   :  { %v503_v33 = vpop.f32.mrf.mxu0  ;;  %v564_v35 = vpop.f32.mrf.mxu1 }
  0xf8   :  { %715 = vst [vmem:[%s1054_s3 + $0x40] sm:$0xff] %v502_v30  ;;  %v504_v34 = vadd.f32 %v503_v33, %v110_v19  ;;  %717 = vst [vmem:[%s1054_s3 + $0x50] sm:$0xff] %v563_v32  ;;  %v565_v36 = vadd.f32 %v564_v35, %v118_v21 }
  0xf9   :  { %v507_v37 = vpop.f32.mrf.mxu0  ;;  %v568_v39 = vpop.f32.mrf.mxu1 }
  0xfa   :  { %716 = vst [vmem:[%s1054_s3 + $0x48] sm:$0xff] %v504_v34  ;;  %v508_v38 = vadd.f32 %v507_v37, %v106_v0  ;;  %718 = vst [vmem:[%s1054_s3 + $0x58] sm:$0xff] %v565_v36  ;;  %v569_v40 = vadd.f32 %v568_v39, %v114_v18 }
  0xfb   :  { %v509_v41 = vpop.f32.mrf.mxu0  ;;  %v570_v43 = vpop.f32.mrf.mxu1 }
  0xfc   :  { %723 = vst [vmem:[%s1054_s3 + $0x80] sm:$0xff] %v508_v38  ;;  %v510_v42 = vadd.f32 %v509_v41, %v110_v19  ;;  %725 = vst [vmem:[%s1054_s3 + $0x90] sm:$0xff] %v569_v40  ;;  %v571_v44 = vadd.f32 %v570_v43, %v118_v21 }
  0xfd   :  { %v511_v45 = vpop.f32.mrf.mxu0  ;;  %v572_v47 = vpop.f32.mrf.mxu1 }
  0xfe   :  { %724 = vst [vmem:[%s1054_s3 + $0x88] sm:$0xff] %v510_v42  ;;  %v512_v46 = vadd.f32 %v511_v45, %v106_v0  ;;  %726 = vst [vmem:[%s1054_s3 + $0x98] sm:$0xff] %v571_v44  ;;  %v573_v48 = vadd.f32 %v572_v47, %v114_v18 }
  0xff   :  { %v513_v49 = vpop.f32.mrf.mxu0  ;;  %v574_v51 = vpop.f32.mrf.mxu1 }
 0x100   :  { %731 = vst [vmem:[%s1054_s3 + $0xc0] sm:$0xff] %v512_v46  ;;  %v514_v50 = vadd.f32 %v513_v49, %v110_v19  ;;  %733 = vst [vmem:[%s1054_s3 + $0xd0] sm:$0xff] %v573_v48  ;;  %v575_v52 = vadd.f32 %v574_v51, %v118_v21 }
 0x101   :  { %v517_v53 = vpop.f32.mrf.mxu0  ;;  %v578_v55 = vpop.f32.mrf.mxu1 }
 0x102   :  { %732 = vst [vmem:[%s1054_s3 + $0xc8] sm:$0xff] %v514_v50  ;;  %v518_v54 = vadd.f32 %v517_v53, %v106_v0  ;;  %734 = vst [vmem:[%s1054_s3 + $0xd8] sm:$0xff] %v575_v52  ;;  %v579_v56 = vadd.f32 %v578_v55, %v114_v18 }
 0x103   :  { %v519_v57 = vpop.f32.mrf.mxu0  ;;  %v580_v59 = vpop.f32.mrf.mxu1 }
 0x104   :  { %739 = vst [vmem:[%s1054_s3 + $0x100] sm:$0xff] %v518_v54  ;;  %v520_v58 = vadd.f32 %v519_v57, %v110_v19  ;;  %741 = vst [vmem:[%s1054_s3 + $0x110] sm:$0xff] %v579_v56  ;;  %v581_v60 = vadd.f32 %v580_v59, %v118_v21 }
 0x105   :  { %v521_v61 = vpop.f32.mrf.mxu0  ;;  %v582_v62 = vpop.f32.mrf.mxu1 }
 0x106   :  { %740 = vst [vmem:[%s1054_s3 + $0x108] sm:$0xff] %v520_v58  ;;  %742 = vst [vmem:[%s1054_s3 + $0x118] sm:$0xff] %v581_v60 }
 0x107   :  { %v522_v63 = vpop.f32.mrf.mxu0  ;;  %v583_v1 = vpop.f32.mrf.mxu1 }
 0x111   :  { %v619_v9 = vpop.f32.mrf.mxu0  ;;  %v680_v14 = vpop.f32.mrf.mxu1 }
 0x112   :  { %v620_v11 = vadd.f32 %v619_v9, %v122_v6  ;;  %v681_v15 = vadd.f32 %v680_v14, %v130_v7 }
 0x113   :  { %v621_v16 = vpop.f32.mrf.mxu0  ;;  %v682_v0 = vpop.f32.mrf.mxu1 }
 0x114   :  { %711 = vst [vmem:[%s1054_s3 + $0x20] sm:$0xff] %v620_v11  ;;  %v622_v17 = vadd.f32 %v621_v16, %v126_v8  ;;  %713 = vst [vmem:[%s1054_s3 + $0x30] sm:$0xff] %v681_v15  ;;  %v683_v13 = vadd.f32 %v682_v0, %v134_v10 }
 0x115   :  { %v623_v18 = vpop.f32.mrf.mxu0  ;;  %v684_v19 = vpop.f32.mrf.mxu1 }
 0x116   :  { %712 = vst [vmem:[%s1054_s3 + $0x28] sm:$0xff] %v622_v17  ;;  %v624_v12 = vadd.f32 %v623_v18, %v122_v6  ;;  %714 = vst [vmem:[%s1054_s3 + $0x38] sm:$0xff] %v683_v13  ;;  %v685_v20 = vadd.f32 %v684_v19, %v130_v7 }
 0x117   :  { %v625_v21 = vpop.f32.mrf.mxu0  ;;  %v686_v23 = vpop.f32.mrf.mxu1 }
 0x118   :  { %719 = vst [vmem:[%s1054_s3 + $0x60] sm:$0xff] %v624_v12  ;;  %v626_v22 = vadd.f32 %v625_v21, %v126_v8  ;;  %721 = vst [vmem:[%s1054_s3 + $0x70] sm:$0xff] %v685_v20  ;;  %v687_v24 = vadd.f32 %v686_v23, %v134_v10 }
 0x119   :  { %v629_v25 = vpop.f32.mrf.mxu0  ;;  %v690_v27 = vpop.f32.mrf.mxu1 }
 0x11a   :  { %720 = vst [vmem:[%s1054_s3 + $0x68] sm:$0xff] %v626_v22  ;;  %v630_v26 = vadd.f32 %v629_v25, %v122_v6  ;;  %722 = vst [vmem:[%s1054_s3 + $0x78] sm:$0xff] %v687_v24  ;;  %v691_v28 = vadd.f32 %v690_v27, %v130_v7 }
 0x11b   :  { %v631_v29 = vpop.f32.mrf.mxu0  ;;  %v692_v31 = vpop.f32.mrf.mxu1 }
 0x11c   :  { %727 = vst [vmem:[%s1054_s3 + $0xa0] sm:$0xff] %v630_v26  ;;  %v632_v30 = vadd.f32 %v631_v29, %v126_v8  ;;  %729 = vst [vmem:[%s1054_s3 + $0xb0] sm:$0xff] %v691_v28  ;;  %v693_v32 = vadd.f32 %v692_v31, %v134_v10 }
 0x11d   :  { %v633_v33 = vpop.f32.mrf.mxu0  ;;  %v694_v35 = vpop.f32.mrf.mxu1 }
 0x11e   :  { %728 = vst [vmem:[%s1054_s3 + $0xa8] sm:$0xff] %v632_v30  ;;  %v634_v34 = vadd.f32 %v633_v33, %v122_v6  ;;  %730 = vst [vmem:[%s1054_s3 + $0xb8] sm:$0xff] %v693_v32  ;;  %v695_v36 = vadd.f32 %v694_v35, %v130_v7 }
 0x11f   :  { %v635_v37 = vpop.f32.mrf.mxu0  ;;  %v696_v39 = vpop.f32.mrf.mxu1 }
 0x120   :  { %735 = vst [vmem:[%s1054_s3 + $0xe0] sm:$0xff] %v634_v34  ;;  %v636_v38 = vadd.f32 %v635_v37, %v126_v8  ;;  %737 = vst [vmem:[%s1054_s3 + $0xf0] sm:$0xff] %v695_v36  ;;  %v697_v40 = vadd.f32 %v696_v39, %v134_v10 }
 0x121   :  { %v639_v41 = vpop.f32.mrf.mxu0  ;;  %v700_v43 = vpop.f32.mrf.mxu1 }
 0x122   :  { %736 = vst [vmem:[%s1054_s3 + $0xe8] sm:$0xff] %v636_v38  ;;  %v640_v42 = vadd.f32 %v639_v41, %v122_v6  ;;  %738 = vst [vmem:[%s1054_s3 + $0xf8] sm:$0xff] %v697_v40  ;;  %v701_v44 = vadd.f32 %v700_v43, %v130_v7 }
 0x123   :  { %v641_v45 = vpop.f32.mrf.mxu0  ;;  %v702_v47 = vpop.f32.mrf.mxu1 }
 0x124   :  { %743 = vst [vmem:[%s1054_s3 + $0x120] sm:$0xff] %v640_v42  ;;  %v642_v46 = vadd.f32 %v641_v45, %v126_v8  ;;  %745 = vst [vmem:[%s1054_s3 + $0x130] sm:$0xff] %v701_v44  ;;  %v703_v48 = vadd.f32 %v702_v47, %v134_v10 }
 0x125   :  { %v643_v49 = vpop.f32.mrf.mxu0  ;;  %v704_v50 = vpop.f32.mrf.mxu1 }
 0x126   :  { %744 = vst [vmem:[%s1054_s3 + $0x128] sm:$0xff] %v642_v46  ;;  %746 = vst [vmem:[%s1054_s3 + $0x138] sm:$0xff] %v703_v48 }
 0x127   :  { %v644_v51 = vpop.f32.mrf.mxu0  ;;  %v705_v52 = vpop.f32.mrf.mxu1 }
 0x128   :  { %751 = vsyncpa [#allocation3], 1 }

// kernel: _encoder_forward.21
= control target key start
LH: loop header
LB: loop body
LE: loop exit
PB: predicated region body
PF: predicated region fallthrough
CT: control target
= control target key end

     0   :  { %v278_v0 = vmov 0.0   ;;  %vm279_vm0 = vmmov 0   ;;  %vm54_vm1 = vcmask 261120   ;;  %vm122_vm2 = vcmask 523264   ;;  %s281_s18 = smov 32   ;;  %s362_s3 = inlined_call_operand.vmem [shape: bf16[64,128], index: 3, kind: input, shape index: {}]   ;;  %s363_s4 = inlined_call_operand.vmem [shape: bf16[32,128], index: 4, kind: input, shape index: {}]   ;;  %s364_s1 = inlined_call_operand.vmem [shape: f32[8,32], index: 1, kind: input, shape index: {}, may-alias: {1,2}]   ;;  %s365_s0 = inlined_call_operand.vmem [shape: f32[8,64], index: 0, kind: input, shape index: {}]   ;;  %s366_s5 = inlined_call_operand.vmem [shape: f32[1,128], index: 5, kind: input, shape index: {}]   ;;  %s367_s2 = inlined_call_operand.vmem [shape: f32[8,32], index: 2, kind: input, shape index: {}, may-alias: {1,2}]   ;;  %s368_s7 = inlined_call_operand.vmem [shape: f32[8,32], index: 7, kind: output, shape index: {1}]   ;;  %s369_s6 = inlined_call_operand.vmem [shape: f32[8,32], index: 6, kind: output, shape index: {0}]  }
   0x1   :  { %247 = vmatprep.subr.bf16.mxu1 %v278_v0  ;;  %v264_v1 = vld [vmem:[%s362_s3 + $0x18] sm:$0xff]   ;;  %239 = vmatprep.subr.bf16.mxu0 %v278_v0  ;;  %v265_v2 = vld [vmem:[%s363_s4 + $0x8] sm:$0xff]   ;;  %v266_v3 = vld [vmem:[%s362_s3 + $0x10] sm:$0xff]  }
   0x2   :  { %243 = vmatprep.mubr.msk.bf16.mxu0 %vm279_vm0, %v278_v0  ;;  %255 = vmatprep.mubr.msk.bf16.mxu1 %vm279_vm0, %v278_v0  ;;  %v267_v4 = vld [vmem:[%s363_s4] sm:$0xff]   ;;  %v268_v6 = vld [vmem:[%s362_s3 + $0x8] sm:$0xff]  }
   0x3   :  { %248 = vmatpush3.bf16.msra.mxu1 %v264_v1  ;;  %240 = vmatpush3.bf16.msra.mxu0 %v265_v2  ;;  %v28_v5 = vld [vmem:[%s364_s1] sm:$0xff] }
   0x4   :  { %249 = vmatprep.subr.bf16.mxu1 %v278_v0  ;;  %241 = vmatprep.subr.bf16.mxu0 %v278_v0  ;;  %v37_v7 = vpack.c.bf16 %v28_v5, %v28_v5  ;;  %v269_v8 = vld [vmem:[%s362_s3] sm:$0xff]  }
   0x5   :  { %v26_v9 = vld [vmem:[%s365_s0] sm:$0xff]  ;;  %s280_s0 = smov 64  }
   0x6   :  { %v27_v10 = vpack.c.bf16 %v26_v9, %v26_v9  ;;  %v229_v16 = vld [vmem:[%s366_s5] ss:$0 sm:$0xff]  ;;  %s282_s5 = smov 96  }
   0x7   :  { %250 = vmatpush3.bf16.msra.mxu1 %v266_v3  ;;  %242 = vmatpush3.bf16.msra.mxu0 %v267_v4  ;;  %v181_v23 = vld [vmem:[%s367_s2] sm:$0xff] }
   0x8   :  { %251 = vmatprep.subr.bf16.mxu1 %v278_v0 }
   0xa   :  { %244 = vmatmul.mubr.msk.bf16.vlgmr.msra.gmra.mxu0 %vm54_vm1, %v37_v7 }
   0xb   :  { %252 = vmatpush3.bf16.msra.mxu1 %v268_v6 }
   0xc   :  { %253 = vmatprep.subr.bf16.mxu1 %v278_v0 }
   0xf   :  { %254 = vmatpush3.bf16.msra.mxu1 %v269_v8 }
  0x12   :  { %256 = vmatmul.mubr.msk.bf16.vlgmr.msra.gmra.mxu1 %vm122_vm2, %v27_v10 }
  0xca   :  { %v92_v11 = vpop.f32.mrf.mxu0 }
  0xcc   :  { %v245_v12 = vpop.f32.mrf.mxu0 }
  0xce   :  { %v95_v13 = vpop.f32.mrf.mxu0 }
  0xd0   :  { %v246_v14 = vpop.f32.mrf.mxu0 }
  0xd2   :  { %v160_v15 = vpop.f32.mrf.mxu1 }
  0xd3   :  { %v161_v17 = vadd.f32 %v160_v15, %v92_v11 }
  0xd4   :  { %v257_v18 = vpop.f32.mrf.mxu1 }
  0xd5   :  { %v173_v19 = vadd.f32 %v229_v16, %v161_v17 }
  0xd6   :  { %v163_v20 = vpop.f32.mrf.mxu1 }
  0xd7   :  { %270 = vtanh.f32 %v173_v19  ;;  %v230_v24 = vmul.f32 -1.442695, %v173_v19 }
  0xd8   :  { %v258_v21 = vpop.f32.mrf.mxu1 }
  0xd9   :  { %272 = vpow2.f32 %v230_v24 }
  0xe4   :  { %v271_v22 = vpop.eup %270 }
  0xe5   :  { %188 = vrot.lane.b32.xlu0 %v271_v22, %s280_s0 }
  0xe6   :  { %v273_v25 = vpop.eup %272 }
  0xe7   :  { %v177_v26 = vadd.f32 1.0, %v273_v25 }
  0xe9   :  { %183 = vrot.lane.b32.xlu0 %v181_v23, %s281_s18  ;;  %274 = vrcp.f32 %v177_v26 }
  0xf6   :  { %v275_v27 = vpop.eup %274 }
 0x157   :  { %v189_v28 = vpop.permute.xlu0 %188 }
 0x158   :  { %v191_v29 = vmul.f32 %v275_v27, %v189_v28 }
 0x15a   :  { %193 = vrot.lane.b32.xlu1 %v191_v29, %s281_s18 }
 0x15b   :  { %v184_v30 = vpop.permute.xlu0 %183 }
 0x15c   :  { %v186_v31 = vmul.f32 %v275_v27, %v184_v30 }
 0x1cc   :  { %v194_v32 = vpop.permute.xlu1 %193 }
 0x1cd   :  { %v196_v33 = vadd.f32 %v194_v32, %v186_v31 }
 0x1cf   :  { %276 = vtanh.f32 %v196_v33 }
 0x1dc   :  { %v277_v34 = vpop.eup %276 }
 0x1dd   :  { %199 = vrot.lane.b32.xlu1 %v277_v34, %s280_s0 }
 0x1e1   :  { %209 = vrot.lane.b32.xlu1 %v196_v33, %s282_s5 }
 0x24f   :  { %v200_v35 = vpop.permute.xlu1 %199 }
 0x250   :  { %v202_v36 = vmul.f32 %v275_v27, %v200_v35 }
 0x252   :  { %204 = vrot.lane.b32.xlu0 %v202_v36, %s281_s18 }
 0x253   :  { %v210_v37 = vpop.permute.xlu1 %209 }
 0x254   :  { %212 = vst.msk [vmem:[%s368_s7] sm:$0xff] %vm54_vm1, %v210_v37 }
 0x2c4   :  { %v205_v38 = vpop.permute.xlu0 %204 }
 0x2c5   :  { %207 = vst.msk [vmem:[%s369_s6] sm:$0xff] %vm54_vm1, %v205_v38 }

// kernel: _encoder_forward.15
= control target key start
LH: loop header
LB: loop body
LE: loop exit
PB: predicated region body
PF: predicated region fallthrough
CT: control target
= control target key end

     0   :  { %v176_v0 = vlaneseq  ;;  %vm1096_vm0 = vcmask 261120   ;;  %vm1657_vm1 = vcmask 1041409   ;;  %vm1659_vm2 = vcmask 1042434   ;;  %s2701_s0 = inlined_call_operand.vmem [shape: f32[40,32], index: 0, kind: input, shape index: {}]   ;;  %s2702_s1 = inlined_call_operand.vmem [shape: f32[40,32,32], index: 1, kind: input, shape index: {}]   ;;  %s2703_s2 = inlined_call_operand.vmem [shape: f32[40,32], index: 2, kind: output, shape index: {}]  }
   0x1   :  { %v11_v2 = vld [vmem:[%s2701_s0] sm:$0xff]  ;;  %v12_v19 = vld [vmem:[%s2701_s0 + $0x8] sm:$0xff]  ;;  %v1771_v32 = vld [vmem:[%s2701_s0 + $0x10] sm:$0xff]  ;;  %vm1661_vm3 = vcmask 1043459   ;;  %vm1663_vm4 = vcmask 1044484   ;;  %vm1665_vm5 = vcmask 1045509  }
   0x2   :  { %v177_v1 = vshrl.u32 %v176_v0, 7  ;;  %v18_v46 = vld [vmem:[%s2702_s1 + $0x10] sm:$0xff]  ;;  %v17_v47 = vld [vmem:[%s2702_s1 + $0x8] sm:$0xff]  ;;  %v20_v51 = vld [vmem:[%s2702_s1 + $0x20] sm:$0xff]  ;;  %vm1667_vm6 = vcmask 1046534   ;;  %vm1669_vm7 = vcmask 1047559  }
   0x3   :  { %v21_v50 = vld [vmem:[%s2702_s1 + $0x28] sm:$0xff]  ;;  %v16_v53 = vld [vmem:[%s2702_s1] sm:$0xff]  ;;  %v22_v57 = vld [vmem:[%s2702_s1 + $0x30] sm:$0xff] }
   0x4   :  { %v1731_v3 = vsub.s32 0, %v177_v1  ;;  %v1734_v5 = vsub.s32 1, %v177_v1  ;;  %v1737_v7 = vsub.s32 2, %v177_v1  ;;  %v1740_v9 = vsub.s32 3, %v177_v1  ;;  %v25_v54 = vld [vmem:[%s2702_s1 + $0x48] sm:$0xff]  ;;  %v24_v55 = vld [vmem:[%s2702_s1 + $0x40] sm:$0xff] }
   0x5   :  { %v1743_v11 = vsub.s32 4, %v177_v1  ;;  %v1746_v13 = vsub.s32 5, %v177_v1  ;;  %v1749_v15 = vsub.s32 6, %v177_v1  ;;  %v1752_v17 = vsub.s32 7, %v177_v1  ;;  %v26_v60 = vld [vmem:[%s2702_s1 + $0x50] sm:$0xff]  ;;  %v29_v61 = vld [vmem:[%s2702_s1 + $0x68] sm:$0xff] }
   0x6   :  { %v179_v4 = vrot.slane %v11_v2, %v1731_v3  ;;  %v198_v6 = vrot.slane %v11_v2, %v1734_v5  ;;  %v217_v8 = vrot.slane %v11_v2, %v1737_v7  ;;  %v236_v10 = vrot.slane %v11_v2, %v1740_v9  ;;  %v28_v62 = vld [vmem:[%s2702_s1 + $0x60] sm:$0xff] }
   0x7   :  { %v255_v12 = vrot.slane %v11_v2, %v1743_v11  ;;  %v274_v14 = vrot.slane %v11_v2, %v1746_v13  ;;  %v293_v16 = vrot.slane %v11_v2, %v1749_v15  ;;  %v312_v18 = vrot.slane %v11_v2, %v1752_v17 }
   0x8   :  { %189 = vbcast.lane.b32.xlu1 %v179_v4, 272  ;;  %181 = vbcast.lane.b32.xlu0 %v179_v4, 256  ;;  %v331_v20 = vrot.slane %v12_v19, %v1731_v3  ;;  %v350_v21 = vrot.slane %v12_v19, %v1734_v5  ;;  %v369_v22 = vrot.slane %v12_v19, %v1737_v7 }
   0x9   :  { %v388_v23 = vrot.slane %v12_v19, %v1740_v9  ;;  %v407_v24 = vrot.slane %v12_v19, %v1743_v11  ;;  %v426_v25 = vrot.slane %v12_v19, %v1746_v13  ;;  %v445_v26 = vrot.slane %v12_v19, %v1749_v15 }
   0xa   :  { %v464_v29 = vrot.slane %v12_v19, %v1752_v17  ;;  %v483_v35 = vrot.slane %v1771_v32, %v1731_v3  ;;  %v502_v40 = vrot.slane %v1771_v32, %v1734_v5  ;;  %v521_v45 = vrot.slane %v1771_v32, %v1737_v7  ;;  %v19_v19 = vld [vmem:[%s2702_s1 + $0x18] sm:$0xff] }
   0xc   :  { %193 = vbcast.lane.b32.xlu1 %v179_v4, 280  ;;  %185 = vbcast.lane.b32.xlu0 %v179_v4, 264 }
  0x10   :  { %204 = vbcast.lane.b32.xlu1 %v198_v6, 264  ;;  %200 = vbcast.lane.b32.xlu0 %v198_v6, 256 }
  0x14   :  { %212 = vbcast.lane.b32.xlu1 %v198_v6, 280  ;;  %208 = vbcast.lane.b32.xlu0 %v198_v6, 272  ;;  %v33_v6 = vld [vmem:[%s2702_s1 + $0x88] sm:$0xff] }
  0x18   :  { %223 = vbcast.lane.b32.xlu1 %v217_v8, 264  ;;  %219 = vbcast.lane.b32.xlu0 %v217_v8, 256 }
  0x1c   :  { %231 = vbcast.lane.b32.xlu1 %v217_v8, 280  ;;  %227 = vbcast.lane.b32.xlu0 %v217_v8, 272  ;;  %v32_v8 = vld [vmem:[%s2702_s1 + $0x80] sm:$0xff] }
  0x20   :  { %242 = vbcast.lane.b32.xlu1 %v236_v10, 264  ;;  %238 = vbcast.lane.b32.xlu0 %v236_v10, 256 }
  0x24   :  { %250 = vbcast.lane.b32.xlu1 %v236_v10, 280  ;;  %246 = vbcast.lane.b32.xlu0 %v236_v10, 272 }
  0x28   :  { %261 = vbcast.lane.b32.xlu1 %v255_v12, 264  ;;  %257 = vbcast.lane.b32.xlu0 %v255_v12, 256 }
  0x2c   :  { %269 = vbcast.lane.b32.xlu1 %v255_v12, 280  ;;  %265 = vbcast.lane.b32.xlu0 %v255_v12, 272 }
  0x30   :  { %280 = vbcast.lane.b32.xlu1 %v274_v14, 264  ;;  %276 = vbcast.lane.b32.xlu0 %v274_v14, 256 }
  0x34   :  { %288 = vbcast.lane.b32.xlu1 %v274_v14, 280  ;;  %284 = vbcast.lane.b32.xlu0 %v274_v14, 272  ;;  %v30_v14 = vld [vmem:[%s2702_s1 + $0x70] sm:$0xff] }
  0x38   :  { %299 = vbcast.lane.b32.xlu1 %v293_v16, 264  ;;  %295 = vbcast.lane.b32.xlu0 %v293_v16, 256 }
  0x3c   :  { %307 = vbcast.lane.b32.xlu1 %v293_v16, 280  ;;  %303 = vbcast.lane.b32.xlu0 %v293_v16, 272  ;;  %v540_v16 = vrot.slane %v1771_v32, %v1740_v9 }
  0x40   :  { %318 = vbcast.lane.b32.xlu1 %v312_v18, 264  ;;  %314 = vbcast.lane.b32.xlu0 %v312_v18, 256 }
  0x44   :  { %326 = vbcast.lane.b32.xlu1 %v312_v18, 280  ;;  %322 = vbcast.lane.b32.xlu0 %v312_v18, 272  ;;  %v1832_v18 = vrot.slane %v1771_v32, %v1743_v11 }
  0x48   :  { %337 = vbcast.lane.b32.xlu1 %v331_v20, 264  ;;  %333 = vbcast.lane.b32.xlu0 %v331_v20, 256 }
  0x4c   :  { %345 = vbcast.lane.b32.xlu1 %v331_v20, 280  ;;  %341 = vbcast.lane.b32.xlu0 %v331_v20, 272 }
  0x50   :  { %356 = vbcast.lane.b32.xlu1 %v350_v21, 264  ;;  %352 = vbcast.lane.b32.xlu0 %v350_v21, 256 }
  0x54   :  { %364 = vbcast.lane.b32.xlu1 %v350_v21, 280  ;;  %360 = vbcast.lane.b32.xlu0 %v350_v21, 272 }
  0x58   :  { %375 = vbcast.lane.b32.xlu1 %v369_v22, 264  ;;  %371 = vbcast.lane.b32.xlu0 %v369_v22, 256 }
  0x5c   :  { %383 = vbcast.lane.b32.xlu1 %v369_v22, 280  ;;  %379 = vbcast.lane.b32.xlu0 %v369_v22, 272 }
  0x60   :  { %394 = vbcast.lane.b32.xlu1 %v388_v23, 264  ;;  %390 = vbcast.lane.b32.xlu0 %v388_v23, 256 }
  0x64   :  { %402 = vbcast.lane.b32.xlu1 %v388_v23, 280  ;;  %398 = vbcast.lane.b32.xlu0 %v388_v23, 272 }
  0x68   :  { %413 = vbcast.lane.b32.xlu1 %v407_v24, 264  ;;  %409 = vbcast.lane.b32.xlu0 %v407_v24, 256 }
  0x6c   :  { %421 = vbcast.lane.b32.xlu1 %v407_v24, 280  ;;  %417 = vbcast.lane.b32.xlu0 %v407_v24, 272  ;;  %v34_v24 = vld [vmem:[%s2702_s1 + $0x90] sm:$0xff] }
  0x70   :  { %432 = vbcast.lane.b32.xlu1 %v426_v25, 264  ;;  %428 = vbcast.lane.b32.xlu0 %v426_v25, 256 }
  0x74   :  { %440 = vbcast.lane.b32.xlu1 %v426_v25, 280  ;;  %436 = vbcast.lane.b32.xlu0 %v426_v25, 272 }
  0x78   :  { %451 = vbcast.lane.b32.xlu1 %v445_v26, 264  ;;  %447 = vbcast.lane.b32.xlu0 %v445_v26, 256 }
  0x7a   :  { %v190_v27 = vpop.permute.xlu1 %189  ;;  %v182_v28 = vpop.permute.xlu0 %181 }
  0x7b   :  { %v938_v52 = vmul.f32 %v190_v27, %v18_v46  ;;  %v936_v1 = vmul.f32 %v182_v28, %v16_v53  ;;  %v31_v53 = vld [vmem:[%s2702_s1 + $0x78] sm:$0xff] }
  0x7c   :  { %459 = vbcast.lane.b32.xlu1 %v445_v26, 280  ;;  %455 = vbcast.lane.b32.xlu0 %v445_v26, 272 }
  0x7d   :  { %v1100_v10 = vsel %vm1096_vm0, %v938_v52, 0.0 }
  0x7e   :  { %v1766_v30 = vpop.permute.xlu1 %193  ;;  %v186_v31 = vpop.permute.xlu0 %185 }
  0x7f   :  { %v937_v56 = vmul.f32 %v186_v31, %v17_v47  ;;  %v27_v47 = vld [vmem:[%s2702_s1 + $0x58] sm:$0xff] }
  0x80   :  { %470 = vbcast.lane.b32.xlu1 %v464_v29, 264  ;;  %466 = vbcast.lane.b32.xlu0 %v464_v29, 256 }
  0x81   :  { %v1098_v20 = vsel %vm1096_vm0, %v937_v56, 0.0 }
  0x82   :  { %v205_v33 = vpop.permute.xlu1 %204  ;;  %v201_v34 = vpop.permute.xlu0 %200 }
  0x83   :  { %v941_v58 = vmul.f32 %v205_v33, %v21_v50  ;;  %v940_v59 = vmul.f32 %v201_v34, %v20_v51  ;;  %v1097_v33 = vsel %vm1096_vm0, %v936_v1, 0.0  ;;  %v23_v34 = vld [vmem:[%s2702_s1 + $0x38] sm:$0xff] }
  0x84   :  { %478 = vbcast.lane.b32.xlu1 %v464_v29, 280  ;;  %474 = vbcast.lane.b32.xlu0 %v464_v29, 272 }
  0x85   :  { %v1111_v25 = vsel %vm1096_vm0, %v941_v58, 0.0  ;;  %v1110_v26 = vsel %vm1096_vm0, %v940_v59, 0.0 }
  0x86   :  { %v1775_v36 = vpop.permute.xlu1 %212  ;;  %v209_v37 = vpop.permute.xlu0 %208  ;;  %v1112_v46 = vadd.f32 %v1111_v25, %v1110_v26 }
  0x87   :  { %v942_v12 = vmul.f32 %v209_v37, %v22_v57  ;;  %v943_v51 = vmul.f32 %v1775_v36, %v23_v34 }
  0x88   :  { %489 = vbcast.lane.b32.xlu1 %v483_v35, 264  ;;  %485 = vbcast.lane.b32.xlu0 %v483_v35, 256 }
  0x8a   :  { %v224_v38 = vpop.permute.xlu1 %223  ;;  %v220_v39 = vpop.permute.xlu0 %219 }
  0x8b   :  { %v945_v2 = vmul.f32 %v224_v38, %v25_v54  ;;  %v944_v4 = vmul.f32 %v220_v39, %v24_v55  ;;  %v939_v39 = vmul.f32 %v1766_v30, %v19_v19 }
  0x8c   :  { %497 = vbcast.lane.b32.xlu1 %v483_v35, 280  ;;  %493 = vbcast.lane.b32.xlu0 %v483_v35, 272 }
  0x8d   :  { %v1124_v35 = vsel %vm1096_vm0, %v945_v2, 0.0  ;;  %v1123_v37 = vsel %vm1096_vm0, %v944_v4, 0.0  ;;  %v39_v2 = vld [vmem:[%s2702_s1 + $0xb8] sm:$0xff]  ;;  %v38_v4 = vld [vmem:[%s2702_s1 + $0xb0] sm:$0xff] }
  0x8e   :  { %v1779_v41 = vpop.permute.xlu1 %231  ;;  %v228_v42 = vpop.permute.xlu0 %227  ;;  %v1125_v52 = vadd.f32 %v1124_v35, %v1123_v37 }
  0x8f   :  { %v946_v21 = vmul.f32 %v228_v42, %v26_v60  ;;  %v1113_v42 = vsel %vm1096_vm0, %v942_v12, 0.0  ;;  %v35_v60 = vld [vmem:[%s2702_s1 + $0x98] sm:$0xff] }
  0x90   :  { %508 = vbcast.lane.b32.xlu1 %v502_v40, 264  ;;  %504 = vbcast.lane.b32.xlu0 %v502_v40, 256  ;;  %v1114_v58 = vadd.f32 %v1113_v42, %v1112_v46 }
  0x91   :  { %v1126_v30 = vsel %vm1096_vm0, %v946_v21, 0.0 }
  0x92   :  { %v243_v43 = vpop.permute.xlu1 %242  ;;  %v239_v44 = vpop.permute.xlu0 %238 }
  0x93   :  { %v949_v22 = vmul.f32 %v243_v43, %v29_v61  ;;  %v948_v23 = vmul.f32 %v239_v44, %v28_v62  ;;  %v37_v44 = vld [vmem:[%s2702_s1 + $0xa8] sm:$0xff]  ;;  %v947_v62 = vmul.f32 %v1779_v41, %v27_v47 }
  0x94   :  { %516 = vbcast.lane.b32.xlu1 %v502_v40, 280  ;;  %512 = vbcast.lane.b32.xlu0 %v502_v40, 272  ;;  %v1099_v40 = vadd.f32 %v1098_v20, %v1097_v33 }
  0x95   :  { %v1136_v50 = vsel %vm1096_vm0, %v948_v23, 0.0 }
  0x96   :  { %v1789_v48 = vpop.permute.xlu1 %250  ;;  %v247_v49 = vpop.permute.xlu0 %246 }
  0x97   :  { %v950_v38 = vmul.f32 %v247_v49, %v30_v14  ;;  %v1137_v49 = vsel %vm1096_vm0, %v949_v22, 0.0  ;;  %v1101_v14 = vadd.f32 %v1100_v10, %v1099_v40  ;;  %v1115_v22 = vsel %vm1096_vm0, %v943_v51, 0.0  ;;  %v40_v10 = vld [vmem:[%s2702_s1 + $0xc0] sm:$0xff] }
  0x98   :  { %527 = vbcast.lane.b32.xlu1 %v521_v45, 264  ;;  %523 = vbcast.lane.b32.xlu0 %v521_v45, 256  ;;  %v1116_v26 = vadd.f32 %v1115_v22, %v1114_v58  ;;  %v578_v51 = vrot.slane %v1771_v32, %v1746_v13 }
  0x99   :  { %v1139_v59 = vsel %vm1096_vm0, %v950_v38, 0.0 }
  0x9a   :  { %v262_v63 = vpop.permute.xlu1 %261  ;;  %v258_v0 = vpop.permute.xlu0 %257 }
  0x9b   :  { %v953_v27 = vmul.f32 %v262_v63, %v33_v6  ;;  %v952_v28 = vmul.f32 %v258_v0, %v32_v8  ;;  %v1127_v63 = vadd.f32 %v1126_v30, %v1125_v52  ;;  %v1138_v0 = vadd.f32 %v1137_v49, %v1136_v50  ;;  %v42_v50 = vld [vmem:[%s2702_s1 + $0xd0] sm:$0xff] }
  0x9c   :  { %535 = vbcast.lane.b32.xlu1 %v521_v45, 280  ;;  %531 = vbcast.lane.b32.xlu0 %v521_v45, 272  ;;  %v36_v45 = vld [vmem:[%s2702_s1 + $0xa0] sm:$0xff]  ;;  %v951_v6 = vmul.f32 %v1789_v48, %v31_v53  ;;  %v41_v48 = vld [vmem:[%s2702_s1 + $0xc8] sm:$0xff]  ;;  %v1117_v30 = vrot.slane %v1116_v26, 4 }
  0x9d   :  { %v1150_v54 = vsel %vm1096_vm0, %v953_v27, 0.0  ;;  %v1149_v55 = vsel %vm1096_vm0, %v952_v28, 0.0  ;;  %v1140_v19 = vadd.f32 %v1139_v59, %v1138_v0  ;;  %v1128_v27 = vsel %vm1096_vm0, %v947_v62, 0.0  ;;  %v44_v0 = vld [vmem:[%s2702_s1 + $0xe0] sm:$0xff] }
  0x9e   :  { %v270_v29 = vpop.permute.xlu1 %269  ;;  %v266_v31 = vpop.permute.xlu0 %265  ;;  %v1151_v8 = vadd.f32 %v1150_v54, %v1149_v55  ;;  %v1141_v33 = vsel %vm1096_vm0, %v951_v6, 0.0 }
  0x9f   :  { %v954_v43 = vmul.f32 %v266_v31, %v34_v24  ;;  %v955_v20 = vmul.f32 %v270_v29, %v35_v60  ;;  %v1102_v29 = vsel %vm1096_vm0, %v939_v39, 0.0  ;;  %v1129_v31 = vadd.f32 %v1128_v27, %v1127_v63  ;;  %v43_v39 = vld [vmem:[%s2702_s1 + $0xd8] sm:$0xff]  ;;  %v45_v63 = vld [vmem:[%s2702_s1 + $0xe8] sm:$0xff] }
  0xa0   :  { %546 = vbcast.lane.b32.xlu1 %v540_v16, 264  ;;  %542 = vbcast.lane.b32.xlu0 %v540_v16, 256  ;;  %v1103_v35 = vadd.f32 %v1102_v29, %v1101_v14  ;;  %v1142_v37 = vadd.f32 %v1141_v33, %v1140_v19 }
  0xa1   :  { %v1152_v1 = vsel %vm1096_vm0, %v954_v43, 0.0  ;;  %v1154_v38 = vsel %vm1096_vm0, %v955_v20, 0.0  ;;  %v1130_v52 = vrot.slane %v1129_v31, 4 }
  0xa2   :  { %v281_v56 = vpop.permute.xlu1 %280  ;;  %v277_v57 = vpop.permute.xlu0 %276  ;;  %v1153_v23 = vadd.f32 %v1152_v1, %v1151_v8  ;;  %v1104_v55 = vrot.slane %v1103_v35, 4 }
  0xa3   :  { %v957_v61 = vmul.f32 %v281_v56, %v37_v44  ;;  %v956_v36 = vmul.f32 %v277_v57, %v36_v45  ;;  %v1143_v56 = vrot.slane %v1142_v37, 4  ;;  %v1131_v1 = vadd.f32 %v1130_v52, %v1129_v31 }
  0xa4   :  { %554 = vbcast.lane.b32.xlu1 %v540_v16, 280  ;;  %550 = vbcast.lane.b32.xlu0 %v540_v16, 272  ;;  %v1155_v44 = vadd.f32 %v1154_v38, %v1153_v23 }
  0xa5   :  { %v1163_v12 = vsel %vm1096_vm0, %v957_v61, 0.0  ;;  %v1162_v41 = vsel %vm1096_vm0, %v956_v36, 0.0  ;;  %v1118_v61 = vadd.f32 %v1117_v30, %v1116_v26  ;;  %v1144_v6 = vadd.f32 %v1143_v56, %v1142_v37 }
  0xa6   :  { %v289_v21 = vpop.permute.xlu1 %288  ;;  %v285_v16 = vpop.permute.xlu0 %284  ;;  %v1164_v28 = vadd.f32 %v1163_v12, %v1162_v41  ;;  %v1156_v58 = vrot.slane %v1155_v44, 4  ;;  %v597_v26 = vrot.slane %v1771_v32, %v1749_v15  ;;  %v1132_v27 = vrot.slane %v1131_v1, 2 }
  0xa7   :  { %v959_v24 = vmul.f32 %v289_v21, %v39_v2  ;;  %v958_v25 = vmul.f32 %v285_v16, %v38_v4  ;;  %v1105_v4 = vadd.f32 %v1104_v55, %v1103_v35  ;;  %v1119_v16 = vrot.slane %v1118_v61, 2 }
  0xa8   :  { %565 = vbcast.lane.b32.xlu1 %v1832_v18, 264  ;;  %561 = vbcast.lane.b32.xlu0 %v1832_v18, 256  ;;  %v1157_v14 = vadd.f32 %v1156_v58, %v1155_v44  ;;  %v1145_v29 = vrot.slane %v1144_v6, 2 }
  0xa9   :  { %v1165_v34 = vsel %vm1096_vm0, %v958_v25, 0.0  ;;  %v1167_v45 = vsel %vm1096_vm0, %v959_v24, 0.0  ;;  %v47_v24 = vld [vmem:[%s2702_s1 + $0xf8] sm:$0xff]  ;;  %v46_v25 = vld [vmem:[%s2702_s1 + $0xf0] sm:$0xff] }
  0xaa   :  { %v1166_v40 = vadd.f32 %v1165_v34, %v1164_v28  ;;  %v300_v42 = vpop.permute.xlu1 %299  ;;  %v296_v43 = vpop.permute.xlu0 %295  ;;  %v1158_v35 = vrot.slane %v1157_v14, 2  ;;  %v1146_v30 = vadd.f32 %v1145_v29, %v1144_v6 }
  0xab   :  { %v961_v46 = vmul.f32 %v300_v42, %v41_v48  ;;  %v960_v47 = vmul.f32 %v296_v43, %v40_v10  ;;  %v1106_v10 = vrot.slane %v1105_v4, 2 }
  0xac   :  { %v1168_v49 = vadd.f32 %v1167_v45, %v1166_v40  ;;  %573 = vbcast.lane.b32.xlu1 %v1832_v18, 280  ;;  %569 = vbcast.lane.b32.xlu0 %v1832_v18, 272  ;;  %v1120_v40 = vadd.f32 %v1119_v16, %v1118_v61  ;;  %v1133_v45 = vadd.f32 %v1132_v27, %v1131_v1 }
  0xad   :  { %v1176_v53 = vsel %vm1096_vm0, %v961_v46, 0.0  ;;  %v1175_v54 = vsel %vm1096_vm0, %v960_v47, 0.0  ;;  %v1107_v47 = vadd.f32 %v1106_v10, %v1105_v4  ;;  %v1159_v52 = vadd.f32 %v1158_v35, %v1157_v14  ;;  %v1944_v4 = vld [vmem:[%s2701_s0 + $0x18] sm:$0xff] }
  0xae   :  { %v308_v57 = vpop.permute.xlu1 %307  ;;  %v304_v18 = vpop.permute.xlu0 %303  ;;  %v1169_v36 = vrot.slane %v1168_v49, 4  ;;  %v1177_v62 = vadd.f32 %v1176_v53, %v1175_v54  ;;  %v1121_v54 = vrot.slane %v1120_v40, 1 }
  0xaf   :  { %v963_v59 = vmul.f32 %v308_v57, %v43_v39  ;;  %v962_v60 = vmul.f32 %v304_v18, %v42_v50  ;;  %v616_v57 = vrot.slane %v1771_v32, %v1752_v17  ;;  %v1134_v18 = vrot.slane %v1133_v45, 1 }
  0xb0   :  { %584 = vbcast.lane.b32.xlu1 %v578_v51, 264  ;;  %580 = vbcast.lane.b32.xlu0 %v578_v51, 256  ;;  %v1170_v22 = vadd.f32 %v1169_v36, %v1168_v49 }
  0xb1   :  { %v1178_v2 = vsel %vm1096_vm0, %v962_v60, 0.0  ;;  %v1180_v19 = vsel %vm1096_vm0, %v963_v59, 0.0  ;;  %v1108_v59 = vrot.slane %v1107_v47, 1  ;;  %v1147_v60 = vrot.slane %v1146_v30, 1 }
  0xb2   :  { %v1179_v8 = vadd.f32 %v1178_v2, %v1177_v62  ;;  %v319_v12 = vpop.permute.xlu1 %318  ;;  %v315_v41 = vpop.permute.xlu0 %314  ;;  %v1171_v42 = vrot.slane %v1170_v22, 2  ;;  %v1135_v32 = vadd.f32 %v1134_v18, %v1133_v45  ;;  %v673_v45 = vrot.slane %v1944_v4, %v1737_v7 }
  0xb3   :  { %v965_v20 = vmul.f32 %v319_v12, %v45_v63  ;;  %v964_v21 = vmul.f32 %v315_v41, %v44_v0  ;;  %v1160_v63 = vrot.slane %v1159_v52, 1  ;;  %v1122_v0 = vadd.f32 %v1121_v54, %v1120_v40 }
  0xb4   :  { %v1181_v23 = vadd.f32 %v1180_v19, %v1179_v8  ;;  %592 = vbcast.lane.b32.xlu1 %v578_v51, 280  ;;  %588 = vbcast.lane.b32.xlu0 %v578_v51, 272  ;;  %v1172_v55 = vadd.f32 %v1171_v42, %v1170_v22  ;;  %v1109_v8 = vadd.f32 %v1108_v59, %v1107_v47  ;;  %v48_v47 = vld [vmem:[%s2702_s1 + $0x100] sm:$0xff]  ;;  %v61_v59 = vld [vmem:[%s2702_s1 + $0x168] sm:$0xff] }
  0xb5   :  { %v1189_v28 = vsel %vm1096_vm0, %v965_v20, 0.0  ;;  %v1188_v48 = vsel %vm1096_vm0, %v964_v21, 0.0  ;;  %v1148_v12 = vadd.f32 %v1147_v60, %v1146_v30  ;;  %v1161_v20 = vadd.f32 %v1160_v63, %v1159_v52  ;;  %v52_v52 = vld [vmem:[%s2702_s1 + $0x120] sm:$0xff] }
  0xb6   :  { %v1182_v31 = vrot.slane %v1181_v23, 4  ;;  %v327_v33 = vpop.permute.xlu1 %326  ;;  %v323_v34 = vpop.permute.xlu0 %322  ;;  %v1190_v44 = vadd.f32 %v1189_v28, %v1188_v48  ;;  %v1173_v1 = vrot.slane %v1172_v55, 1  ;;  %v635_v21 = vrot.slane %v1944_v4, %v1731_v3  ;;  %v60_v60 = vld [vmem:[%s2702_s1 + $0x160] sm:$0xff] }
  0xb7   :  { %v967_v37 = vmul.f32 %v327_v33, %v47_v24  ;;  %v966_v38 = vmul.f32 %v323_v34, %v46_v25  ;;  %v1658_v16 = vsel %vm1657_vm1, %v1122_v0, %v1109_v8 }
  0xb8   :  { %v1183_v43 = vadd.f32 %v1182_v31, %v1181_v23  ;;  %603 = vbcast.lane.b32.xlu1 %v597_v26, 264  ;;  %599 = vbcast.lane.b32.xlu0 %v597_v26, 256  ;;  %v1174_v22 = vadd.f32 %v1173_v1, %v1172_v55  ;;  %v1660_v24 = vsel %vm1659_vm2, %v1135_v32, %v1658_v16  ;;  %v57_v55 = vld [vmem:[%s2702_s1 + $0x148] sm:$0xff]  ;;  %v64_v32 = vld [vmem:[%s2702_s1 + $0x180] sm:$0xff] }
  0xb9   :  { %v1191_v46 = vsel %vm1096_vm0, %v966_v38, 0.0  ;;  %v1193_v53 = vsel %vm1096_vm0, %v967_v37, 0.0  ;;  %v654_v38 = vrot.slane %v1944_v4, %v1734_v5 }
  0xba   :  { %v1184_v49 = vrot.slane %v1183_v43, 2  ;;  %v1192_v39 = vadd.f32 %v1191_v46, %v1190_v44  ;;  %v1930_v50 = vpop.permute.xlu1 %337  ;;  %v1932_v51 = vpop.permute.xlu0 %333  ;;  %v49_v46 = vld [vmem:[%s2702_s1 + $0x108] sm:$0xff] }
  0xbb   :  { %v968_v54 = vmul.f32 %v1932_v51, %v48_v47 }
  0xbc   :  { %v1194_v56 = vadd.f32 %v1193_v53, %v1192_v39  ;;  %611 = vbcast.lane.b32.xlu1 %v597_v26, 280  ;;  %607 = vbcast.lane.b32.xlu0 %v597_v26, 272  ;;  %v1185_v58 = vadd.f32 %v1184_v49, %v1183_v43  ;;  %v1662_v26 = vsel %vm1661_vm3, %v1148_v12, %v1660_v24  ;;  %v53_v39 = vld [vmem:[%s2702_s1 + $0x128] sm:$0xff] }
  0xbd   :  { %v1664_v10 = vsel %vm1663_vm4, %v1161_v20, %v1662_v26  ;;  %v969_v53 = vmul.f32 %v1930_v50, %v49_v46  ;;  %v54_v50 = vld [vmem:[%s2702_s1 + $0x130] sm:$0xff]  ;;  %v1201_v12 = vsel %vm1096_vm0, %v968_v54, 0.0  ;;  %v51_v20 = vld [vmem:[%s2702_s1 + $0x118] sm:$0xff] }
  0xbe   :  { %v1195_v61 = vrot.slane %v1194_v56, 4  ;;  %v1937_v36 = vpop.permute.xlu1 %345  ;;  %v1939_v62 = vpop.permute.xlu0 %341  ;;  %v1186_v6 = vrot.slane %v1185_v58, 1  ;;  %v1666_v29 = vsel %vm1665_vm5, %v1174_v22, %v1664_v10  ;;  %v63_v54 = vld [vmem:[%s2702_s1 + $0x178] sm:$0xff] }
  0xbf   :  { %v1202_v8 = vsel %vm1096_vm0, %v969_v53, 0.0 }
  0xc0   :  { %v1196_v2 = vadd.f32 %v1195_v61, %v1194_v56  ;;  %622 = vbcast.lane.b32.xlu1 %v616_v57, 264  ;;  %618 = vbcast.lane.b32.xlu0 %v616_v57, 256  ;;  %v1187_v25 = vadd.f32 %v1186_v6, %v1185_v58  ;;  %v56_v56 = vld [vmem:[%s2702_s1 + $0x140] sm:$0xff]  ;;  %v58_v58 = vld [vmem:[%s2702_s1 + $0x150] sm:$0xff]  ;;  %v692_v6 = vrot.slane %v1944_v4, %v1740_v9 }
  0xc2   :  { %v1197_v41 = vrot.slane %v1196_v2, 2  ;;  %v357_v14 = vpop.permute.xlu1 %356  ;;  %v353_v19 = vpop.permute.xlu0 %352  ;;  %v1668_v33 = vsel %vm1667_vm6, %v1187_v25, %v1666_v29  ;;  %v1203_v29 = vadd.f32 %v1202_v8, %v1201_v12 }
  0xc3   :  { %v973_v18 = vmul.f32 %v357_v14, %v53_v39  ;;  %v972_v51 = vmul.f32 %v353_v19, %v52_v52  ;;  %v62_v19 = vld [vmem:[%s2702_s1 + $0x170] sm:$0xff] }
  0xc4   :  { %v1198_v23 = vadd.f32 %v1197_v41, %v1196_v2  ;;  %630 = vbcast.lane.b32.xlu1 %v616_v57, 280  ;;  %626 = vbcast.lane.b32.xlu0 %v616_v57, 272  ;;  %v50_v57 = vld [vmem:[%s2702_s1 + $0x110] sm:$0xff]  ;;  %v65_v2 = vld [vmem:[%s2702_s1 + $0x188] sm:$0xff] }
  0xc5   :  { %v970_v41 = vmul.f32 %v1939_v62, %v50_v57  ;;  %v2026_v62 = vrot.slane %v1944_v4, %v1743_v11  ;;  %v1215_v24 = vsel %vm1096_vm0, %v973_v18, 0.0  ;;  %v1214_v25 = vsel %vm1096_vm0, %v972_v51, 0.0 }
  0xc6   :  { %v1199_v27 = vrot.slane %v1198_v23, 1  ;;  %v1951_v28 = vpop.permute.xlu1 %364  ;;  %v361_v48 = vpop.permute.xlu0 %360  ;;  %v1216_v46 = vadd.f32 %v1215_v24, %v1214_v25 }
  0xc7   :  { %v974_v14 = vmul.f32 %v361_v48, %v54_v50 }
  0xc8   :  { %v1200_v31 = vadd.f32 %v1199_v27, %v1198_v23  ;;  %641 = vbcast.lane.b32.xlu1 %v635_v21, 264  ;;  %637 = vbcast.lane.b32.xlu0 %v635_v21, 256  ;;  %v66_v23 = vld [vmem:[%s2702_s1 + $0x190] sm:$0xff] }
  0xca   :  { %v1670_v34 = vsel %vm1669_vm7, %v1200_v31, %v1668_v33  ;;  %v376_v35 = vpop.permute.xlu1 %375  ;;  %v372_v37 = vpop.permute.xlu0 %371  ;;  %v55_v31 = vld [vmem:[%s2702_s1 + $0x138] sm:$0xff] }
  0xcb   :  { %1704 = vst.msk [vmem:[%s2703_s2] sm:$0xff] %vm1096_vm0, %v1670_v34  ;;  %v977_v0 = vmul.f32 %v376_v35, %v57_v55  ;;  %v976_v1 = vmul.f32 %v372_v37, %v56_v56  ;;  %v971_v37 = vmul.f32 %v1937_v36, %v51_v20  ;;  %v59_v36 = vld [vmem:[%s2702_s1 + $0x158] sm:$0xff]  ;;  %v975_v52 = vmul.f32 %v1951_v28, %v55_v31 }
  0xcc   :  { %649 = vbcast.lane.b32.xlu1 %v635_v21, 280  ;;  %645 = vbcast.lane.b32.xlu0 %v635_v21, 272 }
  0xcd   :  { %v1228_v33 = vsel %vm1096_vm0, %v977_v0, 0.0  ;;  %v1227_v34 = vsel %vm1096_vm0, %v976_v1, 0.0  ;;  %v71_v1 = vld [vmem:[%s2702_s1 + $0x1b8] sm:$0xff] }
  0xce   :  { %v1963_v40 = vpop.permute.xlu1 %383  ;;  %v380_v42 = vpop.permute.xlu0 %379  ;;  %v1229_v53 = vadd.f32 %v1228_v33, %v1227_v34  ;;  %v2087_v33 = vld [vmem:[%s2701_s0 + $0x20] sm:$0xff] }
  0xcf   :  { %v978_v21 = vmul.f32 %v380_v42, %v58_v58  ;;  %v1217_v42 = vsel %vm1096_vm0, %v974_v14, 0.0  ;;  %v67_v58 = vld [vmem:[%s2702_s1 + $0x198] sm:$0xff] }
  0xd0   :  { %660 = vbcast.lane.b32.xlu1 %v654_v38, 264  ;;  %656 = vbcast.lane.b32.xlu0 %v654_v38, 256  ;;  %v1218_v18 = vadd.f32 %v1217_v42, %v1216_v46 }
  0xd1   :  { %v1230_v47 = vsel %vm1096_vm0, %v978_v21, 0.0  ;;  %v1219_v21 = vsel %vm1096_vm0, %v975_v52, 0.0  ;;  %v74_v52 = vld [vmem:[%s2702_s1 + $0x1d0] sm:$0xff] }
  0xd2   :  { %v395_v43 = vpop.permute.xlu1 %394  ;;  %v391_v44 = vpop.permute.xlu0 %390  ;;  %v1220_v24 = vadd.f32 %v1219_v21, %v1218_v18 }
  0xd3   :  { %v981_v16 = vmul.f32 %v395_v43, %v61_v59  ;;  %v980_v22 = vmul.f32 %v391_v44, %v60_v60  ;;  %v69_v44 = vld [vmem:[%s2702_s1 + $0x1a8] sm:$0xff]  ;;  %v979_v60 = vmul.f32 %v1963_v40, %v59_v36 }
  0xd4   :  { %668 = vbcast.lane.b32.xlu1 %v654_v38, 280  ;;  %664 = vbcast.lane.b32.xlu0 %v654_v38, 272  ;;  %v1204_v38 = vsel %vm1096_vm0, %v970_v41, 0.0 }
  0xd5   :  { %v1240_v39 = vsel %vm1096_vm0, %v980_v22, 0.0  ;;  %v1205_v41 = vadd.f32 %v1204_v38, %v1203_v29  ;;  %v1232_v25 = vsel %vm1096_vm0, %v979_v60, 0.0 }
  0xd6   :  { %v1973_v30 = vpop.permute.xlu1 %402  ;;  %v399_v49 = vpop.permute.xlu0 %398 }
  0xd7   :  { %v982_v35 = vmul.f32 %v399_v49, %v62_v19  ;;  %v1241_v49 = vsel %vm1096_vm0, %v981_v16, 0.0 }
  0xd8   :  { %679 = vbcast.lane.b32.xlu1 %v673_v45, 264  ;;  %675 = vbcast.lane.b32.xlu0 %v673_v45, 256 }
  0xd9   :  { %v1243_v51 = vsel %vm1096_vm0, %v982_v35, 0.0 }
  0xda   :  { %v414_v61 = vpop.permute.xlu1 %413  ;;  %v410_v63 = vpop.permute.xlu0 %409 }
  0xdb   :  { %v985_v26 = vmul.f32 %v414_v61, %v65_v2  ;;  %v984_v27 = vmul.f32 %v410_v63, %v64_v32  ;;  %v1231_v61 = vadd.f32 %v1230_v47, %v1229_v53  ;;  %v1242_v63 = vadd.f32 %v1241_v49, %v1240_v39  ;;  %v70_v2 = vld [vmem:[%s2702_s1 + $0x1b0] sm:$0xff]  ;;  %v75_v39 = vld [vmem:[%s2702_s1 + $0x1d8] sm:$0xff] }
  0xdc   :  { %687 = vbcast.lane.b32.xlu1 %v673_v45, 280  ;;  %683 = vbcast.lane.b32.xlu0 %v673_v45, 272  ;;  %v68_v45 = vld [vmem:[%s2702_s1 + $0x1a0] sm:$0xff]  ;;  %v983_v32 = vmul.f32 %v1973_v30, %v63_v54  ;;  %v73_v30 = vld [vmem:[%s2702_s1 + $0x1c8] sm:$0xff]  ;;  %v1221_v47 = vrot.slane %v1220_v24, 4  ;;  %v2101_v53 = vrot.slane %v2087_v33, %v1731_v3  ;;  %v2105_v54 = vrot.slane %v1944_v4, %v1746_v13 }
  0xdd   :  { %v1254_v55 = vsel %vm1096_vm0, %v985_v26, 0.0  ;;  %v1253_v56 = vsel %vm1096_vm0, %v984_v27, 0.0  ;;  %v1244_v14 = vadd.f32 %v1243_v51, %v1242_v63  ;;  %v72_v27 = vld [vmem:[%s2702_s1 + $0x1c0] sm:$0xff]  ;;  %v77_v63 = vld [vmem:[%s2702_s1 + $0x1e8] sm:$0xff] }
  0xde   :  { %v422_v48 = vpop.permute.xlu1 %421  ;;  %v418_v10 = vpop.permute.xlu0 %417  ;;  %v1255_v8 = vadd.f32 %v1254_v55, %v1253_v56  ;;  %v1245_v29 = vsel %vm1096_vm0, %v983_v32, 0.0  ;;  %v1222_v60 = vadd.f32 %v1221_v47, %v1220_v24  ;;  %v78_v24 = vld [vmem:[%s2702_s1 + $0x1f0] sm:$0xff] }
  0xdf   :  { %v986_v43 = vmul.f32 %v418_v10, %v66_v23  ;;  %v987_v19 = vmul.f32 %v422_v48, %v67_v58  ;;  %v1206_v48 = vsel %vm1096_vm0, %v971_v37, 0.0  ;;  %v1233_v10 = vadd.f32 %v1232_v25, %v1231_v61 }
  0xe0   :  { %698 = vbcast.lane.b32.xlu1 %v692_v6, 264  ;;  %694 = vbcast.lane.b32.xlu0 %v692_v6, 256  ;;  %v1207_v34 = vadd.f32 %v1206_v48, %v1205_v41  ;;  %v1246_v35 = vadd.f32 %v1245_v29, %v1244_v14  ;;  %v2133_v25 = vrot.slane %v2087_v33, %v1737_v7 }
  0xe1   :  { %v1256_v0 = vsel %vm1096_vm0, %v986_v43, 0.0  ;;  %v1258_v38 = vsel %vm1096_vm0, %v987_v19, 0.0  ;;  %v1234_v55 = vrot.slane %v1233_v10, 4 }
  0xe2   :  { %v433_v57 = vpop.permute.xlu1 %432  ;;  %v429_v50 = vpop.permute.xlu0 %428  ;;  %v1257_v16 = vadd.f32 %v1256_v0, %v1255_v8  ;;  %v76_v0 = vld [vmem:[%s2702_s1 + $0x1e0] sm:$0xff] }
  0xe3   :  { %v989_v59 = vmul.f32 %v433_v57, %v69_v44  ;;  %v988_v28 = vmul.f32 %v429_v50, %v68_v45  ;;  %v1208_v57 = vrot.slane %v1207_v34, 4  ;;  %v1247_v50 = vrot.slane %v1246_v35, 4 }
  0xe4   :  { %706 = vbcast.lane.b32.xlu1 %v692_v6, 280  ;;  %702 = vbcast.lane.b32.xlu0 %v692_v6, 272  ;;  %v1259_v45 = vadd.f32 %v1258_v38, %v1257_v16  ;;  %v1223_v16 = vrot.slane %v1222_v60, 2 }
  0xe5   :  { %v1267_v12 = vsel %vm1096_vm0, %v989_v59, 0.0  ;;  %v1266_v40 = vsel %vm1096_vm0, %v988_v28, 0.0  ;;  %v1209_v8 = vadd.f32 %v1208_v57, %v1207_v34 }
  0xe6   :  { %v441_v20 = vpop.permute.xlu1 %440  ;;  %v437_v6 = vpop.permute.xlu0 %436  ;;  %v1268_v26 = vadd.f32 %v1267_v12, %v1266_v40  ;;  %v1260_v58 = vrot.slane %v1259_v45, 4  ;;  %v1248_v12 = vadd.f32 %v1247_v50, %v1246_v35 }
  0xe7   :  { %v991_v22 = vmul.f32 %v441_v20, %v71_v1  ;;  %v990_v23 = vmul.f32 %v437_v6, %v70_v2  ;;  %v2119_v1 = vrot.slane %v2087_v33, %v1734_v5  ;;  %v1235_v2 = vadd.f32 %v1234_v55, %v1233_v10  ;;  %v79_v5 = vld [vmem:[%s2702_s1 + $0x1f8] sm:$0xff] }
  0xe8   :  { %717 = vbcast.lane.b32.xlu1 %v2026_v62, 264  ;;  %713 = vbcast.lane.b32.xlu0 %v2026_v62, 256  ;;  %v1261_v19 = vadd.f32 %v1260_v58, %v1259_v45  ;;  %v1210_v48 = vrot.slane %v1209_v8, 2  ;;  %v1249_v10 = vrot.slane %v1248_v12, 2 }
  0xe9   :  { %v1269_v31 = vsel %vm1096_vm0, %v990_v23, 0.0  ;;  %v1271_v37 = vsel %vm1096_vm0, %v991_v22, 0.0 }
  0xea   :  { %v1270_v42 = vadd.f32 %v1269_v31, %v1268_v26  ;;  %v452_v43 = vpop.permute.xlu1 %451  ;;  %v448_v44 = vpop.permute.xlu0 %447  ;;  %v1236_v26 = vrot.slane %v1235_v2, 2  ;;  %v1262_v35 = vrot.slane %v1261_v19, 2  ;;  %v1250_v47 = vadd.f32 %v1249_v10, %v1248_v12 }
  0xeb   :  { %v993_v46 = vmul.f32 %v452_v43, %v73_v30  ;;  %v992_v36 = vmul.f32 %v448_v44, %v72_v27  ;;  %v1224_v43 = vadd.f32 %v1223_v16, %v1222_v60 }
  0xec   :  { %v1272_v49 = vadd.f32 %v1271_v37, %v1270_v42  ;;  %725 = vbcast.lane.b32.xlu1 %v2026_v62, 280  ;;  %721 = vbcast.lane.b32.xlu0 %v2026_v62, 272  ;;  %v1237_v7 = vadd.f32 %v1236_v26, %v1235_v2  ;;  %v1251_v60 = vrot.slane %v1250_v47, 1 }
  0xed   :  { %v1280_v56 = vsel %vm1096_vm0, %v993_v46, 0.0  ;;  %v1279_v62 = vsel %vm1096_vm0, %v992_v36, 0.0  ;;  %v1211_v36 = vadd.f32 %v1210_v48, %v1209_v8  ;;  %v1225_v57 = vrot.slane %v1224_v43, 1 }
  0xee   :  { %v460_v18 = vpop.permute.xlu1 %459  ;;  %v456_v51 = vpop.permute.xlu0 %455  ;;  %v1273_v61 = vrot.slane %v1272_v49, 4  ;;  %v1281_v3 = vadd.f32 %v1280_v56, %v1279_v62  ;;  %v1263_v56 = vadd.f32 %v1262_v35, %v1261_v19  ;;  %v1238_v58 = vrot.slane %v1237_v7, 1 }
  0xef   :  { %v995_v59 = vmul.f32 %v460_v18, %v75_v39  ;;  %v994_v28 = vmul.f32 %v456_v51, %v74_v52  ;;  %v2149_v51 = vrot.slane %v2087_v33, %v1740_v9  ;;  %v1226_v2 = vadd.f32 %v1225_v57, %v1224_v43  ;;  %v88_v57 = vld [vmem:[%s2702_s1 + $0x240] sm:$0xff] }
  0xf0   :  { %789 = vbcast.lane.b32.xlu1 %v2101_v53, 256  ;;  %732 = vbcast.lane.b32.xlu0 %v2105_v54, 256  ;;  %v1274_v22 = vadd.f32 %v1273_v61, %v1272_v49  ;;  %v1239_v12 = vadd.f32 %v1238_v58, %v1237_v7 }
  0xf1   :  { %v1282_v32 = vsel %vm1096_vm0, %v994_v28, 0.0  ;;  %v1284_v20 = vsel %vm1096_vm0, %v995_v59, 0.0  ;;  %v1212_v28 = vrot.slane %v1211_v36, 1 }
  0xf2   :  { %v1283_v40 = vadd.f32 %v1282_v32, %v1281_v3  ;;  %v471_v41 = vpop.permute.xlu1 %470  ;;  %v467_v14 = vpop.permute.xlu0 %466  ;;  %v1275_v44 = vrot.slane %v1274_v22, 2 }
  0xf3   :  { %v997_v6 = vmul.f32 %v471_v41, %v77_v63  ;;  %v996_v21 = vmul.f32 %v467_v14, %v76_v0  ;;  %v1264_v0 = vrot.slane %v1263_v56, 1  ;;  %v1252_v41 = vadd.f32 %v1251_v60, %v1250_v47  ;;  %v84_v47 = vld [vmem:[%s2702_s1 + $0x220] sm:$0xff]  ;;  %v93_v60 = vld [vmem:[%s2702_s1 + $0x268] sm:$0xff] }
  0xf4   :  { %v1285_v23 = vadd.f32 %v1284_v20, %v1283_v40  ;;  %808 = vbcast.lane.b32.xlu1 %v2119_v1, 256  ;;  %793 = vbcast.lane.b32.xlu0 %v2101_v53, 264  ;;  %v1276_v50 = vadd.f32 %v1275_v44, %v1274_v22  ;;  %v1213_v40 = vadd.f32 %v1212_v28, %v1211_v36  ;;  %v85_v36 = vld [vmem:[%s2702_s1 + $0x228] sm:$0xff]  ;;  %v90_v28 = vld [vmem:[%s2702_s1 + $0x250] sm:$0xff] }
  0xf5   :  { %v1293_v30 = vsel %vm1096_vm0, %v997_v6, 0.0  ;;  %v1292_v27 = vsel %vm1096_vm0, %v996_v21, 0.0  ;;  %v1265_v6 = vadd.f32 %v1264_v0, %v1263_v56  ;;  %v2159_v21 = vrot.slane %v2087_v33, %v1743_v11  ;;  %v82_v56 = vld [vmem:[%s2702_s1 + $0x210] sm:$0xff] }
  0xf6   :  { %v1286_v29 = vrot.slane %v1285_v23, 4  ;;  %v479_v31 = vpop.permute.xlu1 %478  ;;  %v475_v34 = vpop.permute.xlu0 %474  ;;  %v1294_v37 = vadd.f32 %v1293_v30, %v1292_v27  ;;  %v1277_v32 = vrot.slane %v1276_v50, 1  ;;  %v1671_v16 = vsel %vm1657_vm1, %v1226_v2, %v1213_v40  ;;  %v96_v40 = vld [vmem:[%s2702_s1 + $0x280] sm:$0xff] }
  0xf7   :  { %v999_v38 = vmul.f32 %v479_v31, %v79_v5  ;;  %v998_v42 = vmul.f32 %v475_v34, %v78_v24  ;;  %v1672_v5 = vsel %vm1659_vm2, %v1239_v12, %v1671_v16  ;;  %v2186_v44 = vrot.slane %v2087_v33, %v1746_v13  ;;  %v83_v16 = vld [vmem:[%s2702_s1 + $0x218] sm:$0xff] }
  0xf8   :  { %v1287_v45 = vadd.f32 %v1286_v29, %v1285_v23  ;;  %827 = vbcast.lane.b32.xlu1 %v2133_v25, 256  ;;  %812 = vbcast.lane.b32.xlu0 %v2119_v1, 264  ;;  %v1278_v22 = vadd.f32 %v1277_v32, %v1276_v50  ;;  %v1673_v26 = vsel %vm1661_vm3, %v1252_v41, %v1672_v5  ;;  %v87_v32 = vld [vmem:[%s2702_s1 + $0x238] sm:$0xff] }
  0xf9   :  { %v1295_v46 = vsel %vm1096_vm0, %v998_v42, 0.0  ;;  %v1297_v62 = vsel %vm1096_vm0, %v999_v38, 0.0  ;;  %v1674_v11 = vsel %vm1663_vm4, %v1265_v6, %v1673_v26  ;;  %v2257_v6 = vrot.slane %v1944_v4, %v1752_v17 }
  0xfa   :  { %v1288_v49 = vrot.slane %v1287_v45, 2  ;;  %v1296_v39 = vadd.f32 %v1295_v46, %v1294_v37  ;;  %v2140_v52 = vpop.permute.xlu1 %489  ;;  %v2142_v55 = vpop.permute.xlu0 %485  ;;  %v1675_v10 = vsel %vm1665_vm5, %v1278_v22, %v1674_v11 }
  0xfc   :  { %v1298_v18 = vadd.f32 %v1297_v62, %v1296_v39  ;;  %797 = vbcast.lane.b32.xlu1 %v2101_v53, 272  ;;  %831 = vbcast.lane.b32.xlu0 %v2133_v25, 264  ;;  %v1289_v59 = vadd.f32 %v1288_v49, %v1287_v45  ;;  %v81_v45 = vld [vmem:[%s2702_s1 + $0x208] sm:$0xff] }
  0xfd   :  { %v1001_v13 = vmul.f32 %v2140_v52, %v81_v45  ;;  %v86_v52 = vld [vmem:[%s2702_s1 + $0x230] sm:$0xff]  ;;  %v100_v45 = vld [vmem:[%s2702_s1 + $0x2a0] sm:$0xff] }
  0xfe   :  { %v1299_v61 = vrot.slane %v1298_v18, 4  ;;  %v2151_v3 = vpop.permute.xlu1 %497  ;;  %v2153_v63 = vpop.permute.xlu0 %493  ;;  %v1290_v9 = vrot.slane %v1289_v59, 1 }
  0xff   :  { %v1306_v50 = vsel %vm1096_vm0, %v1001_v13, 0.0 }
 0x100   :  { %v1300_v8 = vadd.f32 %v1299_v61, %v1298_v18  ;;  %846 = vbcast.lane.b32.xlu1 %v2149_v51, 256  ;;  %816 = vbcast.lane.b32.xlu0 %v2119_v1, 272  ;;  %v1291_v24 = vadd.f32 %v1290_v9, %v1289_v59  ;;  %v1002_v59 = vmul.f32 %v2153_v63, %v82_v56  ;;  %v92_v61 = vld [vmem:[%s2702_s1 + $0x260] sm:$0xff]  ;;  %v97_v9 = vld [vmem:[%s2702_s1 + $0x288] sm:$0xff] }
 0x102   :  { %v1301_v14 = vrot.slane %v1300_v8, 2  ;;  %v509_v19 = vpop.permute.xlu1 %508  ;;  %v505_v20 = vpop.permute.xlu0 %504  ;;  %v1676_v31 = vsel %vm1667_vm6, %v1291_v24, %v1675_v10 }
 0x103   :  { %v1005_v62 = vmul.f32 %v509_v19, %v85_v36  ;;  %v1004_v58 = vmul.f32 %v505_v20, %v84_v47  ;;  %v94_v19 = vld [vmem:[%s2702_s1 + $0x270] sm:$0xff]  ;;  %v2253_v20 = vrot.slane %v2087_v33, %v1749_v15  ;;  %v95_v47 = vld [vmem:[%s2702_s1 + $0x278] sm:$0xff] }
 0x104   :  { %v1302_v23 = vadd.f32 %v1301_v14, %v1300_v8  ;;  %835 = vbcast.lane.b32.xlu1 %v2133_v25, 272  ;;  %850 = vbcast.lane.b32.xlu0 %v2149_v51, 264 }
 0x105   :  { %v1319_v14 = vsel %vm1096_vm0, %v1005_v62, 0.0  ;;  %v1318_v22 = vsel %vm1096_vm0, %v1004_v58, 0.0 }
 0x106   :  { %v1303_v30 = vrot.slane %v1302_v23, 1  ;;  %v2166_v27 = vpop.permute.xlu1 %516  ;;  %v513_v48 = vpop.permute.xlu0 %512 }
 0x107   :  { %v1006_v8 = vmul.f32 %v513_v48, %v86_v52  ;;  %v1007_v26 = vmul.f32 %v2166_v27, %v87_v32  ;;  %v101_v27 = vld [vmem:[%s2702_s1 + $0x2a8] sm:$0xff] }
 0x108   :  { %v1304_v29 = vadd.f32 %v1303_v30, %v1302_v23  ;;  %869 = vbcast.lane.b32.xlu1 %v2159_v21, 264  ;;  %865 = vbcast.lane.b32.xlu0 %v2159_v21, 256 }
 0x109   :  { %v1321_v10 = vsel %vm1096_vm0, %v1006_v8, 0.0 }
 0x10a   :  { %v1677_v34 = vsel %vm1669_vm7, %v1304_v29, %v1676_v31  ;;  %v528_v35 = vpop.permute.xlu1 %527  ;;  %v524_v38 = vpop.permute.xlu0 %523 }
 0x10b   :  { %1705 = vst.msk [vmem:[%s2703_s2 + $0x8] sm:$0xff] %vm1096_vm0, %v1677_v34  ;;  %v1008_v12 = vmul.f32 %v524_v38, %v88_v57  ;;  %v1320_v38 = vadd.f32 %v1319_v14, %v1318_v22 }
 0x10c   :  { %801 = vbcast.lane.b32.xlu1 %v2101_v53, 280  ;;  %736 = vbcast.lane.b32.xlu0 %v2105_v54, 264  ;;  %v80_v53 = vld [vmem:[%s2702_s1 + $0x200] sm:$0xff] }
 0x10d   :  { %v1000_v46 = vmul.f32 %v2142_v55, %v80_v53  ;;  %v89_v55 = vld [vmem:[%s2702_s1 + $0x248] sm:$0xff]  ;;  %v1331_v31 = vsel %vm1096_vm0, %v1008_v12, 0.0 }
 0x10e   :  { %v2180_v42 = vpop.permute.xlu1 %535  ;;  %v532_v43 = vpop.permute.xlu0 %531  ;;  %v1009_v63 = vmul.f32 %v528_v35, %v89_v55  ;;  %v1003_v35 = vmul.f32 %v2151_v3, %v83_v16  ;;  %v1323_v55 = vsel %vm1096_vm0, %v1007_v26, 0.0  ;;  %v2321_v26 = vrot.slane %v2087_v33, %v1752_v17  ;;  %v107_v33 = vld [vmem:[%s2702_s1 + $0x2d8] sm:$0xff] }
 0x10f   :  { %v1305_v18 = vsel %vm1096_vm0, %v1000_v46, 0.0  ;;  %v1010_v23 = vmul.f32 %v532_v43, %v90_v28  ;;  %v1322_v46 = vadd.f32 %v1321_v10, %v1320_v38 }
 0x110   :  { %854 = vbcast.lane.b32.xlu1 %v2149_v51, 272  ;;  %820 = vbcast.lane.b32.xlu0 %v2119_v1, 280  ;;  %v2198_v1 = vrot.slane %v1944_v4, %v1749_v15  ;;  %v1307_v41 = vadd.f32 %v1306_v50, %v1305_v18  ;;  %v1308_v15 = vsel %vm1096_vm0, %v1002_v59, 0.0  ;;  %v1332_v29 = vsel %vm1096_vm0, %v1009_v63, 0.0  ;;  %v99_v50 = vld [vmem:[%s2702_s1 + $0x298] sm:$0xff] }
 0x111   :  { %v1334_v3 = vsel %vm1096_vm0, %v1010_v23, 0.0  ;;  %v1333_v36 = vadd.f32 %v1332_v29, %v1331_v31  ;;  %v1324_v12 = vadd.f32 %v1323_v55, %v1322_v46 }
 0x112   :  { %v547_v37 = vpop.permute.xlu1 %546  ;;  %v543_v7 = vpop.permute.xlu0 %542  ;;  %v1309_v53 = vadd.f32 %v1308_v15, %v1307_v41  ;;  %v104_v15 = vld [vmem:[%s2702_s1 + $0x2c0] sm:$0xff] }
 0x113   :  { %v1013_v5 = vmul.f32 %v547_v37, %v93_v60  ;;  %v1012_v24 = vmul.f32 %v543_v7, %v92_v61  ;;  %v91_v37 = vld [vmem:[%s2702_s1 + $0x258] sm:$0xff]  ;;  %v1335_v28 = vadd.f32 %v1334_v3, %v1333_v36 }
 0x114   :  { %888 = vbcast.lane.b32.xlu1 %v2186_v44, 264  ;;  %884 = vbcast.lane.b32.xlu0 %v2186_v44, 256  ;;  %v1011_v59 = vmul.f32 %v2180_v42, %v91_v37 }
 0x115   :  { %v1345_v7 = vsel %vm1096_vm0, %v1013_v5, 0.0  ;;  %v1344_v13 = vsel %vm1096_vm0, %v1012_v24, 0.0 }
 0x116   :  { %v2208_v49 = vpop.permute.xlu1 %554  ;;  %v551_v39 = vpop.permute.xlu0 %550  ;;  %v1346_v60 = vadd.f32 %v1345_v7, %v1344_v13  ;;  %v1336_v24 = vsel %vm1096_vm0, %v1011_v59, 0.0 }
 0x117   :  { %v1014_v34 = vmul.f32 %v551_v39, %v94_v19  ;;  %v1015_v32 = vmul.f32 %v2208_v49, %v95_v47  ;;  %v1310_v19 = vsel %vm1096_vm0, %v1003_v35, 0.0  ;;  %v105_v49 = vld [vmem:[%s2702_s1 + $0x2c8] sm:$0xff] }
 0x118   :  { %755 = vbcast.lane.b32.xlu1 %v2198_v1, 264  ;;  %751 = vbcast.lane.b32.xlu0 %v2198_v1, 256  ;;  %v1311_v5 = vadd.f32 %v1310_v19, %v1309_v53  ;;  %v106_v53 = vld [vmem:[%s2702_s1 + $0x2d0] sm:$0xff] }
 0x119   :  { %v1347_v57 = vsel %vm1096_vm0, %v1014_v34, 0.0 }
 0x11a   :  { %v566_v0 = vpop.permute.xlu1 %565  ;;  %v562_v2 = vpop.permute.xlu0 %561 }
 0x11b   :  { %v1017_v30 = vmul.f32 %v566_v0, %v97_v9  ;;  %v1016_v4 = vmul.f32 %v562_v2, %v96_v40  ;;  %v103_v0 = vld [vmem:[%s2702_s1 + $0x2b8] sm:$0xff]  ;;  %v102_v2 = vld [vmem:[%s2702_s1 + $0x2b0] sm:$0xff]  ;;  %v1348_v9 = vadd.f32 %v1347_v57, %v1346_v60 }
 0x11c   :  { %873 = vbcast.lane.b32.xlu1 %v2159_v21, 272  ;;  %839 = vbcast.lane.b32.xlu0 %v2133_v25, 280  ;;  %v98_v25 = vld [vmem:[%s2702_s1 + $0x290] sm:$0xff] }
 0x11d   :  { %v1358_v39 = vsel %vm1096_vm0, %v1017_v30, 0.0  ;;  %v1357_v56 = vsel %vm1096_vm0, %v1016_v4, 0.0  ;;  %v1337_v30 = vadd.f32 %v1336_v24, %v1335_v28  ;;  %v1349_v4 = vsel %vm1096_vm0, %v1015_v32, 0.0 }
 0x11e   :  { %v574_v48 = vpop.permute.xlu1 %573  ;;  %v570_v11 = vpop.permute.xlu0 %569  ;;  %v1359_v8 = vadd.f32 %v1358_v39, %v1357_v56 }
 0x11f   :  { %v1018_v43 = vmul.f32 %v570_v11, %v98_v25  ;;  %v1019_v40 = vmul.f32 %v574_v48, %v99_v50  ;;  %v1350_v11 = vadd.f32 %v1349_v4, %v1348_v9  ;;  %v1338_v37 = vrot.slane %v1337_v30, 4  ;;  %v109_v50 = vld [vmem:[%s2702_s1 + $0x2e8] sm:$0xff] }
 0x120   :  { %907 = vbcast.lane.b32.xlu1 %v2253_v20, 264  ;;  %903 = vbcast.lane.b32.xlu0 %v2253_v20, 256 }
 0x121   :  { %v1360_v61 = vsel %vm1096_vm0, %v1018_v43, 0.0  ;;  %v1362_v10 = vsel %vm1096_vm0, %v1019_v40, 0.0  ;;  %v1351_v46 = vrot.slane %v1350_v11, 4 }
 0x122   :  { %v585_v62 = vpop.permute.xlu1 %584  ;;  %v581_v52 = vpop.permute.xlu0 %580  ;;  %v1361_v16 = vadd.f32 %v1360_v61, %v1359_v8 }
 0x123   :  { %v1021_v18 = vmul.f32 %v585_v62, %v101_v27  ;;  %v1020_v58 = vmul.f32 %v581_v52, %v100_v45  ;;  %v1312_v45 = vrot.slane %v1311_v5, 4  ;;  %v1352_v60 = vadd.f32 %v1351_v46, %v1350_v11  ;;  %v115_v46 = vld [vmem:[%s2702_s1 + $0x318] sm:$0xff] }
 0x124   :  { %770 = vbcast.lane.b32.xlu1 %v2257_v6, 256  ;;  %740 = vbcast.lane.b32.xlu0 %v2105_v54, 272  ;;  %v1363_v35 = vadd.f32 %v1362_v10, %v1361_v16  ;;  %v113_v10 = vld [vmem:[%s2702_s1 + $0x308] sm:$0xff] }
 0x125   :  { %v1371_v42 = vsel %vm1096_vm0, %v1021_v18, 0.0  ;;  %v1370_v63 = vsel %vm1096_vm0, %v1020_v58, 0.0  ;;  %v1313_v52 = vadd.f32 %v1312_v45, %v1311_v5  ;;  %v108_v18 = vld [vmem:[%s2702_s1 + $0x2e0] sm:$0xff]  ;;  %v1339_v58 = vadd.f32 %v1338_v37, %v1337_v30 }
 0x126   :  { %v593_v41 = vpop.permute.xlu1 %592  ;;  %v589_v14 = vpop.permute.xlu0 %588  ;;  %v1372_v25 = vadd.f32 %v1371_v42, %v1370_v63  ;;  %v1364_v39 = vrot.slane %v1363_v35, 4  ;;  %v1353_v5 = vrot.slane %v1352_v60, 2 }
 0x127   :  { %v1023_v22 = vmul.f32 %v593_v41, %v103_v0  ;;  %v1022_v23 = vmul.f32 %v589_v14, %v102_v2  ;;  %v111_v41 = vld [vmem:[%s2702_s1 + $0x2f8] sm:$0xff]  ;;  %v110_v14 = vld [vmem:[%s2702_s1 + $0x2f0] sm:$0xff]  ;;  %v1340_v19 = vrot.slane %v1339_v58, 2 }
 0x128   :  { %858 = vbcast.lane.b32.xlu1 %v2149_v51, 280  ;;  %774 = vbcast.lane.b32.xlu0 %v2257_v6, 264  ;;  %v1325_v51 = vrot.slane %v1324_v12, 4  ;;  %v1365_v32 = vadd.f32 %v1364_v39, %v1363_v35 }
 0x129   :  { %v1373_v48 = vsel %vm1096_vm0, %v1022_v23, 0.0  ;;  %v1375_v38 = vsel %vm1096_vm0, %v1023_v22, 0.0 }
 0x12a   :  { %v1374_v29 = vadd.f32 %v1373_v48, %v1372_v25  ;;  %v604_v31 = vpop.permute.xlu1 %603  ;;  %v600_v34 = vpop.permute.xlu0 %599  ;;  %v1326_v13 = vadd.f32 %v1325_v51, %v1324_v12  ;;  %v1314_v12 = vrot.slane %v1313_v52, 2 }
 0x12b   :  { %v1025_v43 = vmul.f32 %v604_v31, %v105_v49  ;;  %v1024_v27 = vmul.f32 %v600_v34, %v104_v15  ;;  %v1366_v15 = vrot.slane %v1365_v32, 2  ;;  %v1341_v31 = vadd.f32 %v1340_v19, %v1339_v58 }
 0x12c   :  { %v1376_v17 = vadd.f32 %v1375_v38, %v1374_v29  ;;  %922 = vbcast.lane.b32.xlu1 %v2321_v26, 256  ;;  %892 = vbcast.lane.b32.xlu0 %v2186_v44, 272  ;;  %v1327_v28 = vrot.slane %v1326_v13, 2  ;;  %v1315_v4 = vadd.f32 %v1314_v12, %v1313_v52  ;;  %v112_v29 = vld [vmem:[%s2702_s1 + $0x300] sm:$0xff]  ;;  %v1354_v38 = vadd.f32 %v1353_v5, %v1352_v60 }
 0x12d   :  { %v1384_v3 = vsel %vm1096_vm0, %v1025_v43, 0.0  ;;  %v1383_v7 = vsel %vm1096_vm0, %v1024_v27, 0.0 }
 0x12e   :  { %v612_v36 = vpop.permute.xlu1 %611  ;;  %v608_v47 = vpop.permute.xlu0 %607  ;;  %v1377_v55 = vrot.slane %v1376_v17, 4  ;;  %v1385_v57 = vadd.f32 %v1384_v3, %v1383_v7  ;;  %v1328_v23 = vadd.f32 %v1327_v28, %v1326_v13  ;;  %v1316_v3 = vrot.slane %v1315_v4, 1 }
 0x12f   :  { %v1027_v56 = vmul.f32 %v612_v36, %v107_v33  ;;  %v1026_v62 = vmul.f32 %v608_v47, %v106_v53  ;;  %v1367_v33 = vadd.f32 %v1366_v15, %v1365_v32  ;;  %v114_v36 = vld [vmem:[%s2702_s1 + $0x310] sm:$0xff]  ;;  %v1342_v47 = vrot.slane %v1341_v31, 1  ;;  %v116_v32 = vld [vmem:[%s2702_s1 + $0x320] sm:$0xff] }
 0x130   :  { %759 = vbcast.lane.b32.xlu1 %v2198_v1, 272  ;;  %926 = vbcast.lane.b32.xlu0 %v2321_v26, 264  ;;  %v1378_v9 = vadd.f32 %v1377_v55, %v1376_v17  ;;  %v1329_v35 = vrot.slane %v1328_v23, 1  ;;  %v1355_v55 = vrot.slane %v1354_v38, 1  ;;  %v1317_v60 = vadd.f32 %v1316_v3, %v1315_v4 }
 0x131   :  { %v1386_v59 = vsel %vm1096_vm0, %v1026_v62, 0.0  ;;  %v1388_v8 = vsel %vm1096_vm0, %v1027_v56, 0.0  ;;  %v1368_v58 = vrot.slane %v1367_v33, 1 }
 0x132   :  { %v1387_v61 = vadd.f32 %v1386_v59, %v1385_v57  ;;  %v623_v0 = vpop.permute.xlu1 %622  ;;  %v619_v2 = vpop.permute.xlu0 %618  ;;  %v1379_v48 = vrot.slane %v1378_v9, 2  ;;  %v1330_v52 = vadd.f32 %v1329_v35, %v1328_v23 }
 0x133   :  { %v1029_v42 = vmul.f32 %v623_v0, %v109_v50  ;;  %v1028_v63 = vmul.f32 %v619_v2, %v108_v18  ;;  %v117_v2 = vld [vmem:[%s2702_s1 + $0x328] sm:$0xff] }
 0x134   :  { %v1389_v40 = vadd.f32 %v1388_v8, %v1387_v61  ;;  %911 = vbcast.lane.b32.xlu1 %v2253_v20, 272  ;;  %877 = vbcast.lane.b32.xlu0 %v2159_v21, 280  ;;  %v1380_v7 = vadd.f32 %v1379_v48, %v1378_v9  ;;  %v1343_v8 = vadd.f32 %v1342_v47, %v1341_v31 }
 0x135   :  { %v1397_v16 = vsel %vm1096_vm0, %v1029_v42, 0.0  ;;  %v1396_v22 = vsel %vm1096_vm0, %v1028_v63, 0.0  ;;  %v1678_v12 = vsel %vm1657_vm1, %v1330_v52, %v1317_v60  ;;  %v1356_v9 = vadd.f32 %v1355_v55, %v1354_v38  ;;  %v125_v60 = vld [vmem:[%s2702_s1 + $0x368] sm:$0xff] }
 0x136   :  { %v1390_v24 = vrot.slane %v1389_v40, 4  ;;  %v631_v25 = vpop.permute.xlu1 %630  ;;  %v627_v49 = vpop.permute.xlu0 %626  ;;  %v1398_v11 = vadd.f32 %v1397_v16, %v1396_v22  ;;  %v1381_v61 = vrot.slane %v1380_v7, 1  ;;  %v1679_v15 = vsel %vm1659_vm2, %v1343_v8, %v1678_v12 }
 0x137   :  { %v1031_v21 = vmul.f32 %v631_v25, %v111_v41  ;;  %v1030_v30 = vmul.f32 %v627_v49, %v110_v14  ;;  %v119_v25 = vld [vmem:[%s2702_s1 + $0x338] sm:$0xff]  ;;  %v118_v49 = vld [vmem:[%s2702_s1 + $0x330] sm:$0xff]  ;;  %v1680_v48 = vsel %vm1661_vm3, %v1356_v9, %v1679_v15 }
 0x138   :  { %v1391_v51 = vadd.f32 %v1390_v24, %v1389_v40  ;;  %778 = vbcast.lane.b32.xlu1 %v2257_v6, 272  ;;  %744 = vbcast.lane.b32.xlu0 %v2105_v54, 280  ;;  %v1382_v23 = vadd.f32 %v1381_v61, %v1380_v7  ;;  %v124_v61 = vld [vmem:[%s2702_s1 + $0x360] sm:$0xff] }
 0x139   :  { %v1399_v34 = vsel %vm1096_vm0, %v1030_v30, 0.0  ;;  %v1401_v54 = vsel %vm1096_vm0, %v1031_v21, 0.0 }
 0x13a   :  { %v1392_v43 = vrot.slane %v1391_v51, 2  ;;  %v1400_v27 = vadd.f32 %v1399_v34, %v1398_v11  ;;  %v642_v45 = vpop.permute.xlu1 %641  ;;  %v638_v17 = vpop.permute.xlu0 %637 }
 0x13b   :  { %v1033_v53 = vmul.f32 %v642_v45, %v113_v10  ;;  %v1032_v37 = vmul.f32 %v638_v17, %v112_v29  ;;  %v120_v45 = vld [vmem:[%s2702_s1 + $0x340] sm:$0xff] }
 0x13c   :  { %v1402_v13 = vadd.f32 %v1401_v54, %v1400_v27  ;;  %930 = vbcast.lane.b32.xlu1 %v2321_v26, 272  ;;  %896 = vbcast.lane.b32.xlu0 %v2186_v44, 280  ;;  %v1393_v39 = vadd.f32 %v1392_v43, %v1391_v51  ;;  %v121_v27 = vld [vmem:[%s2702_s1 + $0x348] sm:$0xff] }
 0x13d   :  { %v1410_v56 = vsel %vm1096_vm0, %v1033_v53, 0.0  ;;  %v1409_v62 = vsel %vm1096_vm0, %v1032_v37, 0.0 }
 0x13e   :  { %v1403_v57 = vrot.slane %v1402_v13, 4  ;;  %v1411_v50 = vadd.f32 %v1410_v56, %v1409_v62  ;;  %v650_v18 = vpop.permute.xlu1 %649  ;;  %v646_v44 = vpop.permute.xlu0 %645  ;;  %v1394_v42 = vrot.slane %v1393_v39, 1  ;;  %v122_v56 = vld [vmem:[%s2702_s1 + $0x350] sm:$0xff] }
 0x13f   :  { %v1035_v59 = vmul.f32 %v650_v18, %v115_v46  ;;  %v1034_v28 = vmul.f32 %v646_v44, %v114_v36 }
 0x140   :  { %v1404_v0 = vadd.f32 %v1403_v57, %v1402_v13  ;;  %915 = vbcast.lane.b32.xlu1 %v2253_v20, 280  ;;  %763 = vbcast.lane.b32.xlu0 %v2198_v1, 280  ;;  %v1369_v1 = vadd.f32 %v1368_v58, %v1367_v33  ;;  %v1395_v21 = vadd.f32 %v1394_v42, %v1393_v39  ;;  %v123_v39 = vld [vmem:[%s2702_s1 + $0x358] sm:$0xff] }
 0x141   :  { %v1412_v63 = vsel %vm1096_vm0, %v1034_v28, 0.0  ;;  %v1414_v19 = vsel %vm1096_vm0, %v1035_v59, 0.0 }
 0x142   :  { %v1405_v40 = vrot.slane %v1404_v0, 2  ;;  %v1413_v41 = vadd.f32 %v1412_v63, %v1411_v50  ;;  %v661_v20 = vpop.permute.xlu1 %660  ;;  %v657_v14 = vpop.permute.xlu0 %656  ;;  %v1681_v29 = vsel %vm1663_vm4, %v1369_v1, %v1680_v48  ;;  %v126_v1 = vld [vmem:[%s2702_s1 + $0x370] sm:$0xff]  ;;  %v129_v48 = vld [vmem:[%s2702_s1 + $0x388] sm:$0xff] }
 0x143   :  { %v1037_v16 = vmul.f32 %v661_v20, %v117_v2  ;;  %v1036_v22 = vmul.f32 %v657_v14, %v116_v32  ;;  %v1682_v35 = vsel %vm1665_vm5, %v1382_v23, %v1681_v29  ;;  %v127_v14 = vld [vmem:[%s2702_s1 + $0x378] sm:$0xff] }
 0x144   :  { %v1406_v5 = vadd.f32 %v1405_v40, %v1404_v0  ;;  %v1415_v24 = vadd.f32 %v1414_v19, %v1413_v41  ;;  %934 = vbcast.lane.b32.xlu1 %v2321_v26, 280  ;;  %782 = vbcast.lane.b32.xlu0 %v2257_v6, 280  ;;  %v1683_v17 = vsel %vm1667_vm6, %v1395_v21, %v1682_v35 }
 0x145   :  { %v1423_v30 = vsel %vm1096_vm0, %v1037_v16, 0.0  ;;  %v1422_v4 = vsel %vm1096_vm0, %v1036_v22, 0.0 }
 0x146   :  { %v1407_v26 = vrot.slane %v1406_v5, 1  ;;  %v1416_v51 = vrot.slane %v1415_v24, 4  ;;  %v1424_v6 = vadd.f32 %v1423_v30, %v1422_v4  ;;  %v669_v11 = vpop.permute.xlu1 %668  ;;  %v665_v10 = vpop.permute.xlu0 %664 }
 0x147   :  { %v1039_v31 = vmul.f32 %v669_v11, %v119_v25  ;;  %v1038_v34 = vmul.f32 %v665_v10, %v118_v49 }
 0x148   :  { %v1408_v38 = vadd.f32 %v1407_v26, %v1406_v5  ;;  %v1417_v43 = vadd.f32 %v1416_v51, %v1415_v24  ;;  %v128_v26 = vld [vmem:[%s2702_s1 + $0x380] sm:$0xff] }
 0x149   :  { %v1425_v33 = vsel %vm1096_vm0, %v1038_v34, 0.0  ;;  %v1427_v7 = vsel %vm1096_vm0, %v1039_v31, 0.0 }
 0x14a   :  { %v1684_v54 = vsel %vm1669_vm7, %v1408_v38, %v1683_v17  ;;  %v1426_v53 = vadd.f32 %v1425_v33, %v1424_v6  ;;  %v680_v37 = vpop.permute.xlu1 %679  ;;  %v676_v3 = vpop.permute.xlu0 %675  ;;  %v1418_v36 = vrot.slane %v1417_v43, 2  ;;  %v130_v17 = vld [vmem:[%s2702_s1 + $0x390] sm:$0xff] }
 0x14b   :  { %1706 = vst.msk [vmem:[%s2703_s2 + $0x10] sm:$0xff] %vm1096_vm0, %v1684_v54  ;;  %v1041_v13 = vmul.f32 %v680_v37, %v121_v27  ;;  %v1040_v46 = vmul.f32 %v676_v3, %v120_v45  ;;  %v131_v45 = vld [vmem:[%s2702_s1 + $0x398] sm:$0xff] }
 0x14c   :  { %v1428_v47 = vadd.f32 %v1427_v7, %v1426_v53  ;;  %v1419_v59 = vadd.f32 %v1418_v36, %v1417_v43 }
 0x14d   :  { %v1436_v62 = vsel %vm1096_vm0, %v1041_v13, 0.0  ;;  %v1435_v52 = vsel %vm1096_vm0, %v1040_v46, 0.0 }
 0x14e   :  { %v1429_v55 = vrot.slane %v1428_v47, 4  ;;  %v1437_v57 = vadd.f32 %v1436_v62, %v1435_v52  ;;  %v688_v50 = vpop.permute.xlu1 %687  ;;  %v684_v18 = vpop.permute.xlu0 %683  ;;  %v1420_v40 = vrot.slane %v1419_v59, 1 }
 0x14f   :  { %v1043_v44 = vmul.f32 %v688_v50, %v123_v39  ;;  %v1042_v58 = vmul.f32 %v684_v18, %v122_v56 }
 0x150   :  { %v1430_v28 = vadd.f32 %v1429_v55, %v1428_v47  ;;  %v1421_v21 = vadd.f32 %v1420_v40, %v1419_v59 }
 0x151   :  { %v1438_v0 = vsel %vm1096_vm0, %v1042_v58, 0.0  ;;  %v1440_v63 = vsel %vm1096_vm0, %v1043_v44, 0.0 }
 0x152   :  { %v1431_v2 = vrot.slane %v1430_v28, 2  ;;  %v1439_v32 = vadd.f32 %v1438_v0, %v1437_v57  ;;  %v699_v8 = vpop.permute.xlu1 %698  ;;  %v695_v42 = vpop.permute.xlu0 %694  ;;  %v144_v57 = vld [vmem:[%s2702_s1 + $0x400] sm:$0xff] }
 0x153   :  { %v1045_v12 = vmul.f32 %v699_v8, %v125_v60  ;;  %v1044_v9 = vmul.f32 %v695_v42, %v124_v61 }
 0x154   :  { %v1432_v41 = vadd.f32 %v1431_v2, %v1430_v28  ;;  %v1441_v20 = vadd.f32 %v1440_v63, %v1439_v32  ;;  %v145_v28 = vld [vmem:[%s2702_s1 + $0x408] sm:$0xff]  ;;  %v148_v2 = vld [vmem:[%s2702_s1 + $0x420] sm:$0xff] }
 0x155   :  { %v1449_v19 = vsel %vm1096_vm0, %v1045_v12, 0.0  ;;  %v1448_v16 = vsel %vm1096_vm0, %v1044_v9, 0.0  ;;  %v149_v9 = vld [vmem:[%s2702_s1 + $0x428] sm:$0xff] }
 0x156   :  { %v1433_v22 = vrot.slane %v1432_v41, 1  ;;  %v1442_v23 = vrot.slane %v1441_v20, 4  ;;  %v1450_v5 = vadd.f32 %v1449_v19, %v1448_v16  ;;  %v707_v24 = vpop.permute.xlu1 %706  ;;  %v703_v25 = vpop.permute.xlu0 %702 }
 0x157   :  { %v1047_v49 = vmul.f32 %v707_v24, %v127_v14  ;;  %v1046_v15 = vmul.f32 %v703_v25, %v126_v1  ;;  %v146_v24 = vld [vmem:[%s2702_s1 + $0x410] sm:$0xff] }
 0x158   :  { %v1434_v30 = vadd.f32 %v1433_v22, %v1432_v41  ;;  %v1443_v4 = vadd.f32 %v1442_v23, %v1441_v20 }
 0x159   :  { %v1451_v51 = vsel %vm1096_vm0, %v1046_v15, 0.0  ;;  %v1453_v34 = vsel %vm1096_vm0, %v1047_v49, 0.0 }
 0x15a   :  { %v1685_v6 = vsel %vm1657_vm1, %v1434_v30, %v1421_v21  ;;  %v1444_v11 = vrot.slane %v1443_v4, 2  ;;  %v1452_v10 = vadd.f32 %v1451_v51, %v1450_v5  ;;  %v718_v29 = vpop.permute.xlu1 %717  ;;  %v714_v31 = vpop.permute.xlu0 %713 }
 0x15b   :  { %v1049_v35 = vmul.f32 %v718_v29, %v129_v48  ;;  %v1048_v38 = vmul.f32 %v714_v31, %v128_v26 }
 0x15c   :  { %v1445_v43 = vadd.f32 %v1444_v11, %v1443_v4  ;;  %v1454_v27 = vadd.f32 %v1453_v34, %v1452_v10 }
 0x15d   :  { %v1462_v33 = vsel %vm1096_vm0, %v1049_v35, 0.0  ;;  %v1461_v54 = vsel %vm1096_vm0, %v1048_v38, 0.0  ;;  %v150_v35 = vld [vmem:[%s2702_s1 + $0x430] sm:$0xff] }
 0x15e   :  { %v1446_v53 = vrot.slane %v1445_v43, 1  ;;  %v1455_v37 = vrot.slane %v1454_v27, 4  ;;  %v1463_v3 = vadd.f32 %v1462_v33, %v1461_v54  ;;  %v726_v7 = vpop.permute.xlu1 %725  ;;  %v722_v13 = vpop.permute.xlu0 %721 }
 0x15f   :  { %v1051_v46 = vmul.f32 %v726_v7, %v131_v45  ;;  %v1050_v36 = vmul.f32 %v722_v13, %v130_v17 }
 0x160   :  { %v1447_v47 = vadd.f32 %v1446_v53, %v1445_v43  ;;  %v1456_v39 = vadd.f32 %v1455_v37, %v1454_v27  ;;  %v147_v27 = vld [vmem:[%s2702_s1 + $0x418] sm:$0xff] }
 0x161   :  { %v1464_v56 = vsel %vm1096_vm0, %v1050_v36, 0.0  ;;  %v1466_v44 = vsel %vm1096_vm0, %v1051_v46, 0.0  ;;  %v151_v53 = vld [vmem:[%s2702_s1 + $0x438] sm:$0xff] }
 0x162   :  { %v1686_v62 = vsel %vm1659_vm2, %v1447_v47, %v1685_v6  ;;  %v1457_v52 = vrot.slane %v1456_v39, 2  ;;  %v1465_v55 = vadd.f32 %v1464_v56, %v1463_v3  ;;  %v790_v50 = vpop.permute.xlu1 %789  ;;  %v2462_v18 = vpop.permute.xlu0 %732  ;;  %v153_v47 = vld [vmem:[%s2702_s1 + $0x448] sm:$0xff] }
 0x163   :  { %v1064_v60 = vmul.f32 %v790_v50, %v144_v57 }
 0x164   :  { %v1458_v58 = vadd.f32 %v1457_v52, %v1456_v39  ;;  %v1467_v59 = vadd.f32 %v1466_v44, %v1465_v55  ;;  %v152_v52 = vld [vmem:[%s2702_s1 + $0x440] sm:$0xff]  ;;  %v154_v55 = vld [vmem:[%s2702_s1 + $0x450] sm:$0xff] }
 0x165   :  { %v1513_v40 = vsel %vm1096_vm0, %v1064_v60, 0.0 }
 0x166   :  { %v1459_v61 = vrot.slane %v1458_v58, 1  ;;  %v1468_v0 = vrot.slane %v1467_v59, 4  ;;  %v809_v32 = vpop.permute.xlu1 %808  ;;  %v794_v8 = vpop.permute.xlu0 %793 }
 0x167   :  { %v1065_v42 = vmul.f32 %v794_v8, %v145_v28  ;;  %v1068_v41 = vmul.f32 %v809_v32, %v148_v2 }
 0x168   :  { %v1460_v63 = vadd.f32 %v1459_v61, %v1458_v58  ;;  %v1469_v12 = vadd.f32 %v1468_v0, %v1467_v59 }
 0x169   :  { %v1514_v20 = vsel %vm1096_vm0, %v1065_v42, 0.0  ;;  %v1526_v25 = vsel %vm1096_vm0, %v1068_v41, 0.0 }
 0x16a   :  { %v1687_v14 = vsel %vm1661_vm3, %v1460_v63, %v1686_v62  ;;  %v1470_v1 = vrot.slane %v1469_v12, 2  ;;  %v1515_v19 = vadd.f32 %v1514_v20, %v1513_v40  ;;  %v828_v16 = vpop.permute.xlu1 %827  ;;  %v813_v22 = vpop.permute.xlu0 %812 }
 0x16b   :  { %v1069_v23 = vmul.f32 %v813_v22, %v149_v9  ;;  %v1072_v61 = vmul.f32 %v828_v16, %v152_v52  ;;  %v155_v9 = vld [vmem:[%s2702_s1 + $0x458] sm:$0xff] }
 0x16c   :  { %v1471_v5 = vadd.f32 %v1470_v1, %v1469_v12 }
 0x16d   :  { %v1527_v49 = vsel %vm1096_vm0, %v1069_v23, 0.0  ;;  %v1539_v40 = vsel %vm1096_vm0, %v1072_v61, 0.0  ;;  %v164_v61 = vld [vmem:[%s2702_s1 + $0x4a0] sm:$0xff] }
 0x16e   :  { %v1472_v15 = vrot.slane %v1471_v5, 1  ;;  %v1528_v21 = vadd.f32 %v1527_v49, %v1526_v25  ;;  %v798_v30 = vpop.permute.xlu1 %797  ;;  %v832_v4 = vpop.permute.xlu0 %831 }
 0x16f   :  { %v1066_v48 = vmul.f32 %v798_v30, %v146_v24  ;;  %v1073_v59 = vmul.f32 %v832_v4, %v153_v47 }
 0x170   :  { %v1473_v26 = vadd.f32 %v1472_v15, %v1471_v5 }
 0x171   :  { %v1516_v51 = vsel %vm1096_vm0, %v1066_v48, 0.0  ;;  %v1540_v63 = vsel %vm1096_vm0, %v1073_v59, 0.0 }
 0x172   :  { %v2484_v6 = vsel %vm1663_vm4, %v1473_v26, %v1687_v14  ;;  %v1517_v11 = vadd.f32 %v1516_v51, %v1515_v19  ;;  %v2486_v10 = vpop.permute.xlu1 %846  ;;  %v817_v29 = vpop.permute.xlu0 %816  ;;  %v1541_v20 = vadd.f32 %v1540_v63, %v1539_v40  ;;  %v157_v26 = vld [vmem:[%s2702_s1 + $0x468] sm:$0xff] }
 0x173   :  { %v1070_v45 = vmul.f32 %v817_v29, %v150_v35  ;;  %v158_v35 = vld [vmem:[%s2702_s1 + $0x470] sm:$0xff] }
 0x175   :  { %v1529_v37 = vsel %vm1096_vm0, %v1070_v45, 0.0 }
 0x176   :  { %v836_v31 = vpop.permute.xlu1 %835  ;;  %v851_v34 = vpop.permute.xlu0 %850  ;;  %v1530_v39 = vadd.f32 %v1529_v37, %v1528_v21 }
 0x177   :  { %v1074_v0 = vmul.f32 %v836_v31, %v154_v55  ;;  %v156_v31 = vld [vmem:[%s2702_s1 + $0x460] sm:$0xff] }
 0x179   :  { %v1542_v41 = vsel %vm1096_vm0, %v1074_v0, 0.0  ;;  %v137_v0 = vld [vmem:[%s2702_s1 + $0x3c8] sm:$0xff] }
 0x17a   :  { %v2491_v38 = vpop.permute.xlu1 %869  ;;  %v2493_v43 = vpop.permute.xlu0 %865  ;;  %v1543_v23 = vadd.f32 %v1542_v41, %v1541_v20  ;;  %v134_v20 = vld [vmem:[%s2702_s1 + $0x3b0] sm:$0xff] }
 0x17e   :  { %v802_v17 = vpop.permute.xlu1 %801  ;;  %v2498_v33 = vpop.permute.xlu0 %736 }
 0x17f   :  { %v1067_v54 = vmul.f32 %v802_v17, %v147_v27  ;;  %v1077_v27 = vmul.f32 %v851_v34, %v157_v26  ;;  %v159_v17 = vld [vmem:[%s2702_s1 + $0x478] sm:$0xff]  ;;  %v160_v34 = vld [vmem:[%s2702_s1 + $0x480] sm:$0xff] }
 0x180   :  { %v1080_v59 = vmul.f32 %v2493_v43, %v160_v34  ;;  %v138_v34 = vld [vmem:[%s2702_s1 + $0x3d0] sm:$0xff] }
 0x181   :  { %v1518_v3 = vsel %vm1096_vm0, %v1067_v54, 0.0  ;;  %v1076_v54 = vmul.f32 %v2486_v10, %v156_v31 }
 0x182   :  { %v1519_v7 = vadd.f32 %v1518_v3, %v1517_v11  ;;  %v855_v13 = vpop.permute.xlu1 %854  ;;  %v821_v46 = vpop.permute.xlu0 %820 }
 0x183   :  { %v1071_v36 = vmul.f32 %v821_v46, %v151_v53  ;;  %v1078_v53 = vmul.f32 %v855_v13, %v158_v35  ;;  %v1553_v46 = vsel %vm1096_vm0, %v1077_v27, 0.0  ;;  %v162_v13 = vld [vmem:[%s2702_s1 + $0x490] sm:$0xff]  ;;  %v140_v35 = vld [vmem:[%s2702_s1 + $0x3e0] sm:$0xff] }
 0x184   :  { %v1520_v56 = vrot.slane %v1519_v7, 4 }
 0x185   :  { %v1531_v62 = vsel %vm1096_vm0, %v1071_v36, 0.0  ;;  %v161_v36 = vld [vmem:[%s2702_s1 + $0x488] sm:$0xff]  ;;  %v1555_v10 = vsel %vm1096_vm0, %v1078_v53, 0.0 }
 0x186   :  { %v1521_v57 = vadd.f32 %v1520_v56, %v1519_v7  ;;  %v1532_v50 = vadd.f32 %v1531_v62, %v1530_v39  ;;  %v2515_v44 = vpop.permute.xlu1 %888  ;;  %v2517_v58 = vpop.permute.xlu0 %884  ;;  %v1552_v56 = vsel %vm1096_vm0, %v1076_v54, 0.0 }
 0x187   :  { %v1084_v41 = vmul.f32 %v2517_v58, %v164_v61 }
 0x188   :  { %v1522_v28 = vrot.slane %v1521_v57, 2  ;;  %v1533_v60 = vrot.slane %v1532_v50, 4 }
 0x18a   :  { %v1523_v2 = vadd.f32 %v1522_v28, %v1521_v57  ;;  %v1534_v32 = vadd.f32 %v1533_v60, %v1532_v50  ;;  %v2519_v8 = vpop.permute.xlu1 %755  ;;  %v2521_v42 = vpop.permute.xlu0 %751  ;;  %v1554_v57 = vadd.f32 %v1553_v46, %v1552_v56  ;;  %v1081_v50 = vmul.f32 %v2491_v38, %v161_v36  ;;  %v133_v28 = vld [vmem:[%s2702_s1 + $0x3a8] sm:$0xff] }
 0x18b   :  { %v165_v60 = vld [vmem:[%s2702_s1 + $0x4a8] sm:$0xff] }
 0x18c   :  { %v1535_v12 = vrot.slane %v1534_v32, 2  ;;  %v1524_v14 = vrot.slane %v1523_v2, 1  ;;  %v1085_v40 = vmul.f32 %v2515_v44, %v165_v60  ;;  %v163_v44 = vld [vmem:[%s2702_s1 + $0x498] sm:$0xff] }
 0x18e   :  { %v1536_v1 = vadd.f32 %v1535_v12, %v1534_v32  ;;  %v874_v19 = vpop.permute.xlu1 %873  ;;  %v840_v16 = vpop.permute.xlu0 %839  ;;  %v1525_v25 = vadd.f32 %v1524_v14, %v1523_v2  ;;  %v1556_v2 = vadd.f32 %v1555_v10, %v1554_v57  ;;  %v136_v32 = vld [vmem:[%s2702_s1 + $0x3c0] sm:$0xff] }
 0x18f   :  { %v1075_v22 = vmul.f32 %v840_v16, %v155_v9  ;;  %v1082_v63 = vmul.f32 %v874_v19, %v162_v13  ;;  %v132_v12 = vld [vmem:[%s2702_s1 + $0x3a0] sm:$0xff]  ;;  %v1053_v9 = vmul.f32 %v2498_v33, %v133_v28  ;;  %v1566_v16 = vsel %vm1096_vm0, %v1081_v50, 0.0  ;;  %v169_v33 = vld [vmem:[%s2702_s1 + $0x4c8] sm:$0xff] }
 0x190   :  { %v1537_v5 = vrot.slane %v1536_v1, 1  ;;  %v1565_v19 = vsel %vm1096_vm0, %v1080_v59, 0.0  ;;  %v1052_v58 = vmul.f32 %v2462_v18, %v132_v12  ;;  %v166_v18 = vld [vmem:[%s2702_s1 + $0x4b0] sm:$0xff]  ;;  %v172_v59 = vld [vmem:[%s2702_s1 + $0x4e0] sm:$0xff]  ;;  %v173_v28 = vld [vmem:[%s2702_s1 + $0x4e8] sm:$0xff] }
 0x191   :  { %v1544_v24 = vsel %vm1096_vm0, %v1075_v22, 0.0  ;;  %v1057_v22 = vmul.f32 %v2519_v8, %v137_v0 }
 0x192   :  { %v1538_v49 = vadd.f32 %v1537_v5, %v1536_v1  ;;  %v1545_v15 = vadd.f32 %v1544_v24, %v1543_v23  ;;  %v2530_v21 = vpop.permute.xlu1 %907  ;;  %v2532_v30 = vpop.permute.xlu0 %903  ;;  %v1056_v5 = vmul.f32 %v2521_v42, %v136_v32  ;;  %v1568_v24 = vsel %vm1096_vm0, %v1082_v63, 0.0  ;;  %v141_v42 = vld [vmem:[%s2702_s1 + $0x3e8] sm:$0xff] }
 0x193   :  { %v1488_v31 = vsel %vm1096_vm0, %v1057_v22, 0.0  ;;  %v1474_v46 = vsel %vm1096_vm0, %v1052_v58, 0.0 }
 0x194   :  { %v1692_v4 = vsel %vm1657_vm1, %v1538_v49, %v1525_v25  ;;  %v1546_v48 = vrot.slane %v1545_v15, 4  ;;  %v168_v25 = vld [vmem:[%s2702_s1 + $0x4c0] sm:$0xff]  ;;  %v1567_v49 = vadd.f32 %v1566_v16, %v1565_v19  ;;  %v174_v19 = vld [vmem:[%s2702_s1 + $0x4f0] sm:$0xff] }
 0x195   :  { %v1088_v53 = vmul.f32 %v2532_v30, %v168_v25 }
 0x196   :  { %v1547_v51 = vadd.f32 %v1546_v48, %v1545_v15  ;;  %v2538_v11 = vpop.permute.xlu1 %770  ;;  %v741_v29 = vpop.permute.xlu0 %740  ;;  %v1475_v15 = vsel %vm1096_vm0, %v1053_v9, 0.0  ;;  %v1578_v48 = vsel %vm1096_vm0, %v1084_v41, 0.0  ;;  %v1569_v54 = vadd.f32 %v1568_v24, %v1567_v49  ;;  %v142_v9 = vld [vmem:[%s2702_s1 + $0x3f0] sm:$0xff] }
 0x197   :  { %v1054_v8 = vmul.f32 %v741_v29, %v134_v20  ;;  %v1089_v29 = vmul.f32 %v2530_v21, %v169_v33  ;;  %v1060_v30 = vmul.f32 %v2538_v11, %v140_v35  ;;  %v1591_v60 = vsel %vm1096_vm0, %v1088_v53, 0.0 }
 0x198   :  { %v1548_v45 = vrot.slane %v1547_v51, 2 }
 0x199   :  { %v1477_v21 = vsel %vm1096_vm0, %v1054_v8, 0.0  ;;  %v1500_v41 = vsel %vm1096_vm0, %v1060_v30, 0.0 }
 0x19a   :  { %v1549_v37 = vadd.f32 %v1548_v45, %v1547_v51  ;;  %v859_v3 = vpop.permute.xlu1 %858  ;;  %v775_v7 = vpop.permute.xlu0 %774 }
 0x19b   :  { %v1079_v39 = vmul.f32 %v859_v3, %v159_v17  ;;  %v1487_v17 = vsel %vm1096_vm0, %v1056_v5, 0.0  ;;  %v135_v3 = vld [vmem:[%s2702_s1 + $0x3b8] sm:$0xff] }
 0x19c   :  { %v1550_v47 = vrot.slane %v1549_v37, 1  ;;  %v1489_v57 = vadd.f32 %v1488_v31, %v1487_v17 }
 0x19d   :  { %v1557_v43 = vsel %vm1096_vm0, %v1079_v39, 0.0  ;;  %v1476_v39 = vadd.f32 %v1475_v15, %v1474_v46 }
 0x19e   :  { %v1551_v62 = vadd.f32 %v1550_v47, %v1549_v37  ;;  %v2562_v52 = vpop.permute.xlu1 %922  ;;  %v893_v55 = vpop.permute.xlu0 %892  ;;  %v1558_v23 = vadd.f32 %v1557_v43, %v1556_v2  ;;  %v1061_v37 = vmul.f32 %v775_v7, %v141_v42  ;;  %v170_v7 = vld [vmem:[%s2702_s1 + $0x4d0] sm:$0xff]  ;;  %v167_v2 = vld [vmem:[%s2702_s1 + $0x4b8] sm:$0xff] }
 0x19f   :  { %v1086_v36 = vmul.f32 %v893_v55, %v166_v18  ;;  %v1592_v55 = vsel %vm1096_vm0, %v1089_v29, 0.0  ;;  %v1478_v61 = vadd.f32 %v1477_v21, %v1476_v39  ;;  %v1092_v20 = vmul.f32 %v2562_v52, %v172_v59  ;;  %v171_v52 = vld [vmem:[%s2702_s1 + $0x4d8] sm:$0xff] }
 0x1a0   :  { %v2579_v38 = vsel %vm1659_vm2, %v1551_v62, %v1692_v4  ;;  %v1579_v4 = vsel %vm1096_vm0, %v1085_v40, 0.0  ;;  %v1559_v27 = vrot.slane %v1558_v23, 4  ;;  %v1501_v0 = vsel %vm1096_vm0, %v1061_v37, 0.0  ;;  %v175_v21 = vld [vmem:[%s2702_s1 + $0x4f8] sm:$0xff] }
 0x1a1   :  { %v1580_v56 = vadd.f32 %v1579_v4, %v1578_v48  ;;  %v1581_v32 = vsel %vm1096_vm0, %v1086_v36, 0.0  ;;  %v1593_v5 = vadd.f32 %v1592_v55, %v1591_v60  ;;  %v1604_v18 = vsel %vm1096_vm0, %v1092_v20, 0.0  ;;  %v143_v36 = vld [vmem:[%s2702_s1 + $0x3f8] sm:$0xff] }
 0x1a2   :  { %v760_v14 = vpop.permute.xlu1 %759  ;;  %v927_v1 = vpop.permute.xlu0 %926  ;;  %v1560_v50 = vadd.f32 %v1559_v27, %v1558_v23 }
 0x1a3   :  { %v1058_v43 = vmul.f32 %v760_v14, %v138_v34  ;;  %v1093_v16 = vmul.f32 %v927_v1, %v173_v28  ;;  %v1582_v24 = vadd.f32 %v1581_v32, %v1580_v56  ;;  %v139_v1 = vld [vmem:[%s2702_s1 + $0x3d8] sm:$0xff] }
 0x1a4   :  { %v1561_v33 = vrot.slane %v1560_v50, 2 }
 0x1a5   :  { %v1490_v25 = vsel %vm1096_vm0, %v1058_v43, 0.0 }
 0x1a6   :  { %v912_v26 = vpop.permute.xlu1 %911  ;;  %v878_v51 = vpop.permute.xlu0 %877  ;;  %v1562_v27 = vadd.f32 %v1561_v33, %v1560_v50 }
 0x1a7   :  { %v1083_v45 = vmul.f32 %v878_v51, %v163_v44  ;;  %v1090_v63 = vmul.f32 %v912_v26, %v170_v7  ;;  %v1502_v44 = vadd.f32 %v1501_v0, %v1500_v41  ;;  %v1605_v26 = vsel %vm1096_vm0, %v1093_v16, 0.0 }
 0x1a8   :  { %v1606_v30 = vadd.f32 %v1605_v26, %v1604_v18 }
 0x1a9   :  { %v1570_v47 = vsel %vm1096_vm0, %v1083_v45, 0.0  ;;  %v1594_v49 = vsel %vm1096_vm0, %v1090_v63, 0.0  ;;  %v1491_v45 = vadd.f32 %v1490_v25, %v1489_v57 }
 0x1aa   :  { %v1571_v10 = vadd.f32 %v1570_v47, %v1569_v54  ;;  %v779_v13 = vpop.permute.xlu1 %778  ;;  %v745_v62 = vpop.permute.xlu0 %744  ;;  %v1595_v53 = vadd.f32 %v1594_v49, %v1593_v5 }
 0x1ab   :  { %v1055_v11 = vmul.f32 %v745_v62, %v135_v3  ;;  %v1062_v8 = vmul.f32 %v779_v13, %v142_v9 }
 0x1ac   :  { %v1572_v12 = vrot.slane %v1571_v10, 4 }
 0x1ad   :  { %v1479_v40 = vsel %vm1096_vm0, %v1055_v11, 0.0  ;;  %v1503_v37 = vsel %vm1096_vm0, %v1062_v8, 0.0 }
 0x1ae   :  { %v1480_v14 = vadd.f32 %v1479_v40, %v1478_v61  ;;  %v931_v22 = vpop.permute.xlu1 %930  ;;  %v897_v23 = vpop.permute.xlu0 %896  ;;  %v1573_v15 = vadd.f32 %v1572_v12, %v1571_v10  ;;  %v1504_v55 = vadd.f32 %v1503_v37, %v1502_v44 }
 0x1af   :  { %v1087_v58 = vmul.f32 %v897_v23, %v167_v2  ;;  %v1094_v4 = vmul.f32 %v931_v22, %v174_v19 }
 0x1b0   :  { %v1481_v42 = vrot.slane %v1480_v14, 4  ;;  %v1574_v34 = vrot.slane %v1573_v15, 2 }
 0x1b1   :  { %v1583_v48 = vsel %vm1096_vm0, %v1087_v58, 0.0  ;;  %v1607_v47 = vsel %vm1096_vm0, %v1094_v4, 0.0 }
 0x1b2   :  { %v1482_v51 = vadd.f32 %v1481_v42, %v1480_v14  ;;  %v1584_v31 = vadd.f32 %v1583_v48, %v1582_v24  ;;  %v916_v29 = vpop.permute.xlu1 %915  ;;  %v764_v35 = vpop.permute.xlu0 %763  ;;  %v1608_v60 = vadd.f32 %v1607_v47, %v1606_v30  ;;  %v1575_v43 = vadd.f32 %v1574_v34, %v1573_v15 }
 0x1b3   :  { %v1091_v17 = vmul.f32 %v916_v29, %v171_v52  ;;  %v1059_v54 = vmul.f32 %v764_v35, %v139_v1  ;;  %v1563_v14 = vrot.slane %v1562_v27, 1 }
 0x1b4   :  { %v1483_v3 = vrot.slane %v1482_v51, 2  ;;  %v1585_v46 = vrot.slane %v1584_v31, 4  ;;  %v1576_v5 = vrot.slane %v1575_v43, 1 }
 0x1b5   :  { %v1596_v39 = vsel %vm1096_vm0, %v1091_v17, 0.0  ;;  %v1492_v56 = vsel %vm1096_vm0, %v1059_v54, 0.0  ;;  %v1564_v52 = vadd.f32 %v1563_v14, %v1562_v27 }
 0x1b6   :  { %v1484_v7 = vadd.f32 %v1483_v3, %v1482_v51  ;;  %v1586_v10 = vadd.f32 %v1585_v46, %v1584_v31  ;;  %v1597_v13 = vadd.f32 %v1596_v39, %v1595_v53  ;;  %v935_v62 = vpop.permute.xlu1 %934  ;;  %v783_v57 = vpop.permute.xlu0 %782  ;;  %v1493_v50 = vadd.f32 %v1492_v56, %v1491_v45 }
 0x1b7   :  { %v1095_v59 = vmul.f32 %v935_v62, %v175_v21  ;;  %v1063_v28 = vmul.f32 %v783_v57, %v143_v36  ;;  %v1577_v15 = vadd.f32 %v1576_v5, %v1575_v43  ;;  %v1694_v31 = vsel %vm1661_vm3, %v1564_v52, %v2579_v38 }
 0x1b8   :  { %v1485_v11 = vrot.slane %v1484_v7, 1  ;;  %v1587_v61 = vrot.slane %v1586_v10, 2  ;;  %v1598_v0 = vrot.slane %v1597_v13, 4  ;;  %v1494_v2 = vrot.slane %v1493_v50, 4 }
 0x1b9   :  { %v1609_v32 = vsel %vm1096_vm0, %v1095_v59, 0.0  ;;  %v1505_v63 = vsel %vm1096_vm0, %v1063_v28, 0.0  ;;  %v1695_v45 = vsel %vm1663_vm4, %v1577_v15, %v1694_v31 }
 0x1ba   :  { %v1486_v12 = vadd.f32 %v1485_v11, %v1484_v7  ;;  %v1588_v9 = vadd.f32 %v1587_v61, %v1586_v10  ;;  %v1599_v40 = vadd.f32 %v1598_v0, %v1597_v13  ;;  %v1610_v41 = vadd.f32 %v1609_v32, %v1608_v60 }
 0x1bb   :  { %v1495_v20 = vadd.f32 %v1494_v2, %v1493_v50  ;;  %v1506_v16 = vadd.f32 %v1505_v63, %v1504_v55 }
 0x1bc   :  { %v1689_v19 = vsel %vm1665_vm5, %v1486_v12, %v2484_v6  ;;  %v1600_v22 = vrot.slane %v1599_v40, 2  ;;  %v1611_v23 = vrot.slane %v1610_v41, 4  ;;  %v1589_v58 = vrot.slane %v1588_v9, 1 }
 0x1bd   :  { %v1496_v33 = vrot.slane %v1495_v20, 2  ;;  %v1507_v44 = vrot.slane %v1506_v16, 4 }
 0x1be   :  { %v1601_v24 = vadd.f32 %v1600_v22, %v1599_v40  ;;  %v1612_v25 = vadd.f32 %v1611_v23, %v1610_v41  ;;  %v1590_v18 = vadd.f32 %v1589_v58, %v1588_v9 }
 0x1bf   :  { %v1497_v8 = vadd.f32 %v1496_v33, %v1495_v20  ;;  %v1508_v42 = vadd.f32 %v1507_v44, %v1506_v16 }
 0x1c0   :  { %v1602_v1 = vrot.slane %v1601_v24, 1  ;;  %v1613_v49 = vrot.slane %v1612_v25, 2  ;;  %v1696_v54 = vsel %vm1665_vm5, %v1590_v18, %v1695_v45 }
 0x1c1   :  { %v1498_v4 = vrot.slane %v1497_v8, 1  ;;  %v1509_v48 = vrot.slane %v1508_v42, 2 }
 0x1c2   :  { %v1614_v26 = vadd.f32 %v1613_v49, %v1612_v25  ;;  %v1603_v51 = vadd.f32 %v1602_v1, %v1601_v24 }
 0x1c3   :  { %v1510_v6 = vadd.f32 %v1509_v48, %v1508_v42  ;;  %v1499_v29 = vadd.f32 %v1498_v4, %v1497_v8 }
 0x1c4   :  { %v1615_v35 = vrot.slane %v1614_v26, 1  ;;  %v1697_v53 = vsel %vm1667_vm6, %v1603_v51, %v1696_v54 }
 0x1c5   :  { %v1511_v17 = vrot.slane %v1510_v6, 1  ;;  %v1690_v3 = vsel %vm1667_vm6, %v1499_v29, %v1689_v19 }
 0x1c6   :  { %v1616_v27 = vadd.f32 %v1615_v35, %v1614_v26 }
 0x1c7   :  { %v1512_v37 = vadd.f32 %v1511_v17, %v1510_v6 }
 0x1c8   :  { %v1698_v46 = vsel %vm1669_vm7, %v1616_v27, %v1697_v53 }
 0x1c9   :  { %1708 = vst.msk [vmem:[%s2703_s2 + $0x20] sm:$0xff] %vm1096_vm0, %v1698_v46  ;;  %v1691_v38 = vsel %vm1669_vm7, %v1512_v37, %v1690_v3 }
 0x1ca   :  { %1707 = vst.msk [vmem:[%s2703_s2 + $0x18] sm:$0xff] %vm1096_vm0, %v1691_v38 }

// kernel: _encoder_forward.16
= control target key start
LH: loop header
LB: loop body
LE: loop exit
PB: predicated region body
PF: predicated region fallthrough
CT: control target
= control target key end

     0   :  { %v326_v0 = vmov 0   ;;  %v327_v2 = vmov 0.0   ;;  %vm328_vm0 = vmmov 0   ;;  %vm83_vm1 = vcmask 261120   ;;  %s438_s1 = inlined_call_operand.vmem [shape: f32[16,1], index: 1, kind: input, shape index: {}]   ;;  %s439_s5 = inlined_call_operand.vmem [shape: bf16[32,96], index: 5, kind: input, shape index: {}]   ;;  %s440_s2 = inlined_call_operand.vmem [shape: f32[16,32], index: 2, kind: input, shape index: {}]   ;;  %s441_s4 = inlined_call_operand.vmem [shape: bf16[32,96], index: 4, kind: input, shape index: {}]   ;;  %s442_s0 = inlined_call_operand.vmem [shape: f32[16,32], index: 0, kind: input, shape index: {}]   ;;  %s443_s3 = inlined_call_operand.vmem [shape: f32[1,32], index: 3, kind: input, shape index: {}]   ;;  %s444_s7 = inlined_call_operand.vmem [shape: f32[1,96], index: 7, kind: input, shape index: {}]   ;;  %s445_s6 = inlined_call_operand.vmem [shape: f32[1,96], index: 6, kind: input, shape index: {}]   ;;  %s446_s8 = inlined_call_operand.vmem [shape: f32[16,32], index: 8, kind: output, shape index: {}]  }
   0x1   :  { %309 = vset.pattern.permute.xlu0 %v326_v0  ;;  %v32_v1 = vld [vmem:[%s438_s1] sm:$0xff]  ;;  %295 = vmatprep.subr.bf16.mxu1 %v327_v2  ;;  %v310_v3 = vld [vmem:[%s439_s5 + $0x8] sm:$0xff]  }
   0x2   :  { %36 = vperm.xlu0 %309, %v32_v1   ;;  %299 = vmatprep.mubr.msk.bf16.mxu1 %vm328_vm0, %v327_v2  ;;  %v33_v4 = vld [vmem:[%s438_s1 + $0x8] sm:$0xff]  ;;  %v311_v5 = vld [vmem:[%s439_s5] sm:$0xff]  }
   0x3   :  { %287 = vmatprep.subr.bf16.mxu0 %v327_v2  ;;  %291 = vmatprep.mubr.msk.bf16.mxu0 %vm328_vm0, %v327_v2  ;;  %v392_v6 = vld [vmem:[%s440_s2] sm:$0xff]  ;;  %v397_v7 = vld [vmem:[%s440_s2 + $0x8] sm:$0xff] }
   0x4   :  { %296 = vmatpush3.bf16.msra.mxu1 %v310_v3  ;;  %v312_v8 = vld [vmem:[%s441_s4 + $0x8] sm:$0xff]   ;;  %v128_v9 = vpack.c.bf16 %v397_v7, %v392_v6  ;;  %v313_v10 = vld [vmem:[%s441_s4] sm:$0xff]  }
   0x5   :  { %297 = vmatprep.subr.bf16.mxu1 %v327_v2  ;;  %288 = vmatpush3.bf16.msra.mxu0 %v312_v8  ;;  %v30_v11 = vld [vmem:[%s442_s0] sm:$0xff]  ;;  %v31_v15 = vld [vmem:[%s442_s0 + $0x8] sm:$0xff] }
   0x6   :  { %41 = vperm.xlu0 %309, %v33_v4   ;;  %289 = vmatprep.subr.bf16.mxu0 %v327_v2  ;;  %v270_v14 = vld [vmem:[%s443_s3] ss:$0 sm:$0xff]  ;;  %s329_s3 = smov 64  }
   0x7   :  { %v275_v23 = vld [vmem:[%s444_s7] ss:$0 sm:$0xff]  ;;  %s331_s7 = smov 32  }
   0x8   :  { %298 = vmatpush3.bf16.msra.mxu1 %v311_v5  ;;  %v271_v30 = vld [vmem:[%s445_s6] ss:$0 sm:$0xff]  ;;  %s330_s6 = smov 96  }
   0x9   :  { %290 = vmatpush3.bf16.msra.mxu0 %v313_v10 }
   0xb   :  { %300 = vmatmul.mubr.msk.bf16.vlgmr.msra.gmra.mxu1 %vm83_vm1, %v128_v9 }
  0x7d   :  { %v37_v12 = vpop.permute.xlu0 %36 }
  0x7e   :  { %v44_v13 = vmul.f32 %v37_v12, %v30_v11 }
  0x80   :  { %v53_v17 = vadd.f32 %v270_v14, %v44_v13 }
  0x81   :  { %v42_v16 = vpop.permute.xlu0 %41 }
  0x82   :  { %v45_v18 = vmul.f32 %v42_v16, %v31_v15  ;;  %v55_v20 = vmax.f32 %v53_v17, 0.0 }
  0x84   :  { %v54_v19 = vadd.f32 %v270_v14, %v45_v18 }
  0x86   :  { %v56_v21 = vmax.f32 %v54_v19, 0.0 }
  0x88   :  { %v59_v22 = vpack.c.bf16 %v56_v21, %v55_v20 }
  0x8a   :  { %292 = vmatmul.mubr.msk.bf16.vlgmr.msra.gmra.mxu0 %vm83_vm1, %v59_v22 }
  0xcb   :  { %v189_v24 = vpop.f32.mrf.mxu1 }
  0xcc   :  { %v190_v25 = vadd.f32 %v275_v23, %v189_v24 }
  0xcd   :  { %v301_v26 = vpop.f32.mrf.mxu1 }
  0xce   :  { %212 = vrot.lane.b32.xlu1 %v190_v25, %s329_s3 }
  0xcf   :  { %v192_v27 = vpop.f32.mrf.mxu1 }
  0xd0   :  { %v193_v28 = vadd.f32 %v275_v23, %v192_v27 }
  0xd1   :  { %v302_v29 = vpop.f32.mrf.mxu1 }
  0xd2   :  { %214 = vrot.lane.b32.xlu1 %v193_v28, %s329_s3 }
 0x140   :  { %v213_v45 = vpop.permute.xlu1 %212 }
 0x144   :  { %v215_v49 = vpop.permute.xlu1 %214 }
 0x14a   :  { %v121_v31 = vpop.f32.mrf.mxu0 }
 0x14b   :  { %v122_v32 = vadd.f32 %v271_v30, %v121_v31 }
 0x14c   :  { %v293_v33 = vpop.f32.mrf.mxu0 }
 0x14d   :  { %v196_v34 = vadd.f32 %v190_v25, %v122_v32 }
 0x14e   :  { %v124_v35 = vpop.f32.mrf.mxu0 }
 0x14f   :  { %v279_v36 = vmul.f32 -1.442695, %v196_v34  ;;  %v125_v37 = vadd.f32 %v271_v30, %v124_v35 }
 0x150   :  { %v294_v38 = vpop.f32.mrf.mxu0 }
 0x151   :  { %314 = vpow2.f32 %v279_v36  ;;  %v197_v39 = vadd.f32 %v193_v28, %v125_v37 }
 0x153   :  { %v280_v40 = vmul.f32 -1.442695, %v197_v39 }
 0x155   :  { %316 = vpow2.f32 %v280_v40 }
 0x15e   :  { %v315_v41 = vpop.eup %314 }
 0x15f   :  { %v204_v42 = vadd.f32 1.0, %v315_v41 }
 0x161   :  { %318 = vrcp.f32 %v204_v42 }
 0x162   :  { %v317_v43 = vpop.eup %316 }
 0x163   :  { %v205_v44 = vadd.f32 1.0, %v317_v43 }
 0x165   :  { %320 = vrcp.f32 %v205_v44 }
 0x16e   :  { %v319_v46 = vpop.eup %318 }
 0x16f   :  { %v218_v47 = vmul.f32 %v319_v46, %v213_v45  ;;  %v232_v58 = vsub.f32 1.0, %v319_v46 }
 0x171   :  { %222 = vrot.lane.b32.xlu0 %v218_v47, %s329_s3 }
 0x172   :  { %v321_v48 = vpop.eup %320 }
 0x173   :  { %v219_v50 = vmul.f32 %v321_v48, %v215_v49  ;;  %v233_v0 = vsub.f32 1.0, %v321_v48 }
 0x175   :  { %224 = vrot.lane.b32.xlu1 %v219_v50, %s329_s3 }
 0x1e3   :  { %v223_v51 = vpop.permute.xlu0 %222 }
 0x1e4   :  { %v228_v52 = vadd.f32 %v223_v51, %v122_v32 }
 0x1e6   :  { %322 = vtanh.f32 %v228_v52 }
 0x1e7   :  { %v225_v53 = vpop.permute.xlu1 %224 }
 0x1e8   :  { %v229_v54 = vadd.f32 %v225_v53, %v125_v37 }
 0x1ea   :  { %324 = vtanh.f32 %v229_v54 }
 0x1f3   :  { %v323_v55 = vpop.eup %322 }
 0x1f4   :  { %236 = vrot.lane.b32.xlu0 %v323_v55, %s330_s6 }
 0x1f7   :  { %v325_v56 = vpop.eup %324 }
 0x1f8   :  { %246 = vrot.lane.b32.xlu0 %v392_v6, %s331_s7  ;;  %238 = vrot.lane.b32.xlu1 %v325_v56, %s330_s6 }
 0x1fc   :  { %248 = vrot.lane.b32.xlu1 %v397_v7, %s331_s7 }
 0x266   :  { %v237_v57 = vpop.permute.xlu0 %236 }
 0x267   :  { %v242_v61 = vmul.f32 %v237_v57, %v232_v58 }
 0x26a   :  { %v247_v59 = vpop.permute.xlu0 %246  ;;  %v239_v60 = vpop.permute.xlu1 %238 }
 0x26b   :  { %v252_v62 = vmul.f32 %v319_v46, %v247_v59  ;;  %v243_v2 = vmul.f32 %v239_v60, %v233_v0 }
 0x26d   :  { %v254_v63 = vadd.f32 %v252_v62, %v242_v61 }
 0x26e   :  { %v249_v1 = vpop.permute.xlu1 %248 }
 0x26f   :  { %v253_v3 = vmul.f32 %v321_v48, %v249_v1  ;;  %258 = vrot.lane.b32.xlu0 %v254_v63, %s330_s6 }
 0x271   :  { %v255_v4 = vadd.f32 %v253_v3, %v243_v2 }
 0x273   :  { %260 = vrot.lane.b32.xlu1 %v255_v4, %s330_s6 }
 0x2e1   :  { %v259_v5 = vpop.permute.xlu0 %258 }
 0x2e2   :  { %264 = vst.msk [vmem:[%s446_s8] sm:$0xff] %vm83_vm1, %v259_v5 }
 0x2e5   :  { %v261_v6 = vpop.permute.xlu1 %260 }
 0x2e6   :  { %265 = vst.msk [vmem:[%s446_s8 + $0x8] sm:$0xff] %vm83_vm1, %v261_v6 }

// kernel: _encoder_forward.23
= control target key start
LH: loop header
LB: loop body
LE: loop exit
PB: predicated region body
PF: predicated region fallthrough
CT: control target
= control target key end

     0   :  { %v312_v1 = vmov 0.0   ;;  %vm313_vm0 = vmmov 0   ;;  %s400_s0 = inlined_call_operand.vmem [shape: f32[8,64], index: 0, kind: input, shape index: {}]   ;;  %s401_s1 = inlined_call_operand.vmem [shape: f32[8,32], index: 1, kind: input, shape index: {}]   ;;  %s402_s2 = inlined_call_operand.vmem [shape: f32[8,32], index: 2, kind: input, shape index: {}]   ;;  %s403_s3 = inlined_call_operand.vmem [shape: bf16[64,128], index: 3, kind: input, shape index: {}]   ;;  %s404_s4 = inlined_call_operand.vmem [shape: bf16[32,128], index: 4, kind: input, shape index: {}]   ;;  %s405_s5 = inlined_call_operand.vmem [shape: f32[1,128], index: 5, kind: input, shape index: {}]   ;;  %s406_s6 = inlined_call_operand.vmem [shape: f32[8,32], index: 6, kind: output, shape index: {0}]   ;;  %s407_s7 = inlined_call_operand.hbm [shape: f32[8,32], index: 7, kind: output, shape index: {1}]  }
   0x1   :  { %v276_v0 = vld [vmem:[%s403_s3 + $0x18] sm:$0xff]   ;;  %258 = vmatprep.subr.bf16.mxu1 %v312_v1  ;;  %250 = vmatprep.subr.bf16.mxu0 %v312_v1  ;;  %v277_v2 = vld [vmem:[%s404_s4 + $0x8] sm:$0xff]   ;;  %v278_v3 = vld [vmem:[%s403_s3 + $0x10] sm:$0xff]  }
   0x2   :  { %259 = vmatpush3.bf16.msra.mxu1 %v276_v0  ;;  %254 = vmatprep.mubr.msk.bf16.mxu0 %vm313_vm0, %v312_v1  ;;  %v279_v4 = vld [vmem:[%s404_s4] sm:$0xff]   ;;  %v280_v6 = vld [vmem:[%s403_s3 + $0x8] sm:$0xff]  }
   0x3   :  { %251 = vmatpush3.bf16.msra.mxu0 %v277_v2  ;;  %260 = vmatprep.subr.bf16.mxu1 %v312_v1  ;;  %v29_v5 = vld [vmem:[%s401_s1] sm:$0xff] }
   0x4   :  { %252 = vmatprep.subr.bf16.mxu0 %v312_v1  ;;  %266 = vmatprep.mubr.msk.bf16.mxu1 %vm313_vm0, %v312_v1  ;;  %v38_v7 = vpack.c.bf16 %v29_v5, %v29_v5 }
   0x6   :  { %261 = vmatpush3.bf16.msra.mxu1 %v278_v3 }
   0x7   :  { %13 = vsyncpa [#allocation3], 0  ;;  %253 = vmatpush3.bf16.msra.mxu0 %v279_v4  ;;  %262 = vmatprep.subr.bf16.mxu1 %v312_v1  ;;  %vm55_vm1 = vcmask 261120   ;;  %v281_v8 = vld [vmem:[%s403_s3] sm:$0xff]   ;;  %vm123_vm2 = vcmask 523264   ;;  %s315_s18 = smov 32  }
   0x8   :  { %v27_v9 = vld [vmem:[%s400_s0] sm:$0xff]  ;;  %s314_s0 = smov 64  }
   0x9   :  { %v28_v10 = vpack.c.bf16 %v27_v9, %v27_v9  ;;  %v240_v16 = vld [vmem:[%s405_s5] ss:$0 sm:$0xff]  ;;  %s316_s5 = smov 96  }
   0xa   :  { %263 = vmatpush3.bf16.msra.mxu1 %v280_v6  ;;  %255 = vmatmul.mubr.msk.bf16.vlgmr.msra.gmra.mxu0 %vm55_vm1, %v38_v7  ;;  %v182_v23 = vld [vmem:[%s402_s2] sm:$0xff]  ;;  %s317_s2 = smov [#allocation2]  }
   0xb   :  { %264 = vmatprep.subr.bf16.mxu1 %v312_v1  ;;  %s222_s19 = sshll.u32 %s317_s2, 4  ;;  %s223_s19 = int_to_ptr.vmem [resolvable:$true] %s222_s19 }
   0xc   :  { %s290_s20 = scalar_lea.vmem %s223_s19, 128  ;;  %p295_p1 = scmp.lt.s32.totalorder %s223_s19, %s223_s19 }
   0xd   :  { %p291_p0 = scmp.ne.s32.totalorder %s223_s19, %s290_s20  ;;  %p296_p2 = scmp.lt.s32.totalorder %s290_s20, %s290_s20 }
   0xe   :  { %265 = vmatpush3.bf16.msra.mxu1 %v281_v8 }
   0xf   :  { %p297_p3 = por %p296_p2, %p295_p1 }
  0x11   :  { %267 = vmatmul.mubr.msk.bf16.vlgmr.msra.gmra.mxu1 %vm123_vm2, %v28_v10  ;;  %p298_p4 = pnand %p297_p3, %p291_p0 }
  0xca   :  { %v93_v11 = vpop.f32.mrf.mxu0 }
  0xcc   :  { %v256_v12 = vpop.f32.mrf.mxu0 }
  0xce   :  { %v96_v13 = vpop.f32.mrf.mxu0 }
  0xd0   :  { %v257_v14 = vpop.f32.mrf.mxu0 }
  0xd1   :  { %v161_v15 = vpop.f32.mrf.mxu1 }
  0xd2   :  { %v162_v17 = vadd.f32 %v161_v15, %v93_v11 }
  0xd3   :  { %v268_v18 = vpop.f32.mrf.mxu1 }
  0xd4   :  { %v174_v19 = vadd.f32 %v240_v16, %v162_v17 }
  0xd5   :  { %v164_v20 = vpop.f32.mrf.mxu1 }
  0xd6   :  { %282 = vtanh.f32 %v174_v19  ;;  %v241_v24 = vmul.f32 -1.442695, %v174_v19 }
  0xd7   :  { %v269_v21 = vpop.f32.mrf.mxu1 }
  0xd8   :  { %284 = vpow2.f32 %v241_v24 }
  0xe3   :  { %v283_v22 = vpop.eup %282 }
  0xe4   :  { %189 = vrot.lane.b32.xlu0 %v283_v22, %s314_s0 }
  0xe5   :  { %v285_v25 = vpop.eup %284 }
  0xe6   :  { %v178_v26 = vadd.f32 1.0, %v285_v25 }
  0xe8   :  { %184 = vrot.lane.b32.xlu0 %v182_v23, %s315_s18  ;;  %286 = vrcp.f32 %v178_v26 }
  0xf5   :  { %v287_v27 = vpop.eup %286 }
 0x156   :  { %v190_v28 = vpop.permute.xlu0 %189 }
 0x157   :  { %v192_v29 = vmul.f32 %v287_v27, %v190_v28 }
 0x159   :  { %194 = vrot.lane.b32.xlu1 %v192_v29, %s315_s18 }
 0x15a   :  { %v185_v30 = vpop.permute.xlu0 %184 }
 0x15b   :  { %v187_v31 = vmul.f32 %v287_v27, %v185_v30 }
 0x1cb   :  { %v195_v32 = vpop.permute.xlu1 %194 }
 0x1cc   :  { %v197_v33 = vadd.f32 %v195_v32, %v187_v31 }
 0x1ce   :  { %288 = vtanh.f32 %v197_v33  ;;  %210 = vrot.lane.b32.xlu0 %v197_v33, %s316_s5 }
 0x1db   :  { %v289_v34 = vpop.eup %288 }
 0x1dc   :  { %200 = vrot.lane.b32.xlu1 %v289_v34, %s314_s0 }
 0x240   :  { %v211_v35 = vpop.permute.xlu0 %210 }
 0x241   :  { %213 = vst.msk [vmem:[#allocation2] sm:$0xff] %vm55_vm1, %v211_v35 }
 0x242   :  { %301 = shalt.err (!%p298_p4)
}
 0x243   :  { %225 = dma.vmem_to_hbm [thread:$0]  %s223_s19, 128, %s407_s7, [#allocation3]  }
 0x24e   :  { %v201_v36 = vpop.permute.xlu1 %200 }
 0x24f   :  { %v203_v37 = vmul.f32 %v287_v27, %v201_v36 }
 0x251   :  { %205 = vrot.lane.b32.xlu1 %v203_v37, %s315_s18 }
 0x2c3   :  { %v206_v38 = vpop.permute.xlu1 %205 }
 0x2c4   :  { %208 = vst.msk [vmem:[%s406_s6] sm:$0xff] %vm55_vm1, %v206_v38 }
 0x2c5   :  { %310 = dma.done.wait [#allocation3], 128  }
 0x2c6   :  { %311 = vsyncadd [#allocation3], 4294967168 }
 0x2c7   :  { %231 = vsyncpa [#allocation3], 1 }

</bundles_post_ra>
